<compile_context>
chip_gen: v5e
topology: v5e:2x2
jax: 0.10.0
libtpu: 0.0.40
codegen_flags: <defaults>
</compile_context>

<pallas_src>
import functools

import jax
import jax.numpy as jnp
from jax.experimental import pallas as pl
from jax.experimental.pallas import tpu as pltpu


# ---------------------------------------------------------------------------
# Kernels
# ---------------------------------------------------------------------------
def _logits_partial_kernel(z_ref, w1b_ref, b1b_ref, w2b_ref, out_ref):
    """Pass 1 (large-N path): per-tile partial sums of the metapath logits.

    z_ref   : (tn, M*D)   f32 tile of z reshaped to (N, M*D)   (lane-dense)
    w1b_ref : (M*D, M*H)  bf16 block-diag(W1): all M projections in one matmul
    b1b_ref : (1, M*H)    f32 bias tiled M times
    w2b_ref : (M*H, M)    f32 block-diag(w2): per-metapath score columns
    out_ref : (1, 1, M)   f32 per-tile partial logit sums
    """
    z = z_ref[...].astype(jnp.bfloat16)                              # bf16 MXU op
    h = jnp.tanh(
        jnp.dot(z, w1b_ref[...], preferred_element_type=jnp.float32)
        + b1b_ref[...])                                              # (tn, M*H) f32
    colsum = jnp.sum(h, axis=0, keepdims=True)                       # (1, M*H)
    out_ref[0] = jnp.dot(colsum, w2b_ref[...],
                         preferred_element_type=jnp.float32)         # (1, M)


def _weighted_sum_kernel(z_ref, s_ref, o_ref):
    """Pass 2 (large-N path): out = sum_m beta[m] * z[:, m, :] as one matmul.

    z_ref : (tnr, k*M*D)  f32, k nodes folded per row (lane-dense load)
    s_ref : (k*M*D, k*D)  bf16, beta folded into a block-selector matrix
    o_ref : (tnr, k*D)    lane-dense store; unfolded back to (N, D) in JAX
    """
    o_ref[...] = jnp.dot(z_ref[...].astype(jnp.bfloat16), s_ref[...],
                         preferred_element_type=jnp.float32).astype(o_ref.dtype)


def _fused_small_kernel(z_ref, w1b_ref, b1b_ref, w2b_ref, exp_ref, sel_ref,
                        o_ref, *, n_valid):
    """Small-N fast path: z resident in VMEM, logits + softmax + weighted sum
    in one kernel (single HBM read of z, no intermediate XLA ops).

    z_ref   : (N, M*D)   f32
    w1b_ref : (M*D, M*H) bf16 block-diag(W1)
    b1b_ref : (1, M*H)   f32
    w2b_ref : (M*H, M)   f32
    exp_ref : (M, M*D)   f32  E[m, m*D+d] = 1   (beta -> lane expansion)
    sel_ref : (M*D, D)   bf16 sel[m*D+d, d'] = (d==d')
    o_ref   : (N, D)
    """
    z = z_ref[...]
    h = jnp.tanh(
        jnp.dot(z.astype(jnp.bfloat16), w1b_ref[...],
                preferred_element_type=jnp.float32) + b1b_ref[...])   # (N, M*H)
    colsum = jnp.sum(h, axis=0, keepdims=True)                        # (1, M*H)
    logits = jnp.dot(colsum, w2b_ref[...],
                     preferred_element_type=jnp.float32) * (1.0 / n_valid)
    m = jnp.max(logits, axis=-1, keepdims=True)
    e = jnp.exp(logits - m)
    beta = e / jnp.sum(e, axis=-1, keepdims=True)                     # (1, M)
    beta_lanes = jnp.dot(beta, exp_ref[...],
                         preferred_element_type=jnp.float32)          # (1, M*D)
    weighted = (z * beta_lanes).astype(jnp.bfloat16)                  # (N, M*D)
    o_ref[...] = jnp.dot(weighted, sel_ref[...],
                         preferred_element_type=jnp.float32).astype(o_ref.dtype)


# ---------------------------------------------------------------------------
# Parameter-block construction (tiny; build once per weight set)
# ---------------------------------------------------------------------------
def _build_param_blocks(w1, b1, w2, M):
    D, H = w1.shape
    f32 = jnp.float32
    eye_m = jnp.eye(M, dtype=f32)
    w1b = jnp.einsum('mM,dh->mdMh', eye_m, w1.astype(f32)).reshape(M * D, M * H)
    b1b = jnp.tile(b1.reshape(1, H).astype(f32), (1, M))
    w2b = jnp.einsum('mM,h->mhM', eye_m,
                     w2.reshape(H).astype(f32)).reshape(M * H, M)
    return w1b, b1b, w2b


def _build_fold_constants(M, D):
    f32 = jnp.float32
    expand = jnp.einsum('mM,d->mMd', jnp.eye(M, dtype=f32),
                        jnp.ones((D,), f32)).reshape(M, M * D)   # E[m, m*D+d]=1
    sel = jnp.tile(jnp.eye(D, dtype=f32), (M, 1))                # (M*D, D)
    return expand, sel


# ---------------------------------------------------------------------------
# Wrapper
# ---------------------------------------------------------------------------
def semantic_attention(z, w1, b1, w2, *, target_block_rows=2048,
                       small_path_bytes=10 * 1024 * 1024):
    """z: (N, M, D); w1: (D, H) = Linear1.weight.T; b1: (1, H); w2: (1, H)."""
    N, M, D = z.shape
    H = w1.shape[1]
    f32 = jnp.float32
    bf16 = jnp.bfloat16

    fused_ok = (M * D <= 1024) and (M * H <= 1024)

    cparams = pltpu.CompilerParams(
        dimension_semantics=("parallel",),
        vmem_limit_bytes=32 * 1024 * 1024)

    # ---- small-N fast path: one pallas_call, z resident, no second HBM read --
    if fused_ok:
        resident = N * M * D * 6 + N * M * H * 4 + N * D * 4  # z(f32+bf16)+h+out
        if resident <= small_path_bytes:
            w1b, b1b, w2b = _build_param_blocks(w1, b1, w2, M)
            expand, sel = _build_fold_constants(M, D)
            z2 = z.reshape(N, M * D)                           # free reshape
            kern = functools.partial(_fused_small_kernel, n_valid=float(N))
            return pl.pallas_call(
                kern,
                out_shape=jax.ShapeDtypeStruct((N, D), z.dtype),
                compiler_params=pltpu.CompilerParams(
                    vmem_limit_bytes=32 * 1024 * 1024),
            )(z2, w1b.astype(bf16), b1b, w2b, expand, sel.astype(bf16))

    # ---- fold factor so pass-2 loads AND stores are lane dense ---------------
    k = 128 // D if (D < 128 and 128 % D == 0) else 1
    k = max(1, min(k, max(1, 512 // (M * D))))   # cap wasted FLOPs in the fold
    unit = 8 * k                                 # tn must be a multiple of this

    # ---- N tile: big enough for HBM roofline, capped by VMEM & megacore ------
    # per-row VMEM bytes in pass 1: double-buffered f32 z block + bf16 copy + h
    row_bytes = M * D * 4 * 2 + M * D * 2 + M * H * 4
    cap_rows = max(unit, (8 * 1024 * 1024 // max(row_bytes, 1)) // unit * unit)
    tn = max(unit, (min(target_block_rows, cap_rows) // unit) * unit)
    if N >= 4 * unit:                            # keep >=4 grid steps (v7x 2 TC)
        tn = min(tn, max(unit, (N // 4) // unit * unit))

    # ---- avoid a padded copy of z when a decent divisor of N exists ----------
    if N % tn != 0 and N % unit == 0:
        best, t = unit, unit
        while t <= min(N, tn):
            if N % t == 0:
                best = t
            t += unit
        if best * 8 >= tn:                       # close enough to the target
            tn = best
    if N % tn != 0:
        n_pad = (-N) % tn
        z_p = jnp.pad(z, ((0, n_pad), (0, 0), (0, 0)))
        Np = N + n_pad
    else:
        n_pad, z_p, Np = 0, z, N

    # ---- pass 1: per-metapath logit means (f32 accumulation) -----------------
    if fused_ok:
        w1b, b1b, w2b = _build_param_blocks(w1, b1, w2, M)
        grid1 = (Np // tn,)
        z2 = z_p.reshape(Np, M * D)              # free reshape, contiguous rows
        partials = pl.pallas_call(
            _logits_partial_kernel,
            out_shape=jax.ShapeDtypeStruct((grid1[0], 1, M), f32),
            grid=grid1,
            in_specs=[
                pl.BlockSpec((tn, M * D), lambda i: (i, 0)),
                pl.BlockSpec((M * D, M * H), lambda i: (0, 0)),
                pl.BlockSpec((1, M * H), lambda i: (0, 0)),
                pl.BlockSpec((M * H, M), lambda i: (0, 0)),
            ],
            out_specs=pl.BlockSpec((1, 1, M), lambda i: (i, 0, 0)),
            compiler_params=cparams,
        )(z2, w1b.astype(bf16), b1b, w2b)
        total = partials[:, 0, :].sum(axis=0)                        # (M,)
        # zero pad rows all contribute w2.tanh(b1) equally -> subtract exactly
        s_pad = jnp.dot(jnp.tanh(b1.reshape(-1).astype(f32)),
                        w2.reshape(-1).astype(f32))
        wbar = (total - n_pad * s_pad) / N
    else:
        # TODO(synk): block-diag fusion capped at M*D, M*H <= 1024; for larger
        # metapath counts the projection/logits run in plain JAX (XLA matmuls).
        proj = jnp.tanh(jnp.einsum('nmd,dh->nmh', z, w1.astype(f32))
                        + b1.reshape(1, 1, H).astype(f32))
        wbar = jnp.einsum('nmh,h->nm', proj,
                          w2.reshape(H).astype(f32)).mean(axis=0)

    beta = jax.nn.softmax(wbar)                                      # (M,)

    # ---- pass 2: beta-weighted metapath sum, folded lane-dense ---------------
    # s_fold[j*M*D + m*D + d, j'*D + d'] = beta[m] * (j==j') * (d==d')
    s_fold = jnp.einsum('jJ,m,dD->jmdJD',
                        jnp.eye(k, dtype=f32), beta.astype(f32),
                        jnp.eye(D, dtype=f32)).reshape(k * M * D, k * D)
    nr, tnr = Np // k, tn // k
    z3 = z_p.reshape(nr, k * M * D)              # free reshape, contiguous rows
    out_folded = pl.pallas_call(
        _weighted_sum_kernel,
        out_shape=jax.ShapeDtypeStruct((nr, k * D), z.dtype),
        grid=(nr // tnr,),
        in_specs=[
            pl.BlockSpec((tnr, k * M * D), lambda i: (i, 0)),
            pl.BlockSpec((k * M * D, k * D), lambda i: (0, 0)),
        ],
        out_specs=pl.BlockSpec((tnr, k * D), lambda i: (i, 0)),
        compiler_params=cparams,
    )(z3, s_fold.astype(bf16))
    out = out_folded.reshape(Np, D)
    if n_pad:
        out = out[:N]
    return out


# ---------------------------------------------------------------------------
# Pure-JAX mirror of the PyTorch module for validation
# ---------------------------------------------------------------------------
def _reference(z, w1, b1, w2):
    proj = jnp.tanh(jnp.einsum('nmd,dh->nmh', z, w1) + b1)     # (N, M, H)
    scores = jnp.einsum('nmh,h->nm', proj, w2.reshape(-1))     # (N, M)
    beta = jax.nn.softmax(scores.mean(axis=0), axis=0)         # (M,)
    return jnp.sum(beta[None, :, None] * z, axis=1)            # (N, D)


if __name__ == "__main__":
    # N nodes, M metapaths, in_size D, hidden H.
    N, M, D, H = 2048, 4, 32, 32

    key = jax.random.PRNGKey(0)
    kz, k1, k2, k3 = jax.random.split(key, 4)
    z = jax.random.normal(kz, (N, M, D), dtype=jnp.float32)

    lim1 = 1.0 / (D ** 0.5)
    w1 = jax.random.uniform(k1, (D, H), jnp.float32, -lim1, lim1)  # Linear1.weight.T
    b1 = jax.random.uniform(k2, (1, H), jnp.float32, -lim1, lim1)  # Linear1.bias
    lim2 = 1.0 / (H ** 0.5)
    w2 = jax.random.uniform(k3, (1, H), jnp.float32, -lim2, lim2)  # Linear2.weight

    ref = jax.block_until_ready(_reference(z, w1, b1, w2))

    # 1) small-N fused single-kernel path (default for this size).
    out_small = jax.block_until_ready(jax.jit(semantic_attention)(z, w1, b1, w2))
    assert out_small.shape == (N, D), out_small.shape
    err = float(jnp.max(jnp.abs(out_small - ref)))
    assert jnp.allclose(out_small, ref, atol=2e-2, rtol=2e-2), err

    # 2) large-N two-pass tiled path (force it by disabling the resident path).
    two_pass = jax.jit(functools.partial(semantic_attention, small_path_bytes=0))
    out_two = jax.block_until_ready(two_pass(z, w1, b1, w2))
    err = float(jnp.max(jnp.abs(out_two - ref)))
    assert jnp.allclose(out_two, ref, atol=2e-2, rtol=2e-2), err

    # 3) unaligned N exercises the pad-and-correct tail handling.
    z_u = z[:1000]
    ref_u = _reference(z_u, w1, b1, w2)
    out_u = jax.block_until_ready(two_pass(z_u, w1, b1, w2))
    err = float(jnp.max(jnp.abs(out_u - ref_u)))
    assert jnp.allclose(out_u, ref_u, atol=2e-2, rtol=2e-2), err

    print("KERNEL_OK")
</pallas_src>

<mosaic_0001>
module attributes {stable_mosaic.version = 11 : i64} {
  func.func @_fused_small_kernel(%arg0: memref<2048x128xf32, #tpu.memory_space<vmem>>, %arg1: memref<128x128xbf16, #tpu.memory_space<vmem>>, %arg2: memref<1x128xf32, #tpu.memory_space<vmem>>, %arg3: memref<128x4xf32, #tpu.memory_space<vmem>>, %arg4: memref<4x128xf32, #tpu.memory_space<vmem>>, %arg5: memref<128x32xbf16, #tpu.memory_space<vmem>>, %arg6: memref<2048x32xf32, #tpu.memory_space<vmem>>) attributes {dimension_semantics = [], scalar_prefetch = 0 : i64, scratch_operands = 0 : i64, tpu.core_type = #tpu.core_type<tc>} {
    %c0 = arith.constant 0 : index
    %c0_0 = arith.constant 0 : index
    %0 = vector.load %arg0[%c0, %c0_0] : memref<2048x128xf32, #tpu.memory_space<vmem>>, vector<2048x128xf32>
    %1 = arith.truncf %0 : vector<2048x128xf32> to vector<2048x128xbf16>
    %c0_1 = arith.constant 0 : index
    %c0_2 = arith.constant 0 : index
    %2 = vector.load %arg1[%c0_1, %c0_2] : memref<128x128xbf16, #tpu.memory_space<vmem>>, vector<128x128xbf16>
    %cst = arith.constant dense<0.000000e+00> : vector<2048x128xf32>
    %3 = tpu.matmul %1, %2, %cst {dimension_numbers = #tpu.dot_dimension_numbers<[1], [0], [0], [1], [0, 0, 1, 1], [], []>} : vector<2048x128xbf16>, vector<128x128xbf16>, vector<2048x128xf32> -> vector<2048x128xf32>
    %c0_3 = arith.constant 0 : index
    %c0_4 = arith.constant 0 : index
    %4 = vector.load %arg2[%c0_3, %c0_4] : memref<1x128xf32, #tpu.memory_space<vmem>>, vector<1x128xf32>
    %5 = vector.broadcast %4 : vector<1x128xf32> to vector<2048x128xf32>
    %6 = arith.addf %3, %5 : vector<2048x128xf32>
    %7 = math.tanh %6 : vector<2048x128xf32>
    %cst_5 = arith.constant dense<0.000000e+00> : vector<128xf32>
    %8 = vector.multi_reduction <add>, %7, %cst_5 [0] : vector<2048x128xf32> to vector<128xf32>
    %9 = vector.shape_cast %8 : vector<128xf32> to vector<1x128xf32>
    %c0_6 = arith.constant 0 : index
    %c0_7 = arith.constant 0 : index
    %10 = vector.load %arg3[%c0_6, %c0_7] : memref<128x4xf32, #tpu.memory_space<vmem>>, vector<128x4xf32>
    %cst_8 = arith.constant dense<0.000000e+00> : vector<1x4xf32>
    %11 = tpu.matmul %9, %10, %cst_8 {dimension_numbers = #tpu.dot_dimension_numbers<[1], [0], [0], [1], [0, 0, 1, 1], [], []>} : vector<1x128xf32>, vector<128x4xf32>, vector<1x4xf32> -> vector<1x4xf32>
    %cst_9 = arith.constant 4.8828125E-4 : f32
    %12 = vector.broadcast %cst_9 : f32 to vector<1x4xf32>
    %13 = arith.mulf %11, %12 : vector<1x4xf32>
    %cst_10 = arith.constant dense<0xFF800000> : vector<1xf32>
    %14 = vector.multi_reduction <maximumf>, %13, %cst_10 [1] : vector<1x4xf32> to vector<1xf32>
    %15 = vector.shape_cast %14 : vector<1xf32> to vector<1x1xf32>
    %16 = vector.broadcast %15 : vector<1x1xf32> to vector<1x4xf32>
    %17 = arith.subf %13, %16 : vector<1x4xf32>
    %18 = math.exp %17 : vector<1x4xf32>
    %cst_11 = arith.constant dense<0.000000e+00> : vector<1xf32>
    %19 = vector.multi_reduction <add>, %18, %cst_11 [1] : vector<1x4xf32> to vector<1xf32>
    %20 = vector.shape_cast %19 : vector<1xf32> to vector<1x1xf32>
    %21 = vector.broadcast %20 : vector<1x1xf32> to vector<1x4xf32>
    %22 = arith.divf %18, %21 : vector<1x4xf32>
    %c0_12 = arith.constant 0 : index
    %c0_13 = arith.constant 0 : index
    %23 = vector.load %arg4[%c0_12, %c0_13] : memref<4x128xf32, #tpu.memory_space<vmem>>, vector<4x128xf32>
    %cst_14 = arith.constant dense<0.000000e+00> : vector<1x128xf32>
    %24 = tpu.matmul %22, %23, %cst_14 {dimension_numbers = #tpu.dot_dimension_numbers<[1], [0], [0], [1], [0, 0, 1, 1], [], []>} : vector<1x4xf32>, vector<4x128xf32>, vector<1x128xf32> -> vector<1x128xf32>
    %25 = vector.broadcast %24 : vector<1x128xf32> to vector<2048x128xf32>
    %26 = arith.mulf %0, %25 : vector<2048x128xf32>
    %27 = arith.truncf %26 : vector<2048x128xf32> to vector<2048x128xbf16>
    %c0_15 = arith.constant 0 : index
    %c0_16 = arith.constant 0 : index
    %28 = vector.load %arg5[%c0_15, %c0_16] : memref<128x32xbf16, #tpu.memory_space<vmem>>, vector<128x32xbf16>
    %cst_17 = arith.constant dense<0.000000e+00> : vector<2048x32xf32>
    %29 = tpu.matmul %27, %28, %cst_17 {dimension_numbers = #tpu.dot_dimension_numbers<[1], [0], [0], [1], [0, 0, 1, 1], [], []>} : vector<2048x128xbf16>, vector<128x32xbf16>, vector<2048x32xf32> -> vector<2048x32xf32>
    %c0_18 = arith.constant 0 : index
    %c0_19 = arith.constant 0 : index
    %30 = vector.load %arg6[%c0_18, %c0_19] : memref<2048x32xf32, #tpu.memory_space<vmem>>, vector<2048x32xf32>
    tpu.vector_store %arg6[%c0_18, %c0_19], %29 {strides = array<i32>} : memref<2048x32xf32, #tpu.memory_space<vmem>>, vector<2048x32xf32>,
    return
  }
}

</mosaic_0001>

<bundles_post_ra>
// kernel: semantic_attention.1
= control target key start
LH: loop header
LB: loop body
LE: loop exit
PB: predicated region body
PF: predicated region fallthrough
CT: control target
= control target key end

     0   :  { %vm1708_vm0 = vcmask 1043456   ;;  %vm1678_vm1 = vcmask 24576   ;;  %vm1704_vm6 = vcmask 31744   ;;  %vm2830_vm7 = vcmask 261120   ;;  %s7562_s1 = inlined_call_operand.vmem [shape: bf16[128,128], index: 1, kind: input, shape index: {}]   ;;  %s7563_s2 = inlined_call_operand.vmem [shape: f32[1,128], index: 2, kind: input, shape index: {}]   ;;  %s7564_s0 = inlined_call_operand.vmem [shape: f32[2048,128], index: 0, kind: input, shape index: {}]   ;;  %s7565_s4 = inlined_call_operand.vmem [shape: f32[4,128], index: 4, kind: input, shape index: {}]   ;;  %s7566_s3 = inlined_call_operand.vmem [shape: f32[128,4], index: 3, kind: input, shape index: {}]   ;;  %s7567_s5 = inlined_call_operand.vmem [shape: bf16[128,32], index: 5, kind: input, shape index: {}]   ;;  %s7568_s6 = inlined_call_operand.vmem [shape: f32[2048,32], index: 6, kind: output, shape index: {}]  }
   0x1   :  { %v3164_v0 = vld [vmem:[%s7562_s1 + $0x38] sm:$0xff]  ;;  %v3163_v1 = vld [vmem:[%s7562_s1 + $0x30] sm:$0xff]  ;;  %v3162_v2 = vld [vmem:[%s7562_s1 + $0x28] sm:$0xff] }
   0x2   :  { %475 = vmatpush.bf16.msra.mxu0 %v3164_v0  ;;  %3173 = vmatpush.bf16.msra.mxu2 %v3164_v0  ;;  %v3161_v3 = vld [vmem:[%s7562_s1 + $0x20] sm:$0xff]  ;;  %v3160_v4 = vld [vmem:[%s7562_s1 + $0x18] sm:$0xff]  ;;  %v3159_v5 = vld [vmem:[%s7562_s1 + $0x10] sm:$0xff] }
   0x3   :  { %v3158_v6 = vld [vmem:[%s7562_s1 + $0x8] sm:$0xff]  ;;  %v3157_v7 = vld [vmem:[%s7562_s1] sm:$0xff]  ;;  %v25_v11 = vld [vmem:[%s7564_s0 + $0x10] sm:$0xff] }
   0x4   :  { %v23_v8 = vld [vmem:[%s7564_s0] sm:$0xff]  ;;  %v24_v9 = vld [vmem:[%s7564_s0 + $0x8] sm:$0xff]  ;;  %v26_v12 = vld [vmem:[%s7564_s0 + $0x18] sm:$0xff] }
   0x5   :  { %v279_v10 = vpack.c.bf16 %v24_v9, %v23_v8  ;;  %v280_v13 = vpack.c.bf16 %v26_v12, %v25_v11  ;;  %v27_v14 = vld [vmem:[%s7564_s0 + $0x20] sm:$0xff]  ;;  %v28_v15 = vld [vmem:[%s7564_s0 + $0x28] sm:$0xff]  ;;  %v29_v17 = vld [vmem:[%s7564_s0 + $0x30] sm:$0xff] }
   0x6   :  { %476 = vmatpush.bf16.msra.mxu0 %v3163_v1  ;;  %3174 = vmatpush.bf16.msra.mxu2 %v3163_v1  ;;  %v281_v16 = vpack.c.bf16 %v28_v15, %v27_v14  ;;  %v30_v18 = vld [vmem:[%s7564_s0 + $0x38] sm:$0xff]  ;;  %v31_v20 = vld [vmem:[%s7564_s0 + $0x40] sm:$0xff]  ;;  %v32_v21 = vld [vmem:[%s7564_s0 + $0x48] sm:$0xff] }
   0x7   :  { %v282_v19 = vpack.c.bf16 %v30_v18, %v29_v17  ;;  %v283_v22 = vpack.c.bf16 %v32_v21, %v31_v20  ;;  %v33_v23 = vld [vmem:[%s7564_s0 + $0x50] sm:$0xff]  ;;  %v34_v24 = vld [vmem:[%s7564_s0 + $0x58] sm:$0xff]  ;;  %v35_v26 = vld [vmem:[%s7564_s0 + $0x60] sm:$0xff] }
   0x8   :  { %v284_v25 = vpack.c.bf16 %v34_v24, %v33_v23  ;;  %v36_v27 = vld [vmem:[%s7564_s0 + $0x68] sm:$0xff]  ;;  %v37_v29 = vld [vmem:[%s7564_s0 + $0x70] sm:$0xff]  ;;  %v38_v30 = vld [vmem:[%s7564_s0 + $0x78] sm:$0xff] }
   0x9   :  { %v285_v28 = vpack.c.bf16 %v36_v27, %v35_v26  ;;  %v286_v31 = vpack.c.bf16 %v38_v30, %v37_v29  ;;  %v39_v32 = vld [vmem:[%s7564_s0 + $0x80] sm:$0xff]  ;;  %v40_v33 = vld [vmem:[%s7564_s0 + $0x88] sm:$0xff]  ;;  %v41_v40 = vld [vmem:[%s7564_s0 + $0x90] sm:$0xff] }
   0xa   :  { %477 = vmatpush.bf16.msra.mxu0 %v3162_v2  ;;  %3175 = vmatpush.bf16.msra.mxu2 %v3162_v2  ;;  %v287_v34 = vpack.c.bf16 %v40_v33, %v39_v32  ;;  %v4081_v36 = vld [vmem:[%s7563_s2] ss:$0 sm:$0xff]  ;;  %v42_v41 = vld [vmem:[%s7564_s0 + $0x98] sm:$0xff]  ;;  %v44_v53 = vld [vmem:[%s7564_s0 + $0xa8] sm:$0xff] }
   0xb   :  { %v288_v42 = vpack.c.bf16 %v42_v41, %v41_v40  ;;  %v43_v52 = vld [vmem:[%s7564_s0 + $0xa0] sm:$0xff]  ;;  %v45_v63 = vld [vmem:[%s7564_s0 + $0xb0] sm:$0xff]  ;;  %v46_v0 = vld [vmem:[%s7564_s0 + $0xb8] sm:$0xff] }
   0xc   :  { %v289_v54 = vpack.c.bf16 %v44_v53, %v43_v52  ;;  %v290_v1 = vpack.c.bf16 %v46_v0, %v45_v63  ;;  %v48_v11 = vld [vmem:[%s7564_s0 + $0xc8] sm:$0xff]  ;;  %v49_v21 = vld [vmem:[%s7564_s0 + $0xd0] sm:$0xff]  ;;  %v51_v32 = vld [vmem:[%s7564_s0 + $0xe0] sm:$0xff] }
   0xd   :  { %v52_v33 = vld [vmem:[%s7564_s0 + $0xe8] sm:$0xff] }
   0xe   :  { %478 = vmatpush.bf16.msra.mxu0 %v3161_v3  ;;  %3176 = vmatpush.bf16.msra.mxu2 %v3161_v3 }
  0x12   :  { %479 = vmatpush.bf16.msra.mxu0 %v3160_v4  ;;  %3177 = vmatpush.bf16.msra.mxu2 %v3160_v4 }
  0x16   :  { %480 = vmatpush.bf16.msra.mxu0 %v3159_v5  ;;  %3178 = vmatpush.bf16.msra.mxu2 %v3159_v5 }
  0x1a   :  { %481 = vmatpush.bf16.msra.mxu0 %v3158_v6  ;;  %3179 = vmatpush.bf16.msra.mxu2 %v3158_v6 }
  0x1e   :  { %482 = vmatpush.bf16.msra.mxu0 %v3157_v7  ;;  %3180 = vmatpush.bf16.msra.mxu2 %v3157_v7 }
  0x21   :  { %483 = vmatmul.bf16.vlgmr.msra.gmra.mxu0 %v279_v10  ;;  %v47_v10 = vld [vmem:[%s7564_s0 + $0xc0] sm:$0xff] }
  0x22   :  { %v291_v12 = vpack.c.bf16 %v48_v11, %v47_v10  ;;  %v157_v10 = vld [vmem:[%s7564_s0 + $0x430] sm:$0xff]  ;;  %v158_v11 = vld [vmem:[%s7564_s0 + $0x438] sm:$0xff] }
  0x31   :  { %488 = vmatmul.bf16.gmra.mxu0 %v280_v13 }
  0x41   :  { %493 = vmatmul.bf16.gmra.mxu0 %v281_v16 }
  0x51   :  { %498 = vmatmul.bf16.gmra.mxu0 %v282_v19 }
  0x61   :  { %503 = vmatmul.bf16.gmra.mxu0 %v283_v22  ;;  %v50_v22 = vld [vmem:[%s7564_s0 + $0xd8] sm:$0xff] }
  0x62   :  { %v292_v23 = vpack.c.bf16 %v50_v22, %v49_v21  ;;  %v59_v22 = vld [vmem:[%s7564_s0 + $0x120] sm:$0xff] }
  0x71   :  { %508 = vmatmul.bf16.gmra.mxu0 %v284_v25 }
  0x81   :  { %513 = vmatmul.bf16.gmra.mxu0 %v285_v28 }
  0x91   :  { %518 = vmatmul.bf16.gmra.mxu0 %v286_v31 }
  0x9e   :  { %v484_v35 = vpop.f32.mrf.mxu0 }
  0x9f   :  { %v485_v37 = vadd.f32 %v4081_v36, %v484_v35 }
  0xa1   :  { %523 = vmatmul.bf16.gmra.mxu0 %v287_v34  ;;  %3190 = vtanh.f32 %v485_v37  ;;  %v293_v34 = vpack.c.bf16 %v52_v33, %v51_v32 }
  0xa6   :  { %v486_v38 = vpop.f32.mrf.mxu0 }
  0xa7   :  { %v487_v39 = vadd.f32 %v4081_v36, %v486_v38  ;;  %v3191_v43 = vpop.eup %3190 }
  0xa9   :  { %3192 = vtanh.f32 %v487_v39 }
  0xae   :  { %v489_v44 = vpop.f32.mrf.mxu0 }
  0xaf   :  { %v3193_v45 = vpop.eup %3192  ;;  %v490_v46 = vadd.f32 %v4081_v36, %v489_v44  ;;  %v53_v44 = vld [vmem:[%s7564_s0 + $0xf0] sm:$0xff] }
  0xb0   :  { %v1380_v47 = vadd.f32 %v3193_v45, %v3191_v43  ;;  %v54_v45 = vld [vmem:[%s7564_s0 + $0xf8] sm:$0xff] }
  0xb1   :  { %3194 = vtanh.f32 %v490_v46  ;;  %528 = vmatmul.bf16.gmra.mxu0 %v288_v42  ;;  %v153_v46 = vld [vmem:[%s7564_s0 + $0x410] sm:$0xff] }
  0xb6   :  { %v491_v48 = vpop.f32.mrf.mxu0 }
  0xb7   :  { %v3195_v49 = vpop.eup %3194  ;;  %v492_v50 = vadd.f32 %v4081_v36, %v491_v48  ;;  %v294_v48 = vpack.c.bf16 %v54_v45, %v53_v44 }
  0xb8   :  { %v1381_v51 = vadd.f32 %v3195_v49, %v1380_v47  ;;  %v154_v47 = vld [vmem:[%s7564_s0 + $0x418] sm:$0xff] }
  0xb9   :  { %3196 = vtanh.f32 %v492_v50  ;;  %v344_v49 = vpack.c.bf16 %v154_v47, %v153_v46 }
  0xbb   :  { %808 = vmatmul.bf16.vlgmr.msra.gmra.mxu2 %v344_v49 }
  0xbe   :  { %v494_v55 = vpop.f32.mrf.mxu0 }
  0xbf   :  { %v3197_v56 = vpop.eup %3196  ;;  %v495_v57 = vadd.f32 %v4081_v36, %v494_v55 }
  0xc0   :  { %v1382_v58 = vadd.f32 %v3197_v56, %v1381_v51 }
  0xc1   :  { %3198 = vtanh.f32 %v495_v57  ;;  %533 = vmatmul.bf16.gmra.mxu0 %v289_v54 }
  0xc6   :  { %v496_v59 = vpop.f32.mrf.mxu0 }
  0xc7   :  { %v3199_v60 = vpop.eup %3198  ;;  %v497_v61 = vadd.f32 %v4081_v36, %v496_v59  ;;  %v56_v59 = vld [vmem:[%s7564_s0 + $0x108] sm:$0xff] }
  0xc8   :  { %v1383_v62 = vadd.f32 %v3199_v60, %v1382_v58  ;;  %v55_v58 = vld [vmem:[%s7564_s0 + $0x100] sm:$0xff] }
  0xc9   :  { %3200 = vtanh.f32 %v497_v61  ;;  %v155_v60 = vld [vmem:[%s7564_s0 + $0x420] sm:$0xff]  ;;  %v156_v61 = vld [vmem:[%s7564_s0 + $0x428] sm:$0xff] }
  0xca   :  { %v345_v63 = vpack.c.bf16 %v156_v61, %v155_v60 }
  0xcc   :  { %813 = vmatmul.bf16.gmra.mxu2 %v345_v63 }
  0xce   :  { %v499_v2 = vpop.f32.mrf.mxu0 }
  0xcf   :  { %v3201_v3 = vpop.eup %3200  ;;  %v500_v4 = vadd.f32 %v4081_v36, %v499_v2 }
  0xd0   :  { %v1384_v5 = vadd.f32 %v3201_v3, %v1383_v62  ;;  %v295_v62 = vpack.c.bf16 %v56_v59, %v55_v58 }
  0xd1   :  { %3202 = vtanh.f32 %v500_v4  ;;  %538 = vmatmul.bf16.gmra.mxu0 %v290_v1 }
  0xd6   :  { %v501_v6 = vpop.f32.mrf.mxu0 }
  0xd7   :  { %v3203_v7 = vpop.eup %3202  ;;  %v502_v8 = vadd.f32 %v4081_v36, %v501_v6 }
  0xd8   :  { %v1385_v9 = vadd.f32 %v3203_v7, %v1384_v5 }
  0xd9   :  { %3204 = vtanh.f32 %v502_v8  ;;  %v57_v8 = vld [vmem:[%s7564_s0 + $0x110] sm:$0xff] }
  0xde   :  { %v504_v13 = vpop.f32.mrf.mxu0 }
  0xdf   :  { %v3205_v14 = vpop.eup %3204  ;;  %v505_v15 = vadd.f32 %v4081_v36, %v504_v13  ;;  %v346_v13 = vpack.c.bf16 %v158_v11, %v157_v10 }
  0xe0   :  { %v1386_v16 = vadd.f32 %v3205_v14, %v1385_v9  ;;  %v58_v9 = vld [vmem:[%s7564_s0 + $0x118] sm:$0xff] }
  0xe1   :  { %3206 = vtanh.f32 %v505_v15  ;;  %543 = vmatmul.bf16.gmra.mxu0 %v291_v12  ;;  %v296_v12 = vpack.c.bf16 %v58_v9, %v57_v8  ;;  %818 = vmatmul.bf16.gmra.mxu2 %v346_v13 }
  0xe6   :  { %v506_v17 = vpop.f32.mrf.mxu0 }
  0xe7   :  { %v3207_v18 = vpop.eup %3206  ;;  %v507_v19 = vadd.f32 %v4081_v36, %v506_v17 }
  0xe8   :  { %v1387_v20 = vadd.f32 %v3207_v18, %v1386_v16 }
  0xe9   :  { %3208 = vtanh.f32 %v507_v19 }
  0xee   :  { %v509_v24 = vpop.f32.mrf.mxu0 }
  0xef   :  { %v3209_v25 = vpop.eup %3208  ;;  %v510_v26 = vadd.f32 %v4081_v36, %v509_v24  ;;  %v159_v24 = vld [vmem:[%s7564_s0 + $0x440] sm:$0xff] }
  0xf0   :  { %v1388_v27 = vadd.f32 %v3209_v25, %v1387_v20  ;;  %v160_v25 = vld [vmem:[%s7564_s0 + $0x448] sm:$0xff] }
  0xf1   :  { %3210 = vtanh.f32 %v510_v26  ;;  %548 = vmatmul.bf16.gmra.mxu0 %v292_v23  ;;  %v60_v23 = vld [vmem:[%s7564_s0 + $0x128] sm:$0xff] }
  0xf2   :  { %v297_v26 = vpack.c.bf16 %v60_v23, %v59_v22 }
  0xf6   :  { %v511_v28 = vpop.f32.mrf.mxu0 }
  0xf7   :  { %v3211_v29 = vpop.eup %3210  ;;  %v512_v30 = vadd.f32 %v4081_v36, %v511_v28 }
  0xf8   :  { %v1389_v31 = vadd.f32 %v3211_v29, %v1388_v27  ;;  %v347_v27 = vpack.c.bf16 %v160_v25, %v159_v24 }
  0xf9   :  { %3212 = vtanh.f32 %v512_v30 }
  0xfa   :  { %823 = vmatmul.bf16.gmra.mxu2 %v347_v27 }
  0xfe   :  { %v514_v35 = vpop.f32.mrf.mxu0 }
  0xff   :  { %v3213_v37 = vpop.eup %3212  ;;  %v515_v38 = vadd.f32 %v4081_v36, %v514_v35 }
 0x100   :  { %v1390_v39 = vadd.f32 %v3213_v37, %v1389_v31  ;;  %v61_v37 = vld [vmem:[%s7564_s0 + $0x130] sm:$0xff] }
 0x101   :  { %3214 = vtanh.f32 %v515_v38  ;;  %553 = vmatmul.bf16.gmra.mxu0 %v293_v34  ;;  %v62_v38 = vld [vmem:[%s7564_s0 + $0x138] sm:$0xff] }
 0x106   :  { %v516_v40 = vpop.f32.mrf.mxu0 }
 0x107   :  { %v3215_v41 = vpop.eup %3214  ;;  %v517_v42 = vadd.f32 %v4081_v36, %v516_v40  ;;  %v162_v40 = vld [vmem:[%s7564_s0 + $0x458] sm:$0xff] }
 0x108   :  { %v1391_v43 = vadd.f32 %v3215_v41, %v1390_v39  ;;  %v161_v39 = vld [vmem:[%s7564_s0 + $0x450] sm:$0xff]  ;;  %v298_v41 = vpack.c.bf16 %v62_v38, %v61_v37 }
 0x109   :  { %3216 = vtanh.f32 %v517_v42  ;;  %v348_v42 = vpack.c.bf16 %v162_v40, %v161_v39 }
 0x10b   :  { %828 = vmatmul.bf16.gmra.mxu2 %v348_v42 }
 0x10e   :  { %v519_v50 = vpop.f32.mrf.mxu0 }
 0x10f   :  { %v3217_v51 = vpop.eup %3216  ;;  %v520_v52 = vadd.f32 %v4081_v36, %v519_v50 }
 0x110   :  { %v1392_v53 = vadd.f32 %v3217_v51, %v1391_v43  ;;  %v63_v51 = vld [vmem:[%s7564_s0 + $0x140] sm:$0xff] }
 0x111   :  { %3218 = vtanh.f32 %v520_v52  ;;  %558 = vmatmul.bf16.gmra.mxu0 %v294_v48  ;;  %v64_v52 = vld [vmem:[%s7564_s0 + $0x148] sm:$0xff] }
 0x116   :  { %v521_v54 = vpop.f32.mrf.mxu0 }
 0x117   :  { %v3219_v55 = vpop.eup %3218  ;;  %v522_v56 = vadd.f32 %v4081_v36, %v521_v54  ;;  %v164_v54 = vld [vmem:[%s7564_s0 + $0x468] sm:$0xff] }
 0x118   :  { %v1393_v57 = vadd.f32 %v3219_v55, %v1392_v53  ;;  %v163_v53 = vld [vmem:[%s7564_s0 + $0x460] sm:$0xff]  ;;  %v299_v55 = vpack.c.bf16 %v64_v52, %v63_v51 }
 0x119   :  { %3220 = vtanh.f32 %v522_v56  ;;  %v349_v56 = vpack.c.bf16 %v164_v54, %v163_v53 }
 0x11b   :  { %833 = vmatmul.bf16.gmra.mxu2 %v349_v56 }
 0x11e   :  { %v524_v0 = vpop.f32.mrf.mxu0 }
 0x11f   :  { %v3221_v1 = vpop.eup %3220  ;;  %v525_v2 = vadd.f32 %v4081_v36, %v524_v0 }
 0x120   :  { %v1394_v3 = vadd.f32 %v3221_v1, %v1393_v57  ;;  %v65_v1 = vld [vmem:[%s7564_s0 + $0x150] sm:$0xff] }
 0x121   :  { %3222 = vtanh.f32 %v525_v2  ;;  %563 = vmatmul.bf16.gmra.mxu0 %v295_v62  ;;  %v66_v2 = vld [vmem:[%s7564_s0 + $0x158] sm:$0xff] }
 0x126   :  { %v526_v4 = vpop.f32.mrf.mxu0 }
 0x127   :  { %v3223_v5 = vpop.eup %3222  ;;  %v527_v6 = vadd.f32 %v4081_v36, %v526_v4  ;;  %v166_v4 = vld [vmem:[%s7564_s0 + $0x478] sm:$0xff] }
 0x128   :  { %v1395_v7 = vadd.f32 %v3223_v5, %v1394_v3  ;;  %v165_v3 = vld [vmem:[%s7564_s0 + $0x470] sm:$0xff]  ;;  %v300_v5 = vpack.c.bf16 %v66_v2, %v65_v1  ;;  %v174_v1 = vld [vmem:[%s7564_s0 + $0x4b8] sm:$0xff] }
 0x129   :  { %3224 = vtanh.f32 %v527_v6  ;;  %v350_v6 = vpack.c.bf16 %v166_v4, %v165_v3 }
 0x12b   :  { %838 = vmatmul.bf16.gmra.mxu2 %v350_v6 }
 0x12e   :  { %v529_v14 = vpop.f32.mrf.mxu0 }
 0x12f   :  { %v3225_v15 = vpop.eup %3224  ;;  %v530_v16 = vadd.f32 %v4081_v36, %v529_v14 }
 0x130   :  { %v1396_v17 = vadd.f32 %v3225_v15, %v1395_v7  ;;  %v67_v15 = vld [vmem:[%s7564_s0 + $0x160] sm:$0xff] }
 0x131   :  { %3226 = vtanh.f32 %v530_v16  ;;  %568 = vmatmul.bf16.gmra.mxu0 %v296_v12  ;;  %v68_v16 = vld [vmem:[%s7564_s0 + $0x168] sm:$0xff] }
 0x136   :  { %v531_v18 = vpop.f32.mrf.mxu0 }
 0x137   :  { %v3227_v19 = vpop.eup %3226  ;;  %v532_v20 = vadd.f32 %v4081_v36, %v531_v18  ;;  %v168_v18 = vld [vmem:[%s7564_s0 + $0x488] sm:$0xff] }
 0x138   :  { %v1397_v21 = vadd.f32 %v3227_v19, %v1396_v17  ;;  %v167_v17 = vld [vmem:[%s7564_s0 + $0x480] sm:$0xff]  ;;  %v301_v19 = vpack.c.bf16 %v68_v16, %v67_v15 }
 0x139   :  { %3228 = vtanh.f32 %v532_v20  ;;  %v351_v20 = vpack.c.bf16 %v168_v18, %v167_v17  ;;  %v175_v16 = vld [vmem:[%s7564_s0 + $0x4c0] sm:$0xff]  ;;  %v176_v17 = vld [vmem:[%s7564_s0 + $0x4c8] sm:$0xff] }
 0x13b   :  { %843 = vmatmul.bf16.gmra.mxu2 %v351_v20 }
 0x13e   :  { %v534_v28 = vpop.f32.mrf.mxu0  ;;  %v4258_v40 = vpop.f32.mrf.mxu2 }
 0x13f   :  { %v3229_v29 = vpop.eup %3228  ;;  %v535_v30 = vadd.f32 %v4081_v36, %v534_v28 }
 0x140   :  { %v1398_v31 = vadd.f32 %v3229_v29, %v1397_v21  ;;  %v69_v29 = vld [vmem:[%s7564_s0 + $0x170] sm:$0xff] }
 0x141   :  { %3230 = vtanh.f32 %v535_v30  ;;  %573 = vmatmul.bf16.gmra.mxu0 %v297_v26  ;;  %v70_v30 = vld [vmem:[%s7564_s0 + $0x178] sm:$0xff] }
 0x146   :  { %v536_v32 = vpop.f32.mrf.mxu0 }
 0x147   :  { %v3231_v33 = vpop.eup %3230  ;;  %v537_v34 = vadd.f32 %v4081_v36, %v536_v32  ;;  %v170_v32 = vld [vmem:[%s7564_s0 + $0x498] sm:$0xff] }
 0x148   :  { %v1399_v35 = vadd.f32 %v3231_v33, %v1398_v31  ;;  %v169_v31 = vld [vmem:[%s7564_s0 + $0x490] sm:$0xff]  ;;  %v302_v33 = vpack.c.bf16 %v70_v30, %v69_v29  ;;  %v78_v30 = vld [vmem:[%s7564_s0 + $0x1b8] sm:$0xff] }
 0x149   :  { %3232 = vtanh.f32 %v537_v34  ;;  %v352_v34 = vpack.c.bf16 %v170_v32, %v169_v31  ;;  %v77_v29 = vld [vmem:[%s7564_s0 + $0x1b0] sm:$0xff] }
 0x14a   :  { %v177_v32 = vld [vmem:[%s7564_s0 + $0x4d0] sm:$0xff] }
 0x14b   :  { %848 = vmatmul.bf16.gmra.mxu2 %v352_v34  ;;  %v306_v34 = vpack.c.bf16 %v78_v30, %v77_v29 }
 0x14e   :  { %v539_v43 = vpop.f32.mrf.mxu0 }
 0x14f   :  { %v3233_v44 = vpop.eup %3232  ;;  %v540_v45 = vadd.f32 %v4081_v36, %v539_v43 }
 0x150   :  { %v1400_v46 = vadd.f32 %v3233_v44, %v1399_v35 }
 0x151   :  { %3234 = vtanh.f32 %v540_v45  ;;  %578 = vmatmul.bf16.gmra.mxu0 %v298_v41  ;;  %v71_v45 = vld [vmem:[%s7564_s0 + $0x180] sm:$0xff] }
 0x156   :  { %v541_v47 = vpop.f32.mrf.mxu0 }
 0x157   :  { %v3235_v48 = vpop.eup %3234  ;;  %v542_v49 = vadd.f32 %v4081_v36, %v541_v47  ;;  %v4267_v47 = vpop.f32.mrf.mxu2 }
 0x158   :  { %v1401_v50 = vadd.f32 %v3235_v48, %v1400_v46  ;;  %v72_v46 = vld [vmem:[%s7564_s0 + $0x188] sm:$0xff]  ;;  %v171_v48 = vld [vmem:[%s7564_s0 + $0x4a0] sm:$0xff] }
 0x159   :  { %3236 = vtanh.f32 %v542_v49  ;;  %v172_v49 = vld [vmem:[%s7564_s0 + $0x4a8] sm:$0xff] }
 0x15a   :  { %v353_v51 = vpack.c.bf16 %v172_v49, %v171_v48  ;;  %v79_v48 = vld [vmem:[%s7564_s0 + $0x1c0] sm:$0xff]  ;;  %v80_v49 = vld [vmem:[%s7564_s0 + $0x1c8] sm:$0xff] }
 0x15c   :  { %853 = vmatmul.bf16.gmra.mxu2 %v353_v51  ;;  %v179_v51 = vld [vmem:[%s7564_s0 + $0x4e0] sm:$0xff] }
 0x15e   :  { %v544_v57 = vpop.f32.mrf.mxu0 }
 0x15f   :  { %v3237_v58 = vpop.eup %3236  ;;  %v545_v59 = vadd.f32 %v4081_v36, %v544_v57  ;;  %v4276_v56 = vpop.f32.mrf.mxu2 }
 0x160   :  { %v1402_v60 = vadd.f32 %v3237_v58, %v1401_v50  ;;  %v303_v50 = vpack.c.bf16 %v72_v46, %v71_v45 }
 0x161   :  { %3238 = vtanh.f32 %v545_v59  ;;  %583 = vmatmul.bf16.gmra.mxu0 %v299_v55 }
 0x166   :  { %v546_v61 = vpop.f32.mrf.mxu0 }
 0x167   :  { %v3239_v62 = vpop.eup %3238  ;;  %v547_v63 = vadd.f32 %v4081_v36, %v546_v61  ;;  %v73_v61 = vld [vmem:[%s7564_s0 + $0x190] sm:$0xff] }
 0x168   :  { %v1403_v0 = vadd.f32 %v3239_v62, %v1402_v60  ;;  %v74_v62 = vld [vmem:[%s7564_s0 + $0x198] sm:$0xff] }
 0x169   :  { %3240 = vtanh.f32 %v547_v63  ;;  %v4285_v63 = vpop.f32.mrf.mxu2  ;;  %v304_v2 = vpack.c.bf16 %v74_v62, %v73_v61 }
 0x16e   :  { %v549_v7 = vpop.f32.mrf.mxu0 }
 0x16f   :  { %v3241_v8 = vpop.eup %3240  ;;  %v550_v9 = vadd.f32 %v4081_v36, %v549_v7 }
 0x170   :  { %v1404_v10 = vadd.f32 %v3241_v8, %v1403_v0  ;;  %v173_v0 = vld [vmem:[%s7564_s0 + $0x4b0] sm:$0xff] }
 0x171   :  { %3242 = vtanh.f32 %v550_v9  ;;  %588 = vmatmul.bf16.gmra.mxu0 %v300_v5  ;;  %v354_v3 = vpack.c.bf16 %v174_v1, %v173_v0  ;;  %v4294_v8 = vpop.f32.mrf.mxu2 }
 0x173   :  { %858 = vmatmul.bf16.gmra.mxu2 %v354_v3  ;;  %v82_v3 = vld [vmem:[%s7564_s0 + $0x1d8] sm:$0xff] }
 0x176   :  { %v551_v11 = vpop.f32.mrf.mxu0 }
 0x177   :  { %v3243_v12 = vpop.eup %3242  ;;  %v552_v13 = vadd.f32 %v4081_v36, %v551_v11 }
 0x178   :  { %v1405_v14 = vadd.f32 %v3243_v12, %v1404_v10 }
 0x179   :  { %3244 = vtanh.f32 %v552_v13  ;;  %v75_v13 = vld [vmem:[%s7564_s0 + $0x1a0] sm:$0xff]  ;;  %v4303_v15 = vpop.f32.mrf.mxu2 }
 0x17e   :  { %v554_v21 = vpop.f32.mrf.mxu0 }
 0x17f   :  { %v3245_v22 = vpop.eup %3244  ;;  %v555_v23 = vadd.f32 %v4081_v36, %v554_v21 }
 0x180   :  { %v1406_v24 = vadd.f32 %v3245_v22, %v1405_v14  ;;  %v76_v14 = vld [vmem:[%s7564_s0 + $0x1a8] sm:$0xff] }
 0x181   :  { %3246 = vtanh.f32 %v555_v23  ;;  %593 = vmatmul.bf16.gmra.mxu0 %v301_v19  ;;  %v305_v18 = vpack.c.bf16 %v76_v14, %v75_v13  ;;  %v355_v19 = vpack.c.bf16 %v176_v17, %v175_v16 }
 0x183   :  { %863 = vmatmul.bf16.gmra.mxu2 %v355_v19 }
 0x186   :  { %v556_v25 = vpop.f32.mrf.mxu0 }
 0x187   :  { %v3247_v26 = vpop.eup %3246  ;;  %v557_v27 = vadd.f32 %v4081_v36, %v556_v25 }
 0x188   :  { %v1407_v28 = vadd.f32 %v3247_v26, %v1406_v24  ;;  %v4312_v24 = vpop.f32.mrf.mxu2 }
 0x189   :  { %3248 = vtanh.f32 %v557_v27 }
 0x18e   :  { %v559_v35 = vpop.f32.mrf.mxu0 }
 0x18f   :  { %v3249_v37 = vpop.eup %3248  ;;  %v560_v38 = vadd.f32 %v4081_v36, %v559_v35 }
 0x190   :  { %v1408_v39 = vadd.f32 %v3249_v37, %v1407_v28  ;;  %v4321_v31 = vpop.f32.mrf.mxu2 }
 0x191   :  { %3250 = vtanh.f32 %v560_v38  ;;  %598 = vmatmul.bf16.gmra.mxu0 %v302_v33  ;;  %v178_v33 = vld [vmem:[%s7564_s0 + $0x4d8] sm:$0xff] }
 0x192   :  { %v356_v35 = vpack.c.bf16 %v178_v33, %v177_v32 }
 0x194   :  { %868 = vmatmul.bf16.gmra.mxu2 %v356_v35 }
 0x196   :  { %v561_v41 = vpop.f32.mrf.mxu0 }
 0x197   :  { %v3251_v42 = vpop.eup %3250  ;;  %v562_v43 = vadd.f32 %v4081_v36, %v561_v41 }
 0x198   :  { %v1409_v44 = vadd.f32 %v3251_v42, %v1408_v39  ;;  %v4330_v42 = vpop.f32.mrf.mxu2 }
 0x199   :  { %3252 = vtanh.f32 %v562_v43 }
 0x19e   :  { %v564_v52 = vpop.f32.mrf.mxu0 }
 0x19f   :  { %v3253_v53 = vpop.eup %3252  ;;  %v565_v54 = vadd.f32 %v4081_v36, %v564_v52  ;;  %v180_v52 = vld [vmem:[%s7564_s0 + $0x4e8] sm:$0xff] }
 0x1a0   :  { %v1410_v55 = vadd.f32 %v3253_v53, %v1409_v44  ;;  %v307_v53 = vpack.c.bf16 %v80_v49, %v79_v48 }
 0x1a1   :  { %3254 = vtanh.f32 %v565_v54  ;;  %603 = vmatmul.bf16.gmra.mxu0 %v303_v50  ;;  %v4339_v50 = vpop.f32.mrf.mxu2  ;;  %v357_v54 = vpack.c.bf16 %v180_v52, %v179_v51 }
 0x1a4   :  { %873 = vmatmul.bf16.gmra.mxu2 %v357_v54 }
 0x1a6   :  { %v566_v57 = vpop.f32.mrf.mxu0 }
 0x1a7   :  { %v3255_v58 = vpop.eup %3254  ;;  %v567_v59 = vadd.f32 %v4081_v36, %v566_v57 }
 0x1a8   :  { %v1411_v60 = vadd.f32 %v3255_v58, %v1410_v55 }
 0x1a9   :  { %3256 = vtanh.f32 %v567_v59 }
 0x1ae   :  { %v569_v4 = vpop.f32.mrf.mxu0 }
 0x1af   :  { %v3257_v5 = vpop.eup %3256  ;;  %v570_v6 = vadd.f32 %v4081_v36, %v569_v4 }
 0x1b0   :  { %v1412_v7 = vadd.f32 %v3257_v5, %v1411_v60  ;;  %v4348_v60 = vpop.f32.mrf.mxu2  ;;  %v181_v5 = vld [vmem:[%s7564_s0 + $0x4f0] sm:$0xff] }
 0x1b1   :  { %3258 = vtanh.f32 %v570_v6  ;;  %608 = vmatmul.bf16.gmra.mxu0 %v304_v2  ;;  %v81_v2 = vld [vmem:[%s7564_s0 + $0x1d0] sm:$0xff]  ;;  %v182_v6 = vld [vmem:[%s7564_s0 + $0x4f8] sm:$0xff] }
 0x1b6   :  { %v571_v9 = vpop.f32.mrf.mxu0 }
 0x1b7   :  { %v3259_v10 = vpop.eup %3258  ;;  %v572_v11 = vadd.f32 %v4081_v36, %v571_v9  ;;  %v358_v9 = vpack.c.bf16 %v182_v6, %v181_v5 }
 0x1b8   :  { %v1413_v12 = vadd.f32 %v3259_v10, %v1412_v7  ;;  %v4357_v4 = vpop.f32.mrf.mxu2  ;;  %v308_v7 = vpack.c.bf16 %v82_v3, %v81_v2  ;;  %v188_v2 = vld [vmem:[%s7564_s0 + $0x528] sm:$0xff] }
 0x1b9   :  { %3260 = vtanh.f32 %v572_v11  ;;  %878 = vmatmul.bf16.gmra.mxu2 %v358_v9 }
 0x1be   :  { %v574_v20 = vpop.f32.mrf.mxu0 }
 0x1bf   :  { %v3261_v21 = vpop.eup %3260  ;;  %v575_v22 = vadd.f32 %v4081_v36, %v574_v20  ;;  %v83_v20 = vld [vmem:[%s7564_s0 + $0x1e0] sm:$0xff] }
 0x1c0   :  { %v1414_v23 = vadd.f32 %v3261_v21, %v1413_v12  ;;  %v4366_v14 = vpop.f32.mrf.mxu2  ;;  %v84_v21 = vld [vmem:[%s7564_s0 + $0x1e8] sm:$0xff] }
 0x1c1   :  { %3262 = vtanh.f32 %v575_v22  ;;  %613 = vmatmul.bf16.gmra.mxu0 %v305_v18 }
 0x1c6   :  { %v576_v25 = vpop.f32.mrf.mxu0 }
 0x1c7   :  { %v3263_v26 = vpop.eup %3262  ;;  %v577_v27 = vadd.f32 %v4081_v36, %v576_v25  ;;  %v184_v25 = vld [vmem:[%s7564_s0 + $0x508] sm:$0xff] }
 0x1c8   :  { %v1415_v28 = vadd.f32 %v3263_v26, %v1414_v23  ;;  %v4375_v22 = vpop.f32.mrf.mxu2  ;;  %v183_v23 = vld [vmem:[%s7564_s0 + $0x500] sm:$0xff]  ;;  %v309_v26 = vpack.c.bf16 %v84_v21, %v83_v20  ;;  %v189_v21 = vld [vmem:[%s7564_s0 + $0x530] sm:$0xff] }
 0x1c9   :  { %3264 = vtanh.f32 %v577_v27  ;;  %v359_v27 = vpack.c.bf16 %v184_v25, %v183_v23  ;;  %v190_v23 = vld [vmem:[%s7564_s0 + $0x538] sm:$0xff] }
 0x1cb   :  { %883 = vmatmul.bf16.gmra.mxu2 %v359_v27 }
 0x1ce   :  { %v579_v37 = vpop.f32.mrf.mxu0 }
 0x1cf   :  { %v3265_v38 = vpop.eup %3264  ;;  %v580_v39 = vadd.f32 %v4081_v36, %v579_v37 }
 0x1d0   :  { %v1416_v41 = vadd.f32 %v3265_v38, %v1415_v28  ;;  %v4384_v33 = vpop.f32.mrf.mxu2 }
 0x1d1   :  { %3266 = vtanh.f32 %v580_v39  ;;  %618 = vmatmul.bf16.gmra.mxu0 %v306_v34  ;;  %v85_v39 = vld [vmem:[%s7564_s0 + $0x1f0] sm:$0xff] }
 0x1d6   :  { %v581_v43 = vpop.f32.mrf.mxu0 }
 0x1d7   :  { %v3267_v44 = vpop.eup %3266  ;;  %v582_v45 = vadd.f32 %v4081_v36, %v581_v43 }
 0x1d8   :  { %v1417_v46 = vadd.f32 %v3267_v44, %v1416_v41  ;;  %v86_v41 = vld [vmem:[%s7564_s0 + $0x1f8] sm:$0xff]  ;;  %v4393_v43 = vpop.f32.mrf.mxu2  ;;  %v185_v44 = vld [vmem:[%s7564_s0 + $0x510] sm:$0xff] }
 0x1d9   :  { %3268 = vtanh.f32 %v582_v45  ;;  %v186_v45 = vld [vmem:[%s7564_s0 + $0x518] sm:$0xff] }
 0x1da   :  { %v360_v48 = vpack.c.bf16 %v186_v45, %v185_v44  ;;  %v191_v45 = vld [vmem:[%s7564_s0 + $0x540] sm:$0xff] }
 0x1dc   :  { %888 = vmatmul.bf16.gmra.mxu2 %v360_v48 }
 0x1de   :  { %v584_v55 = vpop.f32.mrf.mxu0 }
 0x1df   :  { %v3269_v57 = vpop.eup %3268  ;;  %v585_v58 = vadd.f32 %v4081_v36, %v584_v55 }
 0x1e0   :  { %v1418_v59 = vadd.f32 %v3269_v57, %v1417_v46  ;;  %v310_v46 = vpack.c.bf16 %v86_v41, %v85_v39  ;;  %v4402_v54 = vpop.f32.mrf.mxu2  ;;  %v91_v39 = vld [vmem:[%s7564_s0 + $0x220] sm:$0xff]  ;;  %v92_v41 = vld [vmem:[%s7564_s0 + $0x228] sm:$0xff] }
 0x1e1   :  { %3270 = vtanh.f32 %v585_v58  ;;  %623 = vmatmul.bf16.gmra.mxu0 %v307_v53  ;;  %v313_v48 = vpack.c.bf16 %v92_v41, %v91_v39 }
 0x1e6   :  { %v586_v61 = vpop.f32.mrf.mxu0 }
 0x1e7   :  { %v3271_v62 = vpop.eup %3270  ;;  %v587_v0 = vadd.f32 %v4081_v36, %v586_v61  ;;  %v87_v61 = vld [vmem:[%s7564_s0 + $0x200] sm:$0xff] }
 0x1e8   :  { %v1419_v1 = vadd.f32 %v3271_v62, %v1418_v59  ;;  %v88_v62 = vld [vmem:[%s7564_s0 + $0x208] sm:$0xff] }
 0x1e9   :  { %3272 = vtanh.f32 %v587_v0  ;;  %v4411_v0 = vpop.f32.mrf.mxu2  ;;  %v311_v3 = vpack.c.bf16 %v88_v62, %v87_v61 }
 0x1ee   :  { %v589_v10 = vpop.f32.mrf.mxu0 }
 0x1ef   :  { %v3273_v11 = vpop.eup %3272  ;;  %v590_v12 = vadd.f32 %v4081_v36, %v589_v10 }
 0x1f0   :  { %v1420_v13 = vadd.f32 %v3273_v11, %v1419_v1  ;;  %v187_v1 = vld [vmem:[%s7564_s0 + $0x520] sm:$0xff] }
 0x1f1   :  { %3274 = vtanh.f32 %v590_v12  ;;  %628 = vmatmul.bf16.gmra.mxu0 %v308_v7  ;;  %v361_v5 = vpack.c.bf16 %v188_v2, %v187_v1  ;;  %v4420_v11 = vpop.f32.mrf.mxu2  ;;  %v93_v1 = vld [vmem:[%s7564_s0 + $0x230] sm:$0xff]  ;;  %v94_v2 = vld [vmem:[%s7564_s0 + $0x238] sm:$0xff] }
 0x1f3   :  { %893 = vmatmul.bf16.gmra.mxu2 %v361_v5  ;;  %v193_v5 = vld [vmem:[%s7564_s0 + $0x550] sm:$0xff] }
 0x1f6   :  { %v591_v16 = vpop.f32.mrf.mxu0 }
 0x1f7   :  { %v3275_v17 = vpop.eup %3274  ;;  %v592_v18 = vadd.f32 %v4081_v36, %v591_v16 }
 0x1f8   :  { %v1421_v19 = vadd.f32 %v3275_v17, %v1420_v13 }
 0x1f9   :  { %3276 = vtanh.f32 %v592_v18  ;;  %v89_v18 = vld [vmem:[%s7564_s0 + $0x210] sm:$0xff]  ;;  %v4429_v20 = vpop.f32.mrf.mxu2 }
 0x1fe   :  { %v594_v28 = vpop.f32.mrf.mxu0 }
 0x1ff   :  { %v3277_v29 = vpop.eup %3276  ;;  %v595_v30 = vadd.f32 %v4081_v36, %v594_v28 }
 0x200   :  { %v1422_v32 = vadd.f32 %v3277_v29, %v1421_v19  ;;  %v90_v19 = vld [vmem:[%s7564_s0 + $0x218] sm:$0xff] }
 0x201   :  { %3278 = vtanh.f32 %v595_v30  ;;  %633 = vmatmul.bf16.gmra.mxu0 %v309_v26  ;;  %v312_v25 = vpack.c.bf16 %v90_v19, %v89_v18  ;;  %v362_v26 = vpack.c.bf16 %v190_v23, %v189_v21 }
 0x203   :  { %898 = vmatmul.bf16.gmra.mxu2 %v362_v26  ;;  %v96_v26 = vld [vmem:[%s7564_s0 + $0x248] sm:$0xff] }
 0x206   :  { %v596_v34 = vpop.f32.mrf.mxu0 }
 0x207   :  { %v3279_v35 = vpop.eup %3278  ;;  %v597_v37 = vadd.f32 %v4081_v36, %v596_v34 }
 0x208   :  { %v1423_v38 = vadd.f32 %v3279_v35, %v1422_v32  ;;  %v4438_v32 = vpop.f32.mrf.mxu2 }
 0x209   :  { %3280 = vtanh.f32 %v597_v37 }
 0x20e   :  { %v599_v49 = vpop.f32.mrf.mxu0 }
 0x20f   :  { %v3281_v51 = vpop.eup %3280  ;;  %v600_v52 = vadd.f32 %v4081_v36, %v599_v49 }
 0x210   :  { %v1424_v53 = vadd.f32 %v3281_v51, %v1423_v38  ;;  %v4447_v44 = vpop.f32.mrf.mxu2 }
 0x211   :  { %3282 = vtanh.f32 %v600_v52  ;;  %638 = vmatmul.bf16.gmra.mxu0 %v310_v46  ;;  %v192_v46 = vld [vmem:[%s7564_s0 + $0x548] sm:$0xff] }
 0x212   :  { %v363_v49 = vpack.c.bf16 %v192_v46, %v191_v45 }
 0x214   :  { %903 = vmatmul.bf16.gmra.mxu2 %v363_v49 }
 0x216   :  { %v601_v55 = vpop.f32.mrf.mxu0 }
 0x217   :  { %v3283_v57 = vpop.eup %3282  ;;  %v602_v58 = vadd.f32 %v4081_v36, %v601_v55 }
 0x218   :  { %v1425_v59 = vadd.f32 %v3283_v57, %v1424_v53  ;;  %v4456_v57 = vpop.f32.mrf.mxu2 }
 0x219   :  { %3284 = vtanh.f32 %v602_v58 }
 0x21e   :  { %v604_v6 = vpop.f32.mrf.mxu0 }
 0x21f   :  { %v3285_v7 = vpop.eup %3284  ;;  %v605_v9 = vadd.f32 %v4081_v36, %v604_v6  ;;  %v194_v6 = vld [vmem:[%s7564_s0 + $0x558] sm:$0xff] }
 0x220   :  { %v1426_v10 = vadd.f32 %v3285_v7, %v1425_v59  ;;  %v314_v7 = vpack.c.bf16 %v94_v2, %v93_v1 }
 0x221   :  { %3286 = vtanh.f32 %v605_v9  ;;  %643 = vmatmul.bf16.gmra.mxu0 %v311_v3  ;;  %v4465_v3 = vpop.f32.mrf.mxu2  ;;  %v364_v9 = vpack.c.bf16 %v194_v6, %v193_v5 }
 0x224   :  { %908 = vmatmul.bf16.gmra.mxu2 %v364_v9 }
 0x226   :  { %v606_v12 = vpop.f32.mrf.mxu0 }
 0x227   :  { %v3287_v13 = vpop.eup %3286  ;;  %v607_v16 = vadd.f32 %v4081_v36, %v606_v12 }
 0x228   :  { %v1427_v17 = vadd.f32 %v3287_v13, %v1426_v10 }
 0x229   :  { %3288 = vtanh.f32 %v607_v16 }
 0x22e   :  { %v609_v27 = vpop.f32.mrf.mxu0 }
 0x22f   :  { %v3289_v28 = vpop.eup %3288  ;;  %v610_v29 = vadd.f32 %v4081_v36, %v609_v27 }
 0x230   :  { %v1428_v30 = vadd.f32 %v3289_v28, %v1427_v17  ;;  %v4474_v17 = vpop.f32.mrf.mxu2  ;;  %v195_v28 = vld [vmem:[%s7564_s0 + $0x560] sm:$0xff] }
 0x231   :  { %3290 = vtanh.f32 %v610_v29  ;;  %648 = vmatmul.bf16.gmra.mxu0 %v312_v25  ;;  %v95_v25 = vld [vmem:[%s7564_s0 + $0x240] sm:$0xff]  ;;  %v196_v29 = vld [vmem:[%s7564_s0 + $0x568] sm:$0xff] }
 0x236   :  { %v611_v34 = vpop.f32.mrf.mxu0 }
 0x237   :  { %v3291_v35 = vpop.eup %3290  ;;  %v612_v37 = vadd.f32 %v4081_v36, %v611_v34  ;;  %v365_v34 = vpack.c.bf16 %v196_v29, %v195_v28 }
 0x238   :  { %v1429_v38 = vadd.f32 %v3291_v35, %v1428_v30  ;;  %v4483_v27 = vpop.f32.mrf.mxu2  ;;  %v315_v30 = vpack.c.bf16 %v96_v26, %v95_v25 }
 0x239   :  { %3292 = vtanh.f32 %v612_v37  ;;  %913 = vmatmul.bf16.gmra.mxu2 %v365_v34 }
 0x23e   :  { %v614_v51 = vpop.f32.mrf.mxu0 }
 0x23f   :  { %v3293_v52 = vpop.eup %3292  ;;  %v615_v53 = vadd.f32 %v4081_v36, %v614_v51 }
 0x240   :  { %v1430_v55 = vadd.f32 %v3293_v52, %v1429_v38  ;;  %v4492_v41 = vpop.f32.mrf.mxu2  ;;  %v98_v52 = vld [vmem:[%s7564_s0 + $0x258] sm:$0xff] }
 0x241   :  { %3294 = vtanh.f32 %v615_v53  ;;  %653 = vmatmul.bf16.gmra.mxu0 %v313_v48  ;;  %v4497_v48 = vld [vmem:[%s7563_s2] ss:$0 sm:$0xff] }
 0x246   :  { %v616_v58 = vpop.f32.mrf.mxu0 }
 0x247   :  { %v3295_v59 = vpop.eup %3294  ;;  %v617_v61 = vadd.f32 %v4081_v36, %v616_v58  ;;  %v198_v58 = vld [vmem:[%s7564_s0 + $0x578] sm:$0xff] }
 0x248   :  { %v1431_v62 = vadd.f32 %v3295_v59, %v1430_v55  ;;  %v4506_v53 = vpop.f32.mrf.mxu2  ;;  %v197_v55 = vld [vmem:[%s7564_s0 + $0x570] sm:$0xff] }
 0x249   :  { %3296 = vtanh.f32 %v617_v61  ;;  %v366_v61 = vpack.c.bf16 %v198_v58, %v197_v55 }
 0x24b   :  { %918 = vmatmul.bf16.gmra.mxu2 %v366_v61 }
 0x24e   :  { %v619_v10 = vpop.f32.mrf.mxu0 }
 0x24f   :  { %v3297_v12 = vpop.eup %3296  ;;  %v620_v13 = vadd.f32 %v4081_v36, %v619_v10 }
 0x250   :  { %v1432_v16 = vadd.f32 %v3297_v12, %v1431_v62  ;;  %v4515_v6 = vpop.f32.mrf.mxu2 }
 0x251   :  { %3298 = vtanh.f32 %v620_v13  ;;  %658 = vmatmul.bf16.gmra.mxu0 %v314_v7  ;;  %v99_v13 = vld [vmem:[%s7564_s0 + $0x260] sm:$0xff] }
 0x256   :  { %v621_v18 = vpop.f32.mrf.mxu0 }
 0x257   :  { %v3299_v19 = vpop.eup %3298  ;;  %v622_v21 = vadd.f32 %v4081_v36, %v621_v18 }
 0x258   :  { %v1433_v23 = vadd.f32 %v3299_v19, %v1432_v16  ;;  %v100_v16 = vld [vmem:[%s7564_s0 + $0x268] sm:$0xff]  ;;  %v4524_v18 = vpop.f32.mrf.mxu2  ;;  %v199_v19 = vld [vmem:[%s7564_s0 + $0x580] sm:$0xff] }
 0x259   :  { %3300 = vtanh.f32 %v622_v21  ;;  %v200_v21 = vld [vmem:[%s7564_s0 + $0x588] sm:$0xff] }
 0x25a   :  { %v367_v25 = vpack.c.bf16 %v200_v21, %v199_v19  ;;  %v204_v19 = vld [vmem:[%s7564_s0 + $0x5a8] sm:$0xff] }
 0x25c   :  { %923 = vmatmul.bf16.gmra.mxu2 %v367_v25 }
 0x25e   :  { %v624_v35 = vpop.f32.mrf.mxu0 }
 0x25f   :  { %v3301_v37 = vpop.eup %3300  ;;  %v625_v38 = vadd.f32 %v4081_v36, %v624_v35  ;;  %v97_v36 = vld [vmem:[%s7564_s0 + $0x250] sm:$0xff] }
 0x260   :  { %v1434_v39 = vadd.f32 %v3301_v37, %v1433_v23  ;;  %v316_v59 = vpack.c.bf16 %v98_v52, %v97_v36  ;;  %v317_v23 = vpack.c.bf16 %v100_v16, %v99_v13  ;;  %v4533_v34 = vpop.f32.mrf.mxu2  ;;  %v202_v36 = vld [vmem:[%s7564_s0 + $0x598] sm:$0xff]  ;;  %v203_v16 = vld [vmem:[%s7564_s0 + $0x5a0] sm:$0xff] }
 0x261   :  { %3302 = vtanh.f32 %v625_v38  ;;  %663 = vmatmul.bf16.gmra.mxu0 %v315_v30 }
 0x266   :  { %v626_v45 = vpop.f32.mrf.mxu0 }
 0x267   :  { %v3303_v46 = vpop.eup %3302  ;;  %v627_v49 = vadd.f32 %v4497_v48, %v626_v45  ;;  %v101_v45 = vld [vmem:[%s7564_s0 + $0x270] sm:$0xff] }
 0x268   :  { %v1435_v51 = vadd.f32 %v3303_v46, %v1434_v39  ;;  %v102_v46 = vld [vmem:[%s7564_s0 + $0x278] sm:$0xff] }
 0x269   :  { %3304 = vtanh.f32 %v627_v49  ;;  %v4542_v49 = vpop.f32.mrf.mxu2  ;;  %v318_v52 = vpack.c.bf16 %v102_v46, %v101_v45  ;;  %v105_v45 = vld [vmem:[%s7564_s0 + $0x290] sm:$0xff]  ;;  %v106_v46 = vld [vmem:[%s7564_s0 + $0x298] sm:$0xff] }
 0x26e   :  { %v629_v62 = vpop.f32.mrf.mxu0 }
 0x26f   :  { %v3305_v1 = vpop.eup %3304  ;;  %v630_v2 = vadd.f32 %v4497_v48, %v629_v62 }
 0x270   :  { %v1436_v5 = vadd.f32 %v3305_v1, %v1435_v51  ;;  %v201_v51 = vld [vmem:[%s7564_s0 + $0x590] sm:$0xff] }
 0x271   :  { %3306 = vtanh.f32 %v630_v2  ;;  %668 = vmatmul.bf16.gmra.mxu0 %v316_v59  ;;  %v368_v55 = vpack.c.bf16 %v202_v36, %v201_v51  ;;  %v4551_v1 = vpop.f32.mrf.mxu2  ;;  %v205_v36 = vld [vmem:[%s7564_s0 + $0x5b0] sm:$0xff] }
 0x273   :  { %928 = vmatmul.bf16.gmra.mxu2 %v368_v55  ;;  %v320_v55 = vpack.c.bf16 %v106_v46, %v105_v45 }
 0x276   :  { %v631_v7 = vpop.f32.mrf.mxu0 }
 0x277   :  { %v3307_v9 = vpop.eup %3306  ;;  %v632_v10 = vadd.f32 %v4497_v48, %v631_v7 }
 0x278   :  { %v1437_v12 = vadd.f32 %v3307_v9, %v1436_v5 }
 0x279   :  { %3308 = vtanh.f32 %v632_v10  ;;  %v103_v10 = vld [vmem:[%s7564_s0 + $0x280] sm:$0xff]  ;;  %v4560_v13 = vpop.f32.mrf.mxu2 }
 0x27e   :  { %v634_v26 = vpop.f32.mrf.mxu0 }
 0x27f   :  { %v3309_v28 = vpop.eup %3308  ;;  %v635_v29 = vadd.f32 %v4497_v48, %v634_v26 }
 0x280   :  { %v1438_v30 = vadd.f32 %v3309_v28, %v1437_v12  ;;  %v104_v12 = vld [vmem:[%s7564_s0 + $0x288] sm:$0xff] }
 0x281   :  { %3310 = vtanh.f32 %v635_v29  ;;  %673 = vmatmul.bf16.gmra.mxu0 %v317_v23  ;;  %v319_v21 = vpack.c.bf16 %v104_v12, %v103_v10  ;;  %v369_v23 = vpack.c.bf16 %v204_v19, %v203_v16  ;;  %v107_v16 = vld [vmem:[%s7564_s0 + $0x2a0] sm:$0xff]  ;;  %v108_v19 = vld [vmem:[%s7564_s0 + $0x2a8] sm:$0xff] }
 0x283   :  { %933 = vmatmul.bf16.gmra.mxu2 %v369_v23  ;;  %v207_v23 = vld [vmem:[%s7564_s0 + $0x5c0] sm:$0xff] }
 0x286   :  { %v636_v35 = vpop.f32.mrf.mxu0 }
 0x287   :  { %v3311_v37 = vpop.eup %3310  ;;  %v637_v38 = vadd.f32 %v4497_v48, %v636_v35 }
 0x288   :  { %v1439_v39 = vadd.f32 %v3311_v37, %v1438_v30  ;;  %v4569_v30 = vpop.f32.mrf.mxu2 }
 0x289   :  { %3312 = vtanh.f32 %v637_v38 }
 0x28e   :  { %v639_v58 = vpop.f32.mrf.mxu0 }
 0x28f   :  { %v3313_v59 = vpop.eup %3312  ;;  %v640_v61 = vadd.f32 %v4497_v48, %v639_v58 }
 0x290   :  { %v1440_v62 = vadd.f32 %v3313_v59, %v1439_v39  ;;  %v4578_v51 = vpop.f32.mrf.mxu2 }
 0x291   :  { %3314 = vtanh.f32 %v640_v61  ;;  %678 = vmatmul.bf16.gmra.mxu0 %v318_v52  ;;  %v206_v52 = vld [vmem:[%s7564_s0 + $0x5b8] sm:$0xff] }
 0x292   :  { %v370_v58 = vpack.c.bf16 %v206_v52, %v205_v36 }
 0x294   :  { %938 = vmatmul.bf16.gmra.mxu2 %v370_v58  ;;  %v110_v58 = vld [vmem:[%s7564_s0 + $0x2b8] sm:$0xff] }
 0x296   :  { %v641_v2 = vpop.f32.mrf.mxu0 }
 0x297   :  { %v3315_v5 = vpop.eup %3314  ;;  %v642_v7 = vadd.f32 %v4497_v48, %v641_v2 }
 0x298   :  { %v1441_v9 = vadd.f32 %v3315_v5, %v1440_v62  ;;  %v4587_v5 = vpop.f32.mrf.mxu2 }
 0x299   :  { %3316 = vtanh.f32 %v642_v7 }
 0x29e   :  { %v644_v25 = vpop.f32.mrf.mxu0 }
 0x29f   :  { %v3317_v26 = vpop.eup %3316  ;;  %v645_v28 = vadd.f32 %v4497_v48, %v644_v25  ;;  %v208_v25 = vld [vmem:[%s7564_s0 + $0x5c8] sm:$0xff] }
 0x2a0   :  { %v1442_v29 = vadd.f32 %v3317_v26, %v1441_v9  ;;  %v321_v26 = vpack.c.bf16 %v108_v19, %v107_v16 }
 0x2a1   :  { %3318 = vtanh.f32 %v645_v28  ;;  %683 = vmatmul.bf16.gmra.mxu0 %v319_v21  ;;  %v4596_v21 = vpop.f32.mrf.mxu2  ;;  %v371_v28 = vpack.c.bf16 %v208_v25, %v207_v23 }
 0x2a4   :  { %943 = vmatmul.bf16.gmra.mxu2 %v371_v28 }
 0x2a6   :  { %v646_v35 = vpop.f32.mrf.mxu0 }
 0x2a7   :  { %v3319_v37 = vpop.eup %3318  ;;  %v647_v38 = vadd.f32 %v4497_v48, %v646_v35 }
 0x2a8   :  { %v1443_v39 = vadd.f32 %v3319_v37, %v1442_v29 }
 0x2a9   :  { %3320 = vtanh.f32 %v647_v38 }
 0x2ae   :  { %v649_v59 = vpop.f32.mrf.mxu0 }
 0x2af   :  { %v3321_v61 = vpop.eup %3320  ;;  %v650_v62 = vadd.f32 %v4497_v48, %v649_v59 }
 0x2b0   :  { %v1444_v2 = vadd.f32 %v3321_v61, %v1443_v39  ;;  %v4605_v39 = vpop.f32.mrf.mxu2  ;;  %v209_v61 = vld [vmem:[%s7564_s0 + $0x5d0] sm:$0xff] }
 0x2b1   :  { %3322 = vtanh.f32 %v650_v62  ;;  %688 = vmatmul.bf16.gmra.mxu0 %v320_v55  ;;  %v109_v55 = vld [vmem:[%s7564_s0 + $0x2b0] sm:$0xff]  ;;  %v210_v62 = vld [vmem:[%s7564_s0 + $0x5d8] sm:$0xff] }
 0x2b6   :  { %v651_v7 = vpop.f32.mrf.mxu0 }
 0x2b7   :  { %v3323_v9 = vpop.eup %3322  ;;  %v652_v10 = vadd.f32 %v4497_v48, %v651_v7  ;;  %v372_v7 = vpack.c.bf16 %v210_v62, %v209_v61 }
 0x2b8   :  { %v1445_v12 = vadd.f32 %v3323_v9, %v1444_v2  ;;  %v4614_v59 = vpop.f32.mrf.mxu2  ;;  %v322_v2 = vpack.c.bf16 %v110_v58, %v109_v55 }
 0x2b9   :  { %3324 = vtanh.f32 %v652_v10  ;;  %948 = vmatmul.bf16.gmra.mxu2 %v372_v7 }
 0x2be   :  { %v654_v29 = vpop.f32.mrf.mxu0 }
 0x2bf   :  { %v3325_v35 = vpop.eup %3324  ;;  %v655_v37 = vadd.f32 %v4497_v48, %v654_v29  ;;  %v111_v29 = vld [vmem:[%s7564_s0 + $0x2c0] sm:$0xff] }
 0x2c0   :  { %v1446_v38 = vadd.f32 %v3325_v35, %v1445_v12  ;;  %v4623_v19 = vpop.f32.mrf.mxu2  ;;  %v112_v35 = vld [vmem:[%s7564_s0 + $0x2c8] sm:$0xff] }
 0x2c1   :  { %3326 = vtanh.f32 %v655_v37  ;;  %693 = vmatmul.bf16.gmra.mxu0 %v321_v26 }
 0x2c6   :  { %v656_v45 = vpop.f32.mrf.mxu0 }
 0x2c7   :  { %v3327_v46 = vpop.eup %3326  ;;  %v657_v36 = vadd.f32 %v4497_v48, %v656_v45  ;;  %v212_v45 = vld [vmem:[%s7564_s0 + $0x5e8] sm:$0xff] }
 0x2c8   :  { %v1447_v52 = vadd.f32 %v3327_v46, %v1446_v38  ;;  %v4632_v37 = vpop.f32.mrf.mxu2  ;;  %v211_v38 = vld [vmem:[%s7564_s0 + $0x5e0] sm:$0xff]  ;;  %v323_v46 = vpack.c.bf16 %v112_v35, %v111_v29 }
 0x2c9   :  { %3328 = vtanh.f32 %v657_v36  ;;  %v373_v36 = vpack.c.bf16 %v212_v45, %v211_v38 }
 0x2cb   :  { %953 = vmatmul.bf16.gmra.mxu2 %v373_v36 }
 0x2ce   :  { %v659_v9 = vpop.f32.mrf.mxu0 }
 0x2cf   :  { %v3329_v10 = vpop.eup %3328  ;;  %v660_v12 = vadd.f32 %v4497_v48, %v659_v9 }
 0x2d0   :  { %v1448_v16 = vadd.f32 %v3329_v10, %v1447_v52  ;;  %v4641_v62 = vpop.f32.mrf.mxu2 }
 0x2d1   :  { %3330 = vtanh.f32 %v660_v12  ;;  %698 = vmatmul.bf16.gmra.mxu0 %v322_v2  ;;  %7569 = vst [vmem:[#allocation2_spill] sm:$0xff] %v4641_v62  ;;  %v113_v12 = vld [vmem:[%s7564_s0 + $0x2d0] sm:$0xff] }
 0x2d6   :  { %v661_v23 = vpop.f32.mrf.mxu0 }
 0x2d7   :  { %v3331_v25 = vpop.eup %3330  ;;  %v662_v26 = vadd.f32 %v4497_v48, %v661_v23 }
 0x2d8   :  { %v1449_v28 = vadd.f32 %v3331_v25, %v1448_v16  ;;  %v114_v16 = vld [vmem:[%s7564_s0 + $0x2d8] sm:$0xff]  ;;  %v4650_v23 = vpop.f32.mrf.mxu2  ;;  %v213_v25 = vld [vmem:[%s7564_s0 + $0x5f0] sm:$0xff] }
 0x2d9   :  { %3332 = vtanh.f32 %v662_v26  ;;  %7570 = vst [vmem:[#allocation3_spill] sm:$0xff] %v4650_v23  ;;  %v214_v26 = vld [vmem:[%s7564_s0 + $0x5f8] sm:$0xff] }
 0x2da   :  { %v374_v29 = vpack.c.bf16 %v214_v26, %v213_v25 }
 0x2dc   :  { %958 = vmatmul.bf16.gmra.mxu2 %v374_v29 }
 0x2de   :  { %v664_v52 = vpop.f32.mrf.mxu0 }
 0x2df   :  { %v3333_v55 = vpop.eup %3332  ;;  %v665_v58 = vadd.f32 %v4497_v48, %v664_v52 }
 0x2e0   :  { %v1450_v61 = vadd.f32 %v3333_v55, %v1449_v28  ;;  %v324_v28 = vpack.c.bf16 %v114_v16, %v113_v12  ;;  %v4659_v36 = vpop.f32.mrf.mxu2  ;;  %v216_v12 = vld [vmem:[%s7564_s0 + $0x608] sm:$0xff] }
 0x2e1   :  { %3334 = vtanh.f32 %v665_v58  ;;  %703 = vmatmul.bf16.gmra.mxu0 %v323_v46  ;;  %7571 = vst [vmem:[#allocation4_spill] sm:$0xff] %v4659_v36 }
 0x2e6   :  { %v666_v2 = vpop.f32.mrf.mxu0 }
 0x2e7   :  { %v3335_v7 = vpop.eup %3334  ;;  %v667_v9 = vadd.f32 %v4497_v48, %v666_v2  ;;  %v115_v2 = vld [vmem:[%s7564_s0 + $0x2e0] sm:$0xff] }
 0x2e8   :  { %v1451_v10 = vadd.f32 %v3335_v7, %v1450_v61  ;;  %v116_v7 = vld [vmem:[%s7564_s0 + $0x2e8] sm:$0xff] }
 0x2e9   :  { %3336 = vtanh.f32 %v667_v9  ;;  %v4668_v9 = vpop.f32.mrf.mxu2  ;;  %v325_v16 = vpack.c.bf16 %v116_v7, %v115_v2  ;;  %v118_v2 = vld [vmem:[%s7564_s0 + $0x2f8] sm:$0xff] }
 0x2ea   :  { %7572 = vst [vmem:[#allocation5_spill] sm:$0xff] %v4668_v9 }
 0x2ee   :  { %v669_v35 = vpop.f32.mrf.mxu0 }
 0x2ef   :  { %v3337_v38 = vpop.eup %3336  ;;  %v670_v45 = vadd.f32 %v4497_v48, %v669_v35 }
 0x2f0   :  { %v1452_v46 = vadd.f32 %v3337_v38, %v1451_v10  ;;  %v215_v10 = vld [vmem:[%s7564_s0 + $0x600] sm:$0xff] }
 0x2f1   :  { %3338 = vtanh.f32 %v670_v45  ;;  %708 = vmatmul.bf16.gmra.mxu0 %v324_v28  ;;  %v375_v25 = vpack.c.bf16 %v216_v12, %v215_v10  ;;  %v4677_v38 = vpop.f32.mrf.mxu2  ;;  %v218_v10 = vld [vmem:[%s7564_s0 + $0x618] sm:$0xff] }
 0x2f2   :  { %7573 = vst [vmem:[#allocation6_spill] sm:$0xff] %v4677_v38 }
 0x2f3   :  { %963 = vmatmul.bf16.gmra.mxu2 %v375_v25 }
 0x2f6   :  { %v671_v52 = vpop.f32.mrf.mxu0 }
 0x2f7   :  { %v3339_v55 = vpop.eup %3338  ;;  %v672_v58 = vadd.f32 %v4497_v48, %v671_v52 }
 0x2f8   :  { %v1453_v61 = vadd.f32 %v3339_v55, %v1452_v46 }
 0x2f9   :  { %3340 = vtanh.f32 %v672_v58  ;;  %v117_v58 = vld [vmem:[%s7564_s0 + $0x2f0] sm:$0xff]  ;;  %v4686_v7 = vpop.f32.mrf.mxu2 }
 0x2fa   :  { %7574 = vst [vmem:[#allocation7_spill] sm:$0xff] %v4686_v7  ;;  %v326_v12 = vpack.c.bf16 %v118_v2, %v117_v58  ;;  %v119_v58 = vld [vmem:[%s7564_s0 + $0x300] sm:$0xff]  ;;  %v120_v2 = vld [vmem:[%s7564_s0 + $0x308] sm:$0xff] }
 0x2fe   :  { %v674_v26 = vpop.f32.mrf.mxu0 }
 0x2ff   :  { %v3341_v28 = vpop.eup %3340  ;;  %v675_v29 = vadd.f32 %v4497_v48, %v674_v26 }
 0x300   :  { %v1454_v35 = vadd.f32 %v3341_v28, %v1453_v61  ;;  %v217_v61 = vld [vmem:[%s7564_s0 + $0x610] sm:$0xff] }
 0x301   :  { %3342 = vtanh.f32 %v675_v29  ;;  %713 = vmatmul.bf16.gmra.mxu0 %v325_v16  ;;  %v376_v16 = vpack.c.bf16 %v218_v10, %v217_v61  ;;  %v220_v10 = vld [vmem:[%s7564_s0 + $0x628] sm:$0xff] }
 0x303   :  { %968 = vmatmul.bf16.gmra.mxu2 %v376_v16 }
 0x306   :  { %v676_v45 = vpop.f32.mrf.mxu0 }
 0x307   :  { %v3343_v46 = vpop.eup %3342  ;;  %v677_v52 = vadd.f32 %v4497_v48, %v676_v45 }
 0x308   :  { %v1455_v55 = vadd.f32 %v3343_v46, %v1454_v35  ;;  %v4695_v35 = vpop.f32.mrf.mxu2 }
 0x309   :  { %3344 = vtanh.f32 %v677_v52  ;;  %7575 = vst [vmem:[#allocation8_spill] sm:$0xff] %v4695_v35 }
 0x30e   :  { %v679_v25 = vpop.f32.mrf.mxu0 }
 0x30f   :  { %v3345_v26 = vpop.eup %3344  ;;  %v680_v28 = vadd.f32 %v4497_v48, %v679_v25 }
 0x310   :  { %v1456_v29 = vadd.f32 %v3345_v26, %v1455_v55  ;;  %v4704_v61 = vpop.f32.mrf.mxu2  ;;  %v219_v55 = vld [vmem:[%s7564_s0 + $0x620] sm:$0xff] }
 0x311   :  { %3346 = vtanh.f32 %v680_v28  ;;  %718 = vmatmul.bf16.gmra.mxu0 %v326_v12  ;;  %7576 = vst [vmem:[#allocation9_spill] sm:$0xff] %v4704_v61  ;;  %v327_v12 = vpack.c.bf16 %v120_v2, %v119_v58  ;;  %v377_v16 = vpack.c.bf16 %v220_v10, %v219_v55  ;;  %v121_v58 = vld [vmem:[%s7564_s0 + $0x310] sm:$0xff]  ;;  %v122_v2 = vld [vmem:[%s7564_s0 + $0x318] sm:$0xff] }
 0x312   :  { %v222_v10 = vld [vmem:[%s7564_s0 + $0x638] sm:$0xff] }
 0x313   :  { %973 = vmatmul.bf16.gmra.mxu2 %v377_v16 }
 0x316   :  { %v681_v45 = vpop.f32.mrf.mxu0 }
 0x317   :  { %v3347_v46 = vpop.eup %3346  ;;  %v682_v52 = vadd.f32 %v4497_v48, %v681_v45 }
 0x318   :  { %v1457_v7 = vadd.f32 %v3347_v46, %v1456_v29  ;;  %v4713_v45 = vpop.f32.mrf.mxu2 }
 0x319   :  { %3348 = vtanh.f32 %v682_v52  ;;  %7577 = vst [vmem:[#allocation10_spill] sm:$0xff] %v4713_v45 }
 0x31e   :  { %v684_v25 = vpop.f32.mrf.mxu0 }
 0x31f   :  { %v3349_v26 = vpop.eup %3348  ;;  %v685_v28 = vadd.f32 %v4497_v48, %v684_v25 }
 0x320   :  { %v1458_v29 = vadd.f32 %v3349_v26, %v1457_v7  ;;  %v4722_v55 = vpop.f32.mrf.mxu2  ;;  %v221_v7 = vld [vmem:[%s7564_s0 + $0x630] sm:$0xff] }
 0x321   :  { %3350 = vtanh.f32 %v685_v28  ;;  %723 = vmatmul.bf16.gmra.mxu0 %v327_v12  ;;  %7578 = vst [vmem:[#allocation11_spill] sm:$0xff] %v4722_v55  ;;  %v328_v12 = vpack.c.bf16 %v122_v2, %v121_v58  ;;  %v1703_v58 = vld [vmem:[%s7565_s4] sm:$0xf]  ;;  %v124_v2 = vld [vmem:[%s7564_s0 + $0x328] sm:$0xff] }
 0x322   :  { %3123 = vmatpush.msk.msrb.mxu2 %vm1708_vm0, %v1703_v58 }
 0x326   :  { %v686_v46 = vpop.f32.mrf.mxu0 }
 0x327   :  { %v3351_v52 = vpop.eup %3350  ;;  %v687_v61 = vadd.f32 %v4497_v48, %v686_v46 }
 0x328   :  { %v1459_v35 = vadd.f32 %v3351_v52, %v1458_v29  ;;  %v4731_v29 = vpop.f32.mrf.mxu2 }
 0x329   :  { %3352 = vtanh.f32 %v687_v61  ;;  %v378_v61 = vpack.c.bf16 %v222_v10, %v221_v7  ;;  %7579 = vst [vmem:[#allocation12_spill] sm:$0xff] %v4731_v29  ;;  %v223_v10 = vld [vmem:[%s7564_s0 + $0x640] sm:$0xff] }
 0x32b   :  { %978 = vmatmul.bf16.gmra.mxu2 %v378_v61 }
 0x32e   :  { %v689_v16 = vpop.f32.mrf.mxu0 }
 0x32f   :  { %v3353_v25 = vpop.eup %3352  ;;  %v690_v26 = vadd.f32 %v4497_v48, %v689_v16 }
 0x330   :  { %v1460_v28 = vadd.f32 %v3353_v25, %v1459_v35  ;;  %v123_v35 = vld [vmem:[%s7564_s0 + $0x320] sm:$0xff]  ;;  %v4743_v7 = vpop.f32.mrf.mxu2 }
 0x331   :  { %3354 = vtanh.f32 %v690_v26  ;;  %728 = vmatmul.bf16.gmra.mxu0 %v328_v12  ;;  %7580 = vst [vmem:[#allocation13_spill] sm:$0xff] %v4743_v7  ;;  %v224_v12 = vld [vmem:[%s7564_s0 + $0x648] sm:$0xff] }
 0x332   :  { %v379_v61 = vpack.c.bf16 %v224_v12, %v223_v10  ;;  %v226_v12 = vld [vmem:[%s7564_s0 + $0x658] sm:$0xff] }
 0x336   :  { %v691_v46 = vpop.f32.mrf.mxu0 }
 0x337   :  { %v3355_v52 = vpop.eup %3354  ;;  %v692_v55 = vadd.f32 %v4497_v48, %v691_v46 }
 0x338   :  { %v1461_v45 = vadd.f32 %v3355_v52, %v1460_v28  ;;  %v4752_v46 = vpop.f32.mrf.mxu2 }
 0x339   :  { %3356 = vtanh.f32 %v692_v55  ;;  %v329_v55 = vpack.c.bf16 %v124_v2, %v123_v35  ;;  %7581 = vst [vmem:[#allocation14_spill] sm:$0xff] %v4752_v46  ;;  %v125_v35 = vld [vmem:[%s7564_s0 + $0x330] sm:$0xff]  ;;  %v126_v2 = vld [vmem:[%s7564_s0 + $0x338] sm:$0xff] }
 0x33b   :  { %983 = vmatmul.bf16.gmra.mxu2 %v379_v61 }
 0x33e   :  { %v694_v16 = vpop.f32.mrf.mxu0 }
 0x33f   :  { %v3357_v25 = vpop.eup %3356  ;;  %v695_v26 = vadd.f32 %v4497_v48, %v694_v16 }
 0x340   :  { %v1462_v28 = vadd.f32 %v3357_v25, %v1461_v45  ;;  %v4761_v10 = vpop.f32.mrf.mxu2  ;;  %v225_v45 = vld [vmem:[%s7564_s0 + $0x650] sm:$0xff] }
 0x341   :  { %3358 = vtanh.f32 %v695_v26  ;;  %733 = vmatmul.bf16.gmra.mxu0 %v329_v55  ;;  %7582 = vst [vmem:[#allocation15_spill] sm:$0xff] %v4761_v10  ;;  %v330_v55 = vpack.c.bf16 %v126_v2, %v125_v35  ;;  %v127_v35 = vld [vmem:[%s7564_s0 + $0x340] sm:$0xff]  ;;  %v128_v2 = vld [vmem:[%s7564_s0 + $0x348] sm:$0xff] }
 0x346   :  { %v696_v52 = vpop.f32.mrf.mxu0 }
 0x347   :  { %v3359_v58 = vpop.eup %3358  ;;  %v697_v7 = vadd.f32 %v4497_v48, %v696_v52 }
 0x348   :  { %v1463_v29 = vadd.f32 %v3359_v58, %v1462_v28  ;;  %v4770_v28 = vpop.f32.mrf.mxu2 }
 0x349   :  { %3360 = vtanh.f32 %v697_v7  ;;  %v380_v7 = vpack.c.bf16 %v226_v12, %v225_v45  ;;  %7583 = vst [vmem:[#allocation16_spill] sm:$0xff] %v4770_v28  ;;  %v228_v12 = vld [vmem:[%s7564_s0 + $0x668] sm:$0xff] }
 0x34b   :  { %988 = vmatmul.bf16.gmra.mxu2 %v380_v7 }
 0x34e   :  { %v699_v61 = vpop.f32.mrf.mxu0 }
 0x34f   :  { %v3361_v16 = vpop.eup %3360  ;;  %v700_v25 = vadd.f32 %v4497_v48, %v699_v61 }
 0x350   :  { %v1464_v26 = vadd.f32 %v3361_v16, %v1463_v29  ;;  %v4779_v45 = vpop.f32.mrf.mxu2  ;;  %v227_v29 = vld [vmem:[%s7564_s0 + $0x660] sm:$0xff] }
 0x351   :  { %3362 = vtanh.f32 %v700_v25  ;;  %738 = vmatmul.bf16.gmra.mxu0 %v330_v55  ;;  %7584 = vst [vmem:[#allocation17_spill] sm:$0xff] %v4779_v45  ;;  %v331_v55 = vpack.c.bf16 %v128_v2, %v127_v35  ;;  %v129_v35 = vld [vmem:[%s7564_s0 + $0x350] sm:$0xff]  ;;  %v130_v2 = vld [vmem:[%s7564_s0 + $0x358] sm:$0xff] }
 0x356   :  { %v701_v52 = vpop.f32.mrf.mxu0 }
 0x357   :  { %v3363_v58 = vpop.eup %3362  ;;  %v702_v10 = vadd.f32 %v4497_v48, %v701_v52 }
 0x358   :  { %v1465_v46 = vadd.f32 %v3363_v58, %v1464_v26  ;;  %v4788_v26 = vpop.f32.mrf.mxu2 }
 0x359   :  { %3364 = vtanh.f32 %v702_v10  ;;  %v381_v10 = vpack.c.bf16 %v228_v12, %v227_v29  ;;  %7585 = vst [vmem:[#allocation18_spill] sm:$0xff] %v4788_v26  ;;  %v230_v12 = vld [vmem:[%s7564_s0 + $0x678] sm:$0xff] }
 0x35b   :  { %993 = vmatmul.bf16.gmra.mxu2 %v381_v10 }
 0x35e   :  { %v704_v7 = vpop.f32.mrf.mxu0 }
 0x35f   :  { %v3365_v61 = vpop.eup %3364  ;;  %v705_v16 = vadd.f32 %v4497_v48, %v704_v7 }
 0x360   :  { %v1466_v25 = vadd.f32 %v3365_v61, %v1465_v46  ;;  %v4797_v29 = vpop.f32.mrf.mxu2  ;;  %v229_v46 = vld [vmem:[%s7564_s0 + $0x670] sm:$0xff] }
 0x361   :  { %3366 = vtanh.f32 %v705_v16  ;;  %743 = vmatmul.bf16.gmra.mxu0 %v331_v55  ;;  %7586 = vst [vmem:[#allocation19_spill] sm:$0xff] %v4797_v29  ;;  %v332_v55 = vpack.c.bf16 %v130_v2, %v129_v35  ;;  %v131_v35 = vld [vmem:[%s7564_s0 + $0x360] sm:$0xff]  ;;  %v132_v2 = vld [vmem:[%s7564_s0 + $0x368] sm:$0xff] }
 0x366   :  { %v706_v52 = vpop.f32.mrf.mxu0 }
 0x367   :  { %v3367_v58 = vpop.eup %3366  ;;  %v707_v45 = vadd.f32 %v4497_v48, %v706_v52 }
 0x368   :  { %v1467_v28 = vadd.f32 %v3367_v58, %v1466_v25  ;;  %v4806_v25 = vpop.f32.mrf.mxu2 }
 0x369   :  { %3368 = vtanh.f32 %v707_v45  ;;  %v382_v45 = vpack.c.bf16 %v230_v12, %v229_v46  ;;  %7587 = vst [vmem:[#allocation20_spill] sm:$0xff] %v4806_v25  ;;  %v232_v12 = vld [vmem:[%s7564_s0 + $0x688] sm:$0xff] }
 0x36b   :  { %998 = vmatmul.bf16.gmra.mxu2 %v382_v45 }
 0x36e   :  { %v709_v10 = vpop.f32.mrf.mxu0 }
 0x36f   :  { %v3369_v7 = vpop.eup %3368  ;;  %v710_v61 = vadd.f32 %v4497_v48, %v709_v10 }
 0x370   :  { %v1468_v16 = vadd.f32 %v3369_v7, %v1467_v28  ;;  %v4815_v46 = vpop.f32.mrf.mxu2  ;;  %v231_v28 = vld [vmem:[%s7564_s0 + $0x680] sm:$0xff] }
 0x371   :  { %3370 = vtanh.f32 %v710_v61  ;;  %748 = vmatmul.bf16.gmra.mxu0 %v332_v55  ;;  %7588 = vst [vmem:[#allocation21_spill] sm:$0xff] %v4815_v46  ;;  %v333_v55 = vpack.c.bf16 %v132_v2, %v131_v35  ;;  %v133_v35 = vld [vmem:[%s7564_s0 + $0x370] sm:$0xff]  ;;  %v134_v2 = vld [vmem:[%s7564_s0 + $0x378] sm:$0xff] }
 0x376   :  { %v711_v52 = vpop.f32.mrf.mxu0 }
 0x377   :  { %v3371_v58 = vpop.eup %3370  ;;  %v712_v29 = vadd.f32 %v4497_v48, %v711_v52 }
 0x378   :  { %v1469_v26 = vadd.f32 %v3371_v58, %v1468_v16  ;;  %v4824_v16 = vpop.f32.mrf.mxu2 }
 0x379   :  { %3372 = vtanh.f32 %v712_v29  ;;  %v383_v29 = vpack.c.bf16 %v232_v12, %v231_v28  ;;  %7589 = vst [vmem:[#allocation22_spill] sm:$0xff] %v4824_v16  ;;  %v234_v12 = vld [vmem:[%s7564_s0 + $0x698] sm:$0xff] }
 0x37b   :  { %1003 = vmatmul.bf16.gmra.mxu2 %v383_v29 }
 0x37e   :  { %v714_v45 = vpop.f32.mrf.mxu0 }
 0x37f   :  { %v3373_v10 = vpop.eup %3372  ;;  %v715_v7 = vadd.f32 %v4497_v48, %v714_v45 }
 0x380   :  { %v1470_v61 = vadd.f32 %v3373_v10, %v1469_v26  ;;  %v4833_v28 = vpop.f32.mrf.mxu2  ;;  %v233_v26 = vld [vmem:[%s7564_s0 + $0x690] sm:$0xff] }
 0x381   :  { %3374 = vtanh.f32 %v715_v7  ;;  %753 = vmatmul.bf16.gmra.mxu0 %v333_v55  ;;  %7590 = vst [vmem:[#allocation23_spill] sm:$0xff] %v4833_v28  ;;  %v334_v55 = vpack.c.bf16 %v134_v2, %v133_v35  ;;  %v135_v35 = vld [vmem:[%s7564_s0 + $0x380] sm:$0xff]  ;;  %v136_v2 = vld [vmem:[%s7564_s0 + $0x388] sm:$0xff] }
 0x386   :  { %v716_v52 = vpop.f32.mrf.mxu0 }
 0x387   :  { %v3375_v58 = vpop.eup %3374  ;;  %v717_v46 = vadd.f32 %v4497_v48, %v716_v52 }
 0x388   :  { %v1471_v25 = vadd.f32 %v3375_v58, %v1470_v61  ;;  %v4842_v61 = vpop.f32.mrf.mxu2 }
 0x389   :  { %3376 = vtanh.f32 %v717_v46  ;;  %v384_v46 = vpack.c.bf16 %v234_v12, %v233_v26  ;;  %7591 = vst [vmem:[#allocation24_spill] sm:$0xff] %v4842_v61  ;;  %v236_v12 = vld [vmem:[%s7564_s0 + $0x6a8] sm:$0xff] }
 0x38b   :  { %1008 = vmatmul.bf16.gmra.mxu2 %v384_v46 }
 0x38e   :  { %v719_v29 = vpop.f32.mrf.mxu0 }
 0x38f   :  { %v3377_v45 = vpop.eup %3376  ;;  %v720_v10 = vadd.f32 %v4497_v48, %v719_v29 }
 0x390   :  { %v1472_v7 = vadd.f32 %v3377_v45, %v1471_v25  ;;  %v4851_v26 = vpop.f32.mrf.mxu2  ;;  %v235_v25 = vld [vmem:[%s7564_s0 + $0x6a0] sm:$0xff] }
 0x391   :  { %3378 = vtanh.f32 %v720_v10  ;;  %758 = vmatmul.bf16.gmra.mxu0 %v334_v55  ;;  %7592 = vst [vmem:[#allocation25_spill] sm:$0xff] %v4851_v26  ;;  %v335_v55 = vpack.c.bf16 %v136_v2, %v135_v35  ;;  %v137_v35 = vld [vmem:[%s7564_s0 + $0x390] sm:$0xff]  ;;  %v138_v2 = vld [vmem:[%s7564_s0 + $0x398] sm:$0xff] }
 0x396   :  { %v721_v52 = vpop.f32.mrf.mxu0 }
 0x397   :  { %v3379_v58 = vpop.eup %3378  ;;  %v722_v28 = vadd.f32 %v4497_v48, %v721_v52 }
 0x398   :  { %v1473_v16 = vadd.f32 %v3379_v58, %v1472_v7  ;;  %v4860_v7 = vpop.f32.mrf.mxu2 }
 0x399   :  { %3380 = vtanh.f32 %v722_v28  ;;  %v385_v28 = vpack.c.bf16 %v236_v12, %v235_v25  ;;  %7593 = vst [vmem:[#allocation26_spill] sm:$0xff] %v4860_v7  ;;  %v238_v12 = vld [vmem:[%s7564_s0 + $0x6b8] sm:$0xff] }
 0x39b   :  { %1013 = vmatmul.bf16.gmra.mxu2 %v385_v28 }
 0x39e   :  { %v724_v46 = vpop.f32.mrf.mxu0 }
 0x39f   :  { %v3381_v29 = vpop.eup %3380  ;;  %v725_v45 = vadd.f32 %v4497_v48, %v724_v46 }
 0x3a0   :  { %v1474_v10 = vadd.f32 %v3381_v29, %v1473_v16  ;;  %v4869_v25 = vpop.f32.mrf.mxu2  ;;  %v237_v16 = vld [vmem:[%s7564_s0 + $0x6b0] sm:$0xff] }
 0x3a1   :  { %3382 = vtanh.f32 %v725_v45  ;;  %763 = vmatmul.bf16.gmra.mxu0 %v335_v55  ;;  %7594 = vst [vmem:[#allocation27_spill] sm:$0xff] %v4869_v25  ;;  %v336_v55 = vpack.c.bf16 %v138_v2, %v137_v35  ;;  %v139_v35 = vld [vmem:[%s7564_s0 + $0x3a0] sm:$0xff]  ;;  %v140_v2 = vld [vmem:[%s7564_s0 + $0x3a8] sm:$0xff] }
 0x3a6   :  { %v726_v52 = vpop.f32.mrf.mxu0 }
 0x3a7   :  { %v3383_v58 = vpop.eup %3382  ;;  %v727_v26 = vadd.f32 %v4497_v48, %v726_v52 }
 0x3a8   :  { %v1475_v61 = vadd.f32 %v3383_v58, %v1474_v10 }
 0x3a9   :  { %3384 = vtanh.f32 %v727_v26  ;;  %v386_v26 = vpack.c.bf16 %v238_v12, %v237_v16  ;;  %v240_v12 = vld [vmem:[%s7564_s0 + $0x6c8] sm:$0xff] }
 0x3ab   :  { %1018 = vmatmul.bf16.gmra.mxu2 %v386_v26 }
 0x3ae   :  { %v729_v28 = vpop.f32.mrf.mxu0  ;;  %v4878_v10 = vpop.f32.mrf.mxu2 }
 0x3af   :  { %v3385_v46 = vpop.eup %3384  ;;  %v730_v29 = vadd.f32 %v4497_v48, %v729_v28  ;;  %7595 = vst [vmem:[#allocation28_spill] sm:$0xff] %v4878_v10 }
 0x3b0   :  { %v1476_v45 = vadd.f32 %v3385_v46, %v1475_v61  ;;  %v239_v61 = vld [vmem:[%s7564_s0 + $0x6c0] sm:$0xff] }
 0x3b1   :  { %3386 = vtanh.f32 %v730_v29  ;;  %768 = vmatmul.bf16.gmra.mxu0 %v336_v55  ;;  %v337_v55 = vpack.c.bf16 %v140_v2, %v139_v35  ;;  %v141_v35 = vld [vmem:[%s7564_s0 + $0x3b0] sm:$0xff]  ;;  %v142_v2 = vld [vmem:[%s7564_s0 + $0x3b8] sm:$0xff] }
 0x3b6   :  { %v731_v52 = vpop.f32.mrf.mxu0  ;;  %v4887_v16 = vpop.f32.mrf.mxu2 }
 0x3b7   :  { %v3387_v58 = vpop.eup %3386  ;;  %v732_v25 = vadd.f32 %v4497_v48, %v731_v52  ;;  %7596 = vst [vmem:[#allocation29_spill] sm:$0xff] %v4887_v16 }
 0x3b8   :  { %v1477_v7 = vadd.f32 %v3387_v58, %v1476_v45 }
 0x3b9   :  { %3388 = vtanh.f32 %v732_v25  ;;  %v387_v25 = vpack.c.bf16 %v240_v12, %v239_v61  ;;  %v242_v12 = vld [vmem:[%s7564_s0 + $0x6d8] sm:$0xff] }
 0x3bb   :  { %1023 = vmatmul.bf16.gmra.mxu2 %v387_v25 }
 0x3be   :  { %v734_v26 = vpop.f32.mrf.mxu0  ;;  %v4896_v45 = vpop.f32.mrf.mxu2 }
 0x3bf   :  { %v3389_v28 = vpop.eup %3388  ;;  %v735_v46 = vadd.f32 %v4497_v48, %v734_v26  ;;  %7597 = vst [vmem:[#allocation30_spill] sm:$0xff] %v4896_v45 }
 0x3c0   :  { %v1478_v29 = vadd.f32 %v3389_v28, %v1477_v7  ;;  %v241_v7 = vld [vmem:[%s7564_s0 + $0x6d0] sm:$0xff] }
 0x3c1   :  { %3390 = vtanh.f32 %v735_v46  ;;  %773 = vmatmul.bf16.gmra.mxu0 %v337_v55  ;;  %v338_v55 = vpack.c.bf16 %v142_v2, %v141_v35  ;;  %v143_v35 = vld [vmem:[%s7564_s0 + $0x3c0] sm:$0xff]  ;;  %v144_v2 = vld [vmem:[%s7564_s0 + $0x3c8] sm:$0xff] }
 0x3c6   :  { %v736_v52 = vpop.f32.mrf.mxu0  ;;  %v4905_v61 = vpop.f32.mrf.mxu2 }
 0x3c7   :  { %v3391_v58 = vpop.eup %3390  ;;  %v737_v16 = vadd.f32 %v4497_v48, %v736_v52  ;;  %7598 = vst [vmem:[#allocation31_spill] sm:$0xff] %v4905_v61 }
 0x3c8   :  { %v1479_v10 = vadd.f32 %v3391_v58, %v1478_v29 }
 0x3c9   :  { %3392 = vtanh.f32 %v737_v16  ;;  %v388_v16 = vpack.c.bf16 %v242_v12, %v241_v7  ;;  %v244_v12 = vld [vmem:[%s7564_s0 + $0x6e8] sm:$0xff] }
 0x3cb   :  { %1028 = vmatmul.bf16.gmra.mxu2 %v388_v16 }
 0x3ce   :  { %v739_v25 = vpop.f32.mrf.mxu0  ;;  %v4914_v29 = vpop.f32.mrf.mxu2 }
 0x3cf   :  { %v3393_v26 = vpop.eup %3392  ;;  %v740_v28 = vadd.f32 %v4497_v48, %v739_v25  ;;  %7599 = vst [vmem:[#allocation32_spill] sm:$0xff] %v4914_v29 }
 0x3d0   :  { %v1480_v46 = vadd.f32 %v3393_v26, %v1479_v10  ;;  %v243_v10 = vld [vmem:[%s7564_s0 + $0x6e0] sm:$0xff] }
 0x3d1   :  { %3394 = vtanh.f32 %v740_v28  ;;  %778 = vmatmul.bf16.gmra.mxu0 %v338_v55  ;;  %v339_v55 = vpack.c.bf16 %v144_v2, %v143_v35  ;;  %v145_v35 = vld [vmem:[%s7564_s0 + $0x3d0] sm:$0xff]  ;;  %v146_v2 = vld [vmem:[%s7564_s0 + $0x3d8] sm:$0xff] }
 0x3d6   :  { %v741_v52 = vpop.f32.mrf.mxu0  ;;  %v4923_v7 = vpop.f32.mrf.mxu2 }
 0x3d7   :  { %v3395_v58 = vpop.eup %3394  ;;  %v742_v61 = vadd.f32 %v4497_v48, %v741_v52  ;;  %7600 = vst [vmem:[#allocation33_spill] sm:$0xff] %v4923_v7 }
 0x3d8   :  { %v1481_v45 = vadd.f32 %v3395_v58, %v1480_v46 }
 0x3d9   :  { %3396 = vtanh.f32 %v742_v61  ;;  %v389_v61 = vpack.c.bf16 %v244_v12, %v243_v10  ;;  %v246_v12 = vld [vmem:[%s7564_s0 + $0x6f8] sm:$0xff] }
 0x3db   :  { %1033 = vmatmul.bf16.gmra.mxu2 %v389_v61 }
 0x3de   :  { %v744_v16 = vpop.f32.mrf.mxu0  ;;  %v4932_v46 = vpop.f32.mrf.mxu2 }
 0x3df   :  { %v3397_v25 = vpop.eup %3396  ;;  %v745_v26 = vadd.f32 %v4497_v48, %v744_v16  ;;  %7601 = vst [vmem:[#allocation34_spill] sm:$0xff] %v4932_v46 }
 0x3e0   :  { %v1482_v28 = vadd.f32 %v3397_v25, %v1481_v45  ;;  %v245_v45 = vld [vmem:[%s7564_s0 + $0x6f0] sm:$0xff] }
 0x3e1   :  { %3398 = vtanh.f32 %v745_v26  ;;  %783 = vmatmul.bf16.gmra.mxu0 %v339_v55  ;;  %v340_v55 = vpack.c.bf16 %v146_v2, %v145_v35  ;;  %v147_v35 = vld [vmem:[%s7564_s0 + $0x3e0] sm:$0xff]  ;;  %v148_v2 = vld [vmem:[%s7564_s0 + $0x3e8] sm:$0xff] }
 0x3e6   :  { %v746_v52 = vpop.f32.mrf.mxu0  ;;  %v4941_v10 = vpop.f32.mrf.mxu2 }
 0x3e7   :  { %v3399_v58 = vpop.eup %3398  ;;  %v747_v7 = vadd.f32 %v4497_v48, %v746_v52  ;;  %7602 = vst [vmem:[#allocation35_spill] sm:$0xff] %v4941_v10 }
 0x3e8   :  { %v1483_v29 = vadd.f32 %v3399_v58, %v1482_v28 }
 0x3e9   :  { %3400 = vtanh.f32 %v747_v7  ;;  %v390_v7 = vpack.c.bf16 %v246_v12, %v245_v45  ;;  %v341_v12 = vpack.c.bf16 %v148_v2, %v147_v35 }
 0x3eb   :  { %1038 = vmatmul.bf16.gmra.mxu2 %v390_v7 }
 0x3ee   :  { %v749_v61 = vpop.f32.mrf.mxu0  ;;  %v4950_v28 = vpop.f32.mrf.mxu2 }
 0x3ef   :  { %v3401_v16 = vpop.eup %3400  ;;  %v750_v25 = vadd.f32 %v4497_v48, %v749_v61  ;;  %7603 = vst [vmem:[#allocation36_spill] sm:$0xff] %v4950_v28  ;;  %v4970_v61 = vld [vmem:[%s7563_s2] ss:$0 sm:$0xff] }
 0x3f0   :  { %v1484_v26 = vadd.f32 %v3401_v16, %v1483_v29  ;;  %v247_v29 = vld [vmem:[%s7564_s0 + $0x700] sm:$0xff] }
 0x3f1   :  { %3402 = vtanh.f32 %v750_v25  ;;  %788 = vmatmul.bf16.gmra.mxu0 %v340_v55 }
 0x3f6   :  { %v751_v52 = vpop.f32.mrf.mxu0  ;;  %v4959_v45 = vpop.f32.mrf.mxu2 }
 0x3f7   :  { %v3403_v58 = vpop.eup %3402  ;;  %v752_v10 = vadd.f32 %v4497_v48, %v751_v52  ;;  %7604 = vst [vmem:[#allocation37_spill] sm:$0xff] %v4959_v45  ;;  %v248_v48 = vld [vmem:[%s7564_s0 + $0x708] sm:$0xff] }
 0x3f8   :  { %v1485_v46 = vadd.f32 %v3403_v58, %v1484_v26 }
 0x3f9   :  { %3404 = vtanh.f32 %v752_v10  ;;  %v391_v10 = vpack.c.bf16 %v248_v48, %v247_v29  ;;  %v149_v29 = vld [vmem:[%s7564_s0 + $0x3f0] sm:$0xff]  ;;  %v150_v48 = vld [vmem:[%s7564_s0 + $0x3f8] sm:$0xff] }
 0x3fb   :  { %1043 = vmatmul.bf16.gmra.mxu2 %v391_v10 }
 0x3fe   :  { %v754_v55 = vpop.f32.mrf.mxu0  ;;  %v4973_v26 = vpop.f32.mrf.mxu2 }
 0x3ff   :  { %v3405_v7 = vpop.eup %3404  ;;  %v755_v16 = vadd.f32 %v4970_v61, %v754_v55  ;;  %7605 = vst [vmem:[#allocation38_spill] sm:$0xff] %v4973_v26  ;;  %v342_v55 = vpack.c.bf16 %v150_v48, %v149_v29  ;;  %v151_v29 = vld [vmem:[%s7564_s0 + $0x400] sm:$0xff]  ;;  %v152_v48 = vld [vmem:[%s7564_s0 + $0x408] sm:$0xff] }
 0x400   :  { %v1486_v25 = vadd.f32 %v3405_v7, %v1485_v46  ;;  %v249_v46 = vld [vmem:[%s7564_s0 + $0x710] sm:$0xff] }
 0x401   :  { %3406 = vtanh.f32 %v755_v16  ;;  %793 = vmatmul.bf16.gmra.mxu0 %v341_v12  ;;  %v250_v12 = vld [vmem:[%s7564_s0 + $0x718] sm:$0xff] }
 0x402   :  { %v392_v7 = vpack.c.bf16 %v250_v12, %v249_v46 }
 0x406   :  { %v756_v52 = vpop.f32.mrf.mxu0  ;;  %v4982_v10 = vpop.f32.mrf.mxu2 }
 0x407   :  { %v3407_v58 = vpop.eup %3406  ;;  %v757_v35 = vadd.f32 %v4970_v61, %v756_v52  ;;  %7606 = vst [vmem:[#allocation39_spill] sm:$0xff] %v4982_v10 }
 0x408   :  { %v1487_v2 = vadd.f32 %v3407_v58, %v1486_v25 }
 0x409   :  { %3408 = vtanh.f32 %v757_v35 }
 0x40b   :  { %1048 = vmatmul.bf16.gmra.mxu2 %v392_v7 }
 0x40e   :  { %v759_v16 = vpop.f32.mrf.mxu0  ;;  %v4991_v35 = vpop.f32.mrf.mxu2 }
 0x40f   :  { %v3409_v25 = vpop.eup %3408  ;;  %v760_v52 = vadd.f32 %v4970_v61, %v759_v16  ;;  %7607 = vst [vmem:[#allocation40_spill] sm:$0xff] %v4991_v35 }
 0x410   :  { %v1488_v58 = vadd.f32 %v3409_v25, %v1487_v2  ;;  %v251_v2 = vld [vmem:[%s7564_s0 + $0x720] sm:$0xff] }
 0x411   :  { %3410 = vtanh.f32 %v760_v52  ;;  %798 = vmatmul.bf16.gmra.mxu0 %v342_v55 }
 0x416   :  { %v761_v10 = vpop.f32.mrf.mxu0  ;;  %v5000_v46 = vpop.f32.mrf.mxu2 }
 0x417   :  { %v3411_v26 = vpop.eup %3410  ;;  %v762_v45 = vadd.f32 %v4970_v61, %v761_v10  ;;  %7608 = vst [vmem:[#allocation41_spill] sm:$0xff] %v5000_v46  ;;  %v252_v10 = vld [vmem:[%s7564_s0 + $0x728] sm:$0xff] }
 0x418   :  { %v1489_v28 = vadd.f32 %v3411_v26, %v1488_v58  ;;  %v343_v26 = vpack.c.bf16 %v152_v48, %v151_v29  ;;  %v253_v29 = vld [vmem:[%s7564_s0 + $0x730] sm:$0xff] }
 0x419   :  { %3412 = vtanh.f32 %v762_v45  ;;  %v393_v45 = vpack.c.bf16 %v252_v10, %v251_v2 }
 0x41b   :  { %1053 = vmatmul.bf16.gmra.mxu2 %v393_v45 }
 0x41e   :  { %v764_v12 = vpop.f32.mrf.mxu0  ;;  %v5009_v25 = vpop.f32.mrf.mxu2 }
 0x41f   :  { %v3413_v55 = vpop.eup %3412  ;;  %v765_v7 = vadd.f32 %v4970_v61, %v764_v12  ;;  %7609 = vst [vmem:[#allocation42_spill] sm:$0xff] %v5009_v25 }
 0x420   :  { %v1490_v16 = vadd.f32 %v3413_v55, %v1489_v28  ;;  %v254_v28 = vld [vmem:[%s7564_s0 + $0x738] sm:$0xff] }
 0x421   :  { %3414 = vtanh.f32 %v765_v7  ;;  %803 = vmatmul.bf16.gmra.mxu0 %v343_v26  ;;  %v394_v48 = vpack.c.bf16 %v254_v28, %v253_v29  ;;  %v256_v29 = vld [vmem:[%s7564_s0 + $0x748] sm:$0xff] }
 0x426   :  { %v766_v52 = vpop.f32.mrf.mxu0  ;;  %v5012_v38 = vpop.f32.mrf.mxu2 }
 0x427   :  { %v3415_v58 = vpop.eup %3414  ;;  %v767_v46 = vadd.f32 %v4970_v61, %v766_v52  ;;  %7610 = vst [vmem:[#allocation43_spill] sm:$0xff] %v5012_v38 }
 0x428   :  { %v1491_v35 = vadd.f32 %v3415_v58, %v1490_v16  ;;  %v255_v58 = vld [vmem:[%s7564_s0 + $0x740] sm:$0xff] }
 0x429   :  { %3416 = vtanh.f32 %v767_v46 }
 0x42b   :  { %1058 = vmatmul.bf16.gmra.mxu2 %v394_v48 }
 0x42e   :  { %v769_v2 = vpop.f32.mrf.mxu0  ;;  %v5021_v12 = vpop.f32.mrf.mxu2 }
 0x42f   :  { %v3417_v10 = vpop.eup %3416  ;;  %v770_v26 = vadd.f32 %v4970_v61, %v769_v2  ;;  %7611 = vst [vmem:[#allocation44_spill] sm:$0xff] %v5021_v12 }
 0x430   :  { %v1492_v45 = vadd.f32 %v3417_v10, %v1491_v35  ;;  %v395_v35 = vpack.c.bf16 %v256_v29, %v255_v58  ;;  %v257_v58 = vld [vmem:[%s7564_s0 + $0x750] sm:$0xff]  ;;  %v258_v29 = vld [vmem:[%s7564_s0 + $0x758] sm:$0xff] }
 0x431   :  { %3418 = vtanh.f32 %v770_v26 }
 0x436   :  { %v771_v46 = vpop.f32.mrf.mxu0  ;;  %v5024_v52 = vpop.f32.mrf.mxu2 }
 0x437   :  { %v3419_v55 = vpop.eup %3418  ;;  %v772_v7 = vadd.f32 %v4970_v61, %v771_v46  ;;  %7612 = vst [vmem:[#allocation45_spill] sm:$0xff] %v5024_v52 }
 0x438   :  { %v1493_v16 = vadd.f32 %v3419_v55, %v1492_v45 }
 0x439   :  { %3420 = vtanh.f32 %v772_v7 }
 0x43b   :  { %1063 = vmatmul.bf16.gmra.mxu2 %v395_v35 }
 0x43e   :  { %v774_v28 = vpop.f32.mrf.mxu0  ;;  %v5033_v26 = vpop.f32.mrf.mxu2 }
 0x43f   :  { %v3421_v48 = vpop.eup %3420  ;;  %v775_v2 = vadd.f32 %v4970_v61, %v774_v28  ;;  %7613 = vst [vmem:[#allocation46_spill] sm:$0xff] %v5033_v26  ;;  %v259_v26 = vld [vmem:[%s7564_s0 + $0x760] sm:$0xff] }
 0x440   :  { %v1494_v10 = vadd.f32 %v3421_v48, %v1493_v16  ;;  %v396_v16 = vpack.c.bf16 %v258_v29, %v257_v58  ;;  %v260_v58 = vld [vmem:[%s7564_s0 + $0x768] sm:$0xff] }
 0x441   :  { %3422 = vtanh.f32 %v775_v2  ;;  %v397_v29 = vpack.c.bf16 %v260_v58, %v259_v26 }
 0x446   :  { %v776_v45 = vpop.f32.mrf.mxu0  ;;  %v5036_v52 = vpop.f32.mrf.mxu2 }
 0x447   :  { %v3423_v46 = vpop.eup %3422  ;;  %v777_v55 = vadd.f32 %v4970_v61, %v776_v45  ;;  %7614 = vst [vmem:[#allocation47_spill] sm:$0xff] %v5036_v52 }
 0x448   :  { %v1495_v7 = vadd.f32 %v3423_v46, %v1494_v10 }
 0x449   :  { %3424 = vtanh.f32 %v777_v55 }
 0x44b   :  { %1068 = vmatmul.bf16.gmra.mxu2 %v396_v16 }
 0x44e   :  { %v779_v35 = vpop.f32.mrf.mxu0  ;;  %v5045_v10 = vpop.f32.mrf.mxu2 }
 0x44f   :  { %v3425_v28 = vpop.eup %3424  ;;  %v780_v48 = vadd.f32 %v4970_v61, %v779_v35  ;;  %7615 = vst [vmem:[#allocation48_spill] sm:$0xff] %v5045_v10 }
 0x450   :  { %v1496_v2 = vadd.f32 %v3425_v28, %v1495_v7 }
 0x451   :  { %3426 = vtanh.f32 %v780_v48  ;;  %v261_v48 = vld [vmem:[%s7564_s0 + $0x770] sm:$0xff] }
 0x456   :  { %v781_v45 = vpop.f32.mrf.mxu0  ;;  %v5047_v52 = vpop.f32.mrf.mxu2 }
 0x457   :  { %v3427_v46 = vpop.eup %3426  ;;  %7616 = vst [vmem:[#allocation49_spill] sm:$0xff] %v5047_v52  ;;  %v782_v9 = vadd.f32 %v4970_v61, %v781_v45 }
 0x458   :  { %v1497_v55 = vadd.f32 %v3427_v46, %v1496_v2  ;;  %v262_v2 = vld [vmem:[%s7564_s0 + $0x778] sm:$0xff] }
 0x459   :  { %v398_v46 = vpack.c.bf16 %v262_v2, %v261_v48  ;;  %3428 = vtanh.f32 %v782_v9 }
 0x45b   :  { %1073 = vmatmul.bf16.gmra.mxu2 %v397_v29  ;;  %v263_v29 = vld [vmem:[%s7564_s0 + $0x780] sm:$0xff] }
 0x45e   :  { %v784_v35 = vpop.f32.mrf.mxu0  ;;  %v5055_v7 = vpop.f32.mrf.mxu2 }
 0x45f   :  { %7617 = vst [vmem:[#allocation50_spill] sm:$0xff] %v5055_v7  ;;  %v3429_v23 = vpop.eup %3428 }
 0x460   :  { %v1498_v9 = vadd.f32 %v3429_v23, %v1497_v55 }
 0x466   :  { %v786_v16 = vpop.f32.mrf.mxu0  ;;  %v5057_v28 = vpop.f32.mrf.mxu2 }
 0x467   :  { %7618 = vst [vmem:[#allocation51_spill] sm:$0xff] %v5057_v28  ;;  %v264_v28 = vld [vmem:[%s7564_s0 + $0x788] sm:$0xff] }
 0x468   :  { %v399_v7 = vpack.c.bf16 %v264_v28, %v263_v29  ;;  %v787_v29 = vadd.f32 %v4970_v61, %v786_v16  ;;  %v267_v16 = vld [vmem:[%s7564_s0 + $0x7a0] sm:$0xff] }
 0x46b   :  { %1078 = vmatmul.bf16.gmra.mxu2 %v398_v46  ;;  %v265_v46 = vld [vmem:[%s7564_s0 + $0x790] sm:$0xff] }
 0x46e   :  { %v789_v52 = vpop.f32.mrf.mxu0  ;;  %v5065_v10 = vpop.f32.mrf.mxu2 }
 0x46f   :  { %7619 = vst [vmem:[#allocation52_spill] sm:$0xff] %v5065_v10 }
 0x476   :  { %v791_v26 = vpop.f32.mrf.mxu0  ;;  %v5067_v58 = vpop.f32.mrf.mxu2 }
 0x477   :  { %7620 = vst [vmem:[#allocation53_spill] sm:$0xff] %v5067_v58  ;;  %v266_v58 = vld [vmem:[%s7564_s0 + $0x798] sm:$0xff]  ;;  %v792_v36 = vadd.f32 %v4970_v61, %v791_v26 }
 0x478   :  { %v400_v10 = vpack.c.bf16 %v266_v58, %v265_v46 }
 0x47b   :  { %1083 = vmatmul.bf16.gmra.mxu2 %v399_v7  ;;  %v785_v7 = vadd.f32 %v4970_v61, %v784_v35 }
 0x47d   :  { %3430 = vtanh.f32 %v785_v7 }
 0x47e   :  { %v794_v12 = vpop.f32.mrf.mxu0  ;;  %v5075_v38 = vpop.f32.mrf.mxu2  ;;  %3432 = vtanh.f32 %v787_v29 }
 0x47f   :  { %7621 = vst [vmem:[#allocation54_spill] sm:$0xff] %v5075_v38  ;;  %v795_v58 = vadd.f32 %v4970_v61, %v794_v12 }
 0x486   :  { %v796_v48 = vpop.f32.mrf.mxu0  ;;  %v5077_v2 = vpop.f32.mrf.mxu2 }
 0x487   :  { %7622 = vst [vmem:[#allocation55_spill] sm:$0xff] %v5077_v2  ;;  %v790_v2 = vadd.f32 %v4970_v61, %v789_v52  ;;  %v797_v35 = vadd.f32 %v4970_v61, %v796_v48  ;;  %v268_v52 = vld [vmem:[%s7564_s0 + $0x7a8] sm:$0xff] }
 0x488   :  { %v401_v12 = vpack.c.bf16 %v268_v52, %v267_v16 }
 0x489   :  { %3434 = vtanh.f32 %v790_v2 }
 0x48a   :  { %3436 = vtanh.f32 %v792_v36 }
 0x48b   :  { %1088 = vmatmul.bf16.gmra.mxu2 %v400_v10  ;;  %v3431_v10 = vpop.eup %3430  ;;  %3438 = vtanh.f32 %v795_v58 }
 0x48c   :  { %v3433_v26 = vpop.eup %3432  ;;  %v1499_v46 = vadd.f32 %v3431_v10, %v1498_v9  ;;  %3440 = vtanh.f32 %v797_v35 }
 0x48e   :  { %v799_v25 = vpop.f32.mrf.mxu0  ;;  %v5087_v28 = vpop.f32.mrf.mxu2  ;;  %v1500_v23 = vadd.f32 %v3433_v26, %v1499_v46 }
 0x48f   :  { %7623 = vst [vmem:[#allocation56_spill] sm:$0xff] %v5087_v28  ;;  %v800_v2 = vadd.f32 %v4970_v61, %v799_v25  ;;  %v3435_v29 = vpop.eup %3434 }
 0x490   :  { %v3437_v55 = vpop.eup %3436 }
 0x491   :  { %3442 = vtanh.f32 %v800_v2  ;;  %v3439_v62 = vpop.eup %3438  ;;  %v812_v2 = vadd.f32 %v4970_v61, %v4267_v47  ;;  %v817_v47 = vadd.f32 %v4970_v61, %v4285_v63  ;;  %v825_v63 = vadd.f32 %v4970_v61, %v4312_v24 }
 0x492   :  { %v3441_v25 = vpop.eup %3440 }
 0x496   :  { %v801_v38 = vpop.f32.mrf.mxu0  ;;  %v5093_v45 = vpop.f32.mrf.mxu2 }
 0x497   :  { %7624 = vst [vmem:[#allocation57_spill] sm:$0xff] %v5093_v45  ;;  %v802_v36 = vadd.f32 %v4970_v61, %v801_v38  ;;  %v1501_v45 = vadd.f32 %v3435_v29, %v1500_v23  ;;  %v3443_v16 = vpop.eup %3442  ;;  %v810_v38 = vadd.f32 %v4970_v61, %v4258_v40  ;;  %v269_v40 = vld [vmem:[%s7564_s0 + $0x7b0] sm:$0xff]  ;;  %v270_v29 = vld [vmem:[%s7564_s0 + $0x7b8] sm:$0xff] }
 0x499   :  { %3444 = vtanh.f32 %v802_v36  ;;  %v1502_v58 = vadd.f32 %v3437_v55, %v1501_v45  ;;  %v402_v36 = vpack.c.bf16 %v270_v29, %v269_v40  ;;  %v271_v29 = vld [vmem:[%s7564_s0 + $0x7c0] sm:$0xff] }
 0x49b   :  { %1093 = vmatmul.bf16.gmra.mxu2 %v401_v12  ;;  %v1503_v10 = vadd.f32 %v3439_v62, %v1502_v58  ;;  %v815_v62 = vadd.f32 %v4970_v61, %v4276_v56  ;;  %v820_v56 = vadd.f32 %v4970_v61, %v4294_v8  ;;  %v827_v8 = vadd.f32 %v4970_v61, %v4321_v31 }
 0x49c   :  { %v835_v31 = vadd.f32 %v4970_v61, %v4348_v60  ;;  %v840_v60 = vadd.f32 %v4970_v61, %v4366_v14  ;;  %v847_v14 = vadd.f32 %v4970_v61, %v4393_v43  ;;  %v855_v43 = vadd.f32 %v4970_v61, %v4420_v11 }
 0x49d   :  { %v1504_v52 = vadd.f32 %v3441_v25, %v1503_v10  ;;  %v822_v25 = vadd.f32 %v4970_v61, %v4303_v15  ;;  %v830_v15 = vadd.f32 %v4970_v61, %v4330_v42  ;;  %v272_v42 = vld [vmem:[%s7564_s0 + $0x7c8] sm:$0xff]  ;;  %v860_v11 = vadd.f32 %v4970_v61, %v4438_v32 }
 0x49e   :  { %v804_v7 = vpop.f32.mrf.mxu0  ;;  %v5105_v28 = vpop.f32.mrf.mxu2  ;;  %v867_v32 = vadd.f32 %v4970_v61, %v4465_v3  ;;  %v875_v3 = vadd.f32 %v4970_v61, %v4492_v41  ;;  %v880_v41 = vadd.f32 %v4970_v61, %v4515_v6  ;;  %v887_v6 = vadd.f32 %v4970_v61, %v4542_v49 }
 0x49f   :  { %v805_v48 = vadd.f32 %v4970_v61, %v804_v7  ;;  %v3445_v26 = vpop.eup %3444  ;;  %v1505_v12 = vadd.f32 %v3443_v16, %v1504_v52  ;;  %v895_v49 = vadd.f32 %v4970_v61, %v4569_v30  ;;  %v900_v30 = vadd.f32 %v4970_v61, %v4587_v5 }
 0x4a0   :  { %v907_v5 = vadd.f32 %v4970_v61, %v4614_v59 }
 0x4a1   :  { %3446 = vtanh.f32 %v805_v48  ;;  %v1506_v7 = vadd.f32 %v3445_v26, %v1505_v12 }
 0x4a6   :  { %v806_v9 = vpop.f32.mrf.mxu0  ;;  %v5112_v46 = vpop.f32.mrf.mxu2 }
 0x4a7   :  { %v807_v35 = vadd.f32 %v4970_v61, %v806_v9  ;;  %v3447_v45 = vpop.eup %3446 }
 0x4a8   :  { %v1507_v23 = vadd.f32 %v3447_v45, %v1506_v7  ;;  %v832_v45 = vadd.f32 %v4970_v61, %v4339_v50  ;;  %v837_v50 = vadd.f32 %v4970_v61, %v4357_v4  ;;  %v845_v4 = vadd.f32 %v4970_v61, %v4384_v33 }
 0x4a9   :  { %3448 = vtanh.f32 %v807_v35 }
 0x4aa   :  { %3450 = vtanh.f32 %v810_v38 }
 0x4ab   :  { %3452 = vtanh.f32 %v812_v2  ;;  %1098 = vmatmul.bf16.gmra.mxu2 %v402_v36  ;;  %v403_v36 = vpack.c.bf16 %v272_v42, %v271_v29 }
 0x4ac   :  { %3454 = vtanh.f32 %v815_v62 }
 0x4ad   :  { %3456 = vtanh.f32 %v817_v47 }
 0x4ae   :  { %v5128_v9 = vpop.f32.mrf.mxu2  ;;  %3458 = vtanh.f32 %v820_v56 }
 0x4af   :  { %v3449_v55 = vpop.eup %3448  ;;  %3460 = vtanh.f32 %v822_v25 }
 0x4b0   :  { %v1508_v48 = vadd.f32 %v3449_v55, %v1507_v23  ;;  %v3451_v58 = vpop.eup %3450  ;;  %3462 = vtanh.f32 %v825_v63 }
 0x4b1   :  { %v3453_v16 = vpop.eup %3452  ;;  %3464 = vtanh.f32 %v827_v8 }
 0x4b2   :  { %v1509_v10 = vadd.f32 %v3451_v58, %v1508_v48  ;;  %v3455_v35 = vpop.eup %3454  ;;  %3466 = vtanh.f32 %v830_v15  ;;  %v842_v58 = vadd.f32 %v4970_v61, %v4375_v22  ;;  %v850_v22 = vadd.f32 %v4970_v61, %v4402_v54  ;;  %v274_v54 = vld [vmem:[%s7564_s0 + $0x7d8] sm:$0xff] }
 0x4b3   :  { %v3457_v26 = vpop.eup %3456  ;;  %3468 = vtanh.f32 %v832_v45  ;;  %v852_v15 = vadd.f32 %v4970_v61, %v4411_v0  ;;  %v857_v0 = vadd.f32 %v4970_v61, %v4429_v20  ;;  %v865_v20 = vadd.f32 %v4970_v61, %v4456_v57 }
 0x4b4   :  { %v1510_v38 = vadd.f32 %v3453_v16, %v1509_v10  ;;  %v3459_v12 = vpop.eup %3458  ;;  %3470 = vtanh.f32 %v835_v31 }
 0x4b5   :  { %v3461_v7 = vpop.eup %3460  ;;  %3472 = vtanh.f32 %v837_v50  ;;  %v862_v50 = vadd.f32 %v4970_v61, %v4447_v44  ;;  %v870_v44 = vadd.f32 %v4970_v61, %v4474_v17  ;;  %v276_v17 = vld [vmem:[%s7564_s0 + $0x7e8] sm:$0xff] }
 0x4b6   :  { %v1511_v52 = vadd.f32 %v3455_v35, %v1510_v38  ;;  %v5138_v24 = vpop.f32.mrf.mxu2  ;;  %v3463_v47 = vpop.eup %3462  ;;  %3474 = vtanh.f32 %v840_v60 }
 0x4b7   :  { %v3465_v55 = vpop.eup %3464  ;;  %3476 = vtanh.f32 %v842_v58 }
 0x4b8   :  { %v1512_v2 = vadd.f32 %v3457_v26, %v1511_v52  ;;  %v3467_v48 = vpop.eup %3466  ;;  %3478 = vtanh.f32 %v845_v4  ;;  %v872_v4 = vadd.f32 %v4970_v61, %v4483_v27  ;;  %v877_v27 = vadd.f32 %v4970_v61, %v4506_v53 }
 0x4b9   :  { %v3469_v16 = vpop.eup %3468  ;;  %3480 = vtanh.f32 %v847_v14  ;;  %v885_v53 = vadd.f32 %v4970_v61, %v4533_v34 }
 0x4ba   :  { %v1513_v62 = vadd.f32 %v3459_v12, %v1512_v2  ;;  %v3471_v38 = vpop.eup %3470  ;;  %3482 = vtanh.f32 %v850_v22 }
 0x4bb   :  { %1103 = vmatmul.bf16.gmra.mxu2 %v403_v36  ;;  %v3473_v8 = vpop.eup %3472  ;;  %3484 = vtanh.f32 %v852_v15 }
 0x4bc   :  { %v1514_v40 = vadd.f32 %v3461_v7, %v1513_v62  ;;  %v3475_v26 = vpop.eup %3474  ;;  %v273_v62 = vld [vmem:[%s7564_s0 + $0x7d0] sm:$0xff]  ;;  %3486 = vtanh.f32 %v855_v43 }
 0x4bd   :  { %v3477_v12 = vpop.eup %3476  ;;  %v404_v31 = vpack.c.bf16 %v274_v54, %v273_v62  ;;  %3488 = vtanh.f32 %v857_v0 }
 0x4be   :  { %v1515_v23 = vadd.f32 %v3463_v47, %v1514_v40  ;;  %v5154_v10 = vpop.f32.mrf.mxu2  ;;  %v3479_v7 = vpop.eup %3478  ;;  %3490 = vtanh.f32 %v860_v11  ;;  %v892_v11 = vadd.f32 %v4970_v61, %v4560_v13  ;;  %v897_v13 = vadd.f32 %v4970_v61, %v4578_v51 }
 0x4bf   :  { %v3481_v29 = vpop.eup %3480  ;;  %3492 = vtanh.f32 %v862_v50  ;;  %v905_v51 = vadd.f32 %v4970_v61, %v4605_v39  ;;  %v912_v39 = vadd.f32 %v4970_v61, %v4632_v37 }
 0x4c0   :  { %v1516_v56 = vadd.f32 %v3465_v55, %v1515_v23  ;;  %v3483_v47 = vpop.eup %3482  ;;  %3494 = vtanh.f32 %v865_v20 }
 0x4c1   :  { %v3485_v55 = vpop.eup %3484  ;;  %3496 = vtanh.f32 %v867_v32 }
 0x4c2   :  { %v1517_v25 = vadd.f32 %v3467_v48, %v1516_v56  ;;  %v3487_v56 = vpop.eup %3486  ;;  %3498 = vtanh.f32 %v870_v44 }
 0x4c3   :  { %v3489_v58 = vpop.eup %3488  ;;  %3500 = vtanh.f32 %v872_v4 }
 0x4c4   :  { %v1518_v63 = vadd.f32 %v3469_v16, %v1517_v25  ;;  %v3491_v16 = vpop.eup %3490  ;;  %3502 = vtanh.f32 %v875_v3 }
 0x4c5   :  { %3504 = vtanh.f32 %v877_v27  ;;  %v7625_v27 = vld [vmem:[#allocation2_spill] sm:$0xff] }
 0x4c6   :  { %v1519_v35 = vadd.f32 %v3471_v38, %v1518_v63  ;;  %v5164_v33 = vpop.f32.mrf.mxu2  ;;  %v3493_v38 = vpop.eup %3492  ;;  %3506 = vtanh.f32 %v880_v41 }
 0x4c8   :  { %v1520_v52 = vadd.f32 %v3473_v8, %v1519_v35  ;;  %v275_v35 = vld [vmem:[%s7564_s0 + $0x7e0] sm:$0xff]  ;;  %v3495_v8 = vpop.eup %3494 }
 0x4c9   :  { %v405_v22 = vpack.c.bf16 %v276_v17, %v275_v35 }
 0x4ca   :  { %v1521_v2 = vadd.f32 %v3475_v26, %v1520_v52  ;;  %v3497_v26 = vpop.eup %3496 }
 0x4cb   :  { %1108 = vmatmul.bf16.gmra.mxu2 %v404_v31 }
 0x4cc   :  { %v1522_v45 = vadd.f32 %v3477_v12, %v1521_v2  ;;  %v3499_v2 = vpop.eup %3498  ;;  %v882_v12 = vadd.f32 %v4970_v61, %v4524_v18  ;;  %v890_v18 = vadd.f32 %v4970_v61, %v4551_v1  ;;  %v278_v1 = vld [vmem:[%s7564_s0 + $0x7f8] sm:$0xff] }
 0x4cd   :  { %v3501_v62 = vpop.eup %3500 }
 0x4ce   :  { %v1523_v40 = vadd.f32 %v3479_v7, %v1522_v45  ;;  %v5180_v23 = vpop.f32.mrf.mxu2  ;;  %v3503_v7 = vpop.eup %3502  ;;  %3508 = vtanh.f32 %v882_v12  ;;  %v7627_v12 = vld [vmem:[#allocation4_spill] sm:$0xff] }
 0x4cf   :  { %v3505_v31 = vpop.eup %3504  ;;  %3510 = vtanh.f32 %v885_v53  ;;  %v920_v37 = vadd.f32 %v4970_v61, %v7627_v12  ;;  %v7628_v53 = vld [vmem:[#allocation5_spill] sm:$0xff] }
 0x4d0   :  { %v1524_v42 = vadd.f32 %v3481_v29, %v1523_v40  ;;  %v3507_v29 = vpop.eup %3506  ;;  %3512 = vtanh.f32 %v887_v6 }
 0x4d1   :  { %3514 = vtanh.f32 %v890_v18 }
 0x4d2   :  { %v1525_v36 = vadd.f32 %v3483_v47, %v1524_v42  ;;  %3516 = vtanh.f32 %v892_v11 }
 0x4d3   :  { %3518 = vtanh.f32 %v895_v49  ;;  %v7631_v49 = vld [vmem:[#allocation8_spill] sm:$0xff] }
 0x4d4   :  { %v1526_v60 = vadd.f32 %v3485_v55, %v1525_v36  ;;  %v3509_v47 = vpop.eup %3508  ;;  %v277_v36 = vld [vmem:[%s7564_s0 + $0x7f0] sm:$0xff]  ;;  %3520 = vtanh.f32 %v897_v13  ;;  %v7632_v13 = vld [vmem:[#allocation9_spill] sm:$0xff] }
 0x4d5   :  { %v3511_v55 = vpop.eup %3510  ;;  %v406_v20 = vpack.c.bf16 %v278_v1, %v277_v36  ;;  %3522 = vtanh.f32 %v900_v30  ;;  %v7633_v30 = vld [vmem:[#allocation10_spill] sm:$0xff] }
 0x4d6   :  { %v1527_v48 = vadd.f32 %v3487_v56, %v1526_v60  ;;  %v5190_v57 = vpop.f32.mrf.mxu2  ;;  %v3513_v56 = vpop.eup %3512 }
 0x4d8   :  { %v1528_v25 = vadd.f32 %v3489_v58, %v1527_v48  ;;  %v3515_v48 = vpop.eup %3514  ;;  %v902_v58 = vadd.f32 %v4970_v61, %v4596_v21  ;;  %v910_v21 = vadd.f32 %v4970_v61, %v4623_v19 }
 0x4da   :  { %v1529_v63 = vadd.f32 %v3491_v16, %v1528_v25  ;;  %v3517_v25 = vpop.eup %3516  ;;  %3524 = vtanh.f32 %v902_v58 }
 0x4db   :  { %1113 = vmatmul.bf16.gmra.mxu2 %v405_v22  ;;  %3526 = vtanh.f32 %v905_v51  ;;  %v915_v22 = vadd.f32 %v4970_v61, %v7625_v27 }
 0x4dc   :  { %v1530_v14 = vadd.f32 %v3493_v38, %v1529_v63  ;;  %v3519_v63 = vpop.eup %3518  ;;  %3528 = vtanh.f32 %v907_v5 }
 0x4dd   :  { %v3521_v3 = vpop.eup %3520  ;;  %3530 = vtanh.f32 %v910_v21  ;;  %v7636_v21 = vld [vmem:[#allocation13_spill] sm:$0xff] }
 0x4de   :  { %v1531_v52 = vadd.f32 %v3495_v8, %v1530_v14  ;;  %v5206_v45 = vpop.f32.mrf.mxu2  ;;  %v3523_v35 = vpop.eup %3522  ;;  %3532 = vtanh.f32 %v912_v39 }
 0x4df   :  { %3534 = vtanh.f32 %v915_v22 }
 0x4e0   :  { %v1532_v15 = vadd.f32 %v3497_v26, %v1531_v52  ;;  %v3525_v8 = vpop.eup %3524  ;;  %v7626_v26 = vld [vmem:[#allocation3_spill] sm:$0xff] }
 0x4e1   :  { %v3527_v59 = vpop.eup %3526  ;;  %v917_v41 = vadd.f32 %v4970_v61, %v7626_v26 }
 0x4e2   :  { %v1533_v43 = vadd.f32 %v3499_v2, %v1532_v15  ;;  %v3529_v2 = vpop.eup %3528 }
 0x4e3   :  { %3536 = vtanh.f32 %v917_v41 }
 0x4e4   :  { %v1534_v54 = vadd.f32 %v3501_v62, %v1533_v43  ;;  %v3531_v62 = vpop.eup %3530  ;;  %3538 = vtanh.f32 %v920_v37 }
 0x4e5   :  { %v3533_v6 = vpop.eup %3532 }
 0x4e6   :  { %v1535_v0 = vadd.f32 %v3503_v7, %v1534_v54  ;;  %v5216_v34 = vpop.f32.mrf.mxu2  ;;  %v922_v54 = vadd.f32 %v4970_v61, %v7628_v53 }
 0x4e8   :  { %v1536_v40 = vadd.f32 %v3505_v31, %v1535_v0  ;;  %v7629_v0 = vld [vmem:[#allocation6_spill] sm:$0xff]  ;;  %3540 = vtanh.f32 %v922_v54 }
 0x4e9   :  { %v925_v31 = vadd.f32 %v4970_v61, %v7629_v0 }
 0x4ea   :  { %v1537_v42 = vadd.f32 %v3507_v29, %v1536_v40  ;;  %v3535_v40 = vpop.eup %3534  ;;  %v7630_v29 = vld [vmem:[#allocation7_spill] sm:$0xff] }
 0x4eb   :  { %1118 = vmatmul.bf16.gmra.mxu2 %v406_v20  ;;  %v927_v11 = vadd.f32 %v4970_v61, %v7630_v29  ;;  %3542 = vtanh.f32 %v925_v31  ;;  %v932_v20 = vadd.f32 %v4970_v61, %v7632_v13  ;;  %v7642_v29 = vld [vmem:[#allocation19_spill] sm:$0xff]  ;;  %v7644_v13 = vld [vmem:[#allocation21_spill] sm:$0xff] }
 0x4ec   :  { %v1538_v50 = vadd.f32 %v3509_v47, %v1537_v42  ;;  %v3537_v47 = vpop.eup %3536 }
 0x4ed   :  { %3544 = vtanh.f32 %v927_v11  ;;  %v957_v11 = vadd.f32 %v4970_v61, %v7642_v29 }
 0x4ee   :  { %v1539_v60 = vadd.f32 %v3511_v55, %v1538_v50  ;;  %v5234_v4 = vpop.f32.mrf.mxu2  ;;  %v930_v50 = vadd.f32 %v4970_v61, %v7631_v49  ;;  %v3539_v55 = vpop.eup %3538  ;;  %v7643_v49 = vld [vmem:[#allocation20_spill] sm:$0xff] }
 0x4f0   :  { %v1540_v32 = vadd.f32 %v3513_v56, %v1539_v60  ;;  %v3541_v56 = vpop.eup %3540  ;;  %3546 = vtanh.f32 %v930_v50  ;;  %v960_v50 = vadd.f32 %v4970_v61, %v7643_v49 }
 0x4f1   :  { %v3543_v58 = vpop.eup %3542  ;;  %3548 = vtanh.f32 %v932_v20  ;;  %v962_v20 = vadd.f32 %v4970_v61, %v7644_v13 }
 0x4f2   :  { %v1541_v44 = vadd.f32 %v3515_v48, %v1540_v32  ;;  %v935_v32 = vadd.f32 %v4970_v61, %v7633_v30  ;;  %v7645_v30 = vld [vmem:[#allocation22_spill] sm:$0xff] }
 0x4f4   :  { %v1542_v16 = vadd.f32 %v3517_v25, %v1541_v44  ;;  %v7634_v44 = vld [vmem:[#allocation11_spill] sm:$0xff]  ;;  %3550 = vtanh.f32 %v935_v32  ;;  %v965_v32 = vadd.f32 %v4970_v61, %v7645_v30 }
 0x4f5   :  { %v937_v25 = vadd.f32 %v4970_v61, %v7634_v44  ;;  %v7646_v44 = vld [vmem:[#allocation23_spill] sm:$0xff] }
 0x4f6   :  { %v1543_v38 = vadd.f32 %v3519_v63, %v1542_v16  ;;  %v5246_v19 = vpop.f32.mrf.mxu2  ;;  %v3545_v16 = vpop.eup %3544  ;;  %v7635_v63 = vld [vmem:[#allocation12_spill] sm:$0xff] }
 0x4f7   :  { %v940_v5 = vadd.f32 %v4970_v61, %v7635_v63  ;;  %3552 = vtanh.f32 %v937_v25  ;;  %v967_v25 = vadd.f32 %v4970_v61, %v7646_v44 }
 0x4f8   :  { %v1544_v14 = vadd.f32 %v3521_v3, %v1543_v38  ;;  %v3547_v3 = vpop.eup %3546 }
 0x4f9   :  { %3554 = vtanh.f32 %v940_v5  ;;  %v7647_v5 = vld [vmem:[#allocation24_spill] sm:$0xff] }
 0x4fa   :  { %v1545_v17 = vadd.f32 %v3523_v35, %v1544_v14  ;;  %v942_v14 = vadd.f32 %v4970_v61, %v7636_v21 }
 0x4fc   :  { %v1546_v52 = vadd.f32 %v3525_v8, %v1545_v17  ;;  %v3549_v17 = vpop.eup %3548  ;;  %v7637_v8 = vld [vmem:[#allocation14_spill] sm:$0xff]  ;;  %3556 = vtanh.f32 %v942_v14  ;;  %v7648_v14 = vld [vmem:[#allocation25_spill] sm:$0xff] }
 0x4fd   :  { %v945_v27 = vadd.f32 %v4970_v61, %v7637_v8 }
 0x4fe   :  { %v1547_v15 = vadd.f32 %v3527_v59, %v1546_v52  ;;  %v5258_v1 = vpop.f32.mrf.mxu2  ;;  %v3551_v52 = vpop.eup %3550  ;;  %v7638_v59 = vld [vmem:[#allocation15_spill] sm:$0xff] }
 0x4ff   :  { %v947_v26 = vadd.f32 %v4970_v61, %v7638_v59  ;;  %3558 = vtanh.f32 %v945_v27  ;;  %v7649_v27 = vld [vmem:[#allocation26_spill] sm:$0xff] }
 0x500   :  { %v1548_v43 = vadd.f32 %v3529_v2, %v1547_v15  ;;  %v3553_v15 = vpop.eup %3552  ;;  %v7639_v2 = vld [vmem:[#allocation16_spill] sm:$0xff] }
 0x501   :  { %v950_v12 = vadd.f32 %v4970_v61, %v7639_v2  ;;  %3560 = vtanh.f32 %v947_v26  ;;  %v7650_v26 = vld [vmem:[#allocation27_spill] sm:$0xff] }
 0x502   :  { %v1549_v7 = vadd.f32 %v3531_v62, %v1548_v43  ;;  %v3555_v43 = vpop.eup %3554  ;;  %v7640_v62 = vld [vmem:[#allocation17_spill] sm:$0xff] }
 0x503   :  { %v952_v53 = vadd.f32 %v4970_v61, %v7640_v62  ;;  %3562 = vtanh.f32 %v950_v12  ;;  %v7651_v12 = vld [vmem:[#allocation28_spill] sm:$0xff] }
 0x504   :  { %v1550_v18 = vadd.f32 %v3533_v6, %v1549_v7  ;;  %v3557_v7 = vpop.eup %3556  ;;  %v7641_v6 = vld [vmem:[#allocation18_spill] sm:$0xff] }
 0x505   :  { %v955_v0 = vadd.f32 %v4970_v61, %v7641_v6  ;;  %3564 = vtanh.f32 %v952_v53 }
 0x506   :  { %v1551_v42 = vadd.f32 %v3535_v40, %v1550_v18  ;;  %v5270_v39 = vpop.f32.mrf.mxu2  ;;  %v3559_v40 = vpop.eup %3558 }
 0x507   :  { %3566 = vtanh.f32 %v955_v0 }
 0x508   :  { %v1552_v36 = vadd.f32 %v3537_v47, %v1551_v42  ;;  %v3561_v47 = vpop.eup %3560  ;;  %3568 = vtanh.f32 %v957_v11 }
 0x509   :  { %3570 = vtanh.f32 %v960_v50 }
 0x50a   :  { %v1553_v60 = vadd.f32 %v3539_v55, %v1552_v36  ;;  %v3563_v55 = vpop.eup %3562  ;;  %3572 = vtanh.f32 %v962_v20 }
 0x50b   :  { %3574 = vtanh.f32 %v965_v32 }
 0x50c   :  { %v1554_v48 = vadd.f32 %v3541_v56, %v1553_v60  ;;  %v3565_v56 = vpop.eup %3564  ;;  %3576 = vtanh.f32 %v967_v25 }
 0x50e   :  { %v1555_v51 = vadd.f32 %v3543_v58, %v1554_v48  ;;  %v5282_v18 = vpop.f32.mrf.mxu2  ;;  %v3567_v58 = vpop.eup %3566 }
 0x50f   :  { %v3569_v63 = vpop.eup %3568 }
 0x510   :  { %v1556_v38 = vadd.f32 %v3545_v16, %v1555_v51  ;;  %v3571_v21 = vpop.eup %3570 }
 0x511   :  { %v3573_v8 = vpop.eup %3572 }
 0x512   :  { %v1557_v35 = vadd.f32 %v3547_v3, %v1556_v38  ;;  %v970_v38 = vadd.f32 %v4970_v61, %v7647_v5  ;;  %v3575_v59 = vpop.eup %3574 }
 0x513   :  { %v3577_v2 = vpop.eup %3576 }
 0x514   :  { %v1558_v22 = vadd.f32 %v3549_v17, %v1557_v35  ;;  %v972_v35 = vadd.f32 %v4970_v61, %v7648_v14  ;;  %3578 = vtanh.f32 %v970_v38  ;;  %v7659_v14 = vld [vmem:[#allocation36_spill] sm:$0xff] }
 0x516   :  { %v1559_v41 = vadd.f32 %v3551_v52, %v1558_v22  ;;  %v5294_v16 = vpop.f32.mrf.mxu2  ;;  %v975_v22 = vadd.f32 %v4970_v61, %v7649_v27  ;;  %3580 = vtanh.f32 %v972_v35  ;;  %v7660_v27 = vld [vmem:[#allocation37_spill] sm:$0xff] }
 0x518   :  { %v1560_v37 = vadd.f32 %v3553_v15, %v1559_v41  ;;  %v977_v41 = vadd.f32 %v4970_v61, %v7650_v26  ;;  %3582 = vtanh.f32 %v975_v22 }
 0x51a   :  { %v1561_v54 = vadd.f32 %v3555_v43, %v1560_v37  ;;  %v980_v37 = vadd.f32 %v4970_v61, %v7651_v12  ;;  %v3579_v53 = vpop.eup %3578  ;;  %3584 = vtanh.f32 %v977_v41  ;;  %v7662_v12 = vld [vmem:[#allocation39_spill] sm:$0xff] }
 0x51c   :  { %v1562_v31 = vadd.f32 %v3557_v7, %v1561_v54  ;;  %v7652_v54 = vld [vmem:[#allocation29_spill] sm:$0xff]  ;;  %v3581_v0 = vpop.eup %3580  ;;  %3586 = vtanh.f32 %v980_v37 }
 0x51d   :  { %v982_v7 = vadd.f32 %v4970_v61, %v7652_v54  ;;  %v7663_v54 = vld [vmem:[#allocation40_spill] sm:$0xff] }
 0x51e   :  { %v1563_v42 = vadd.f32 %v3559_v40, %v1562_v31  ;;  %v5306_v62 = vpop.f32.mrf.mxu2  ;;  %v7653_v31 = vld [vmem:[#allocation30_spill] sm:$0xff]  ;;  %v3583_v11 = vpop.eup %3582 }
 0x51f   :  { %v985_v40 = vadd.f32 %v4970_v61, %v7653_v31  ;;  %3588 = vtanh.f32 %v982_v7  ;;  %v7664_v31 = vld [vmem:[#allocation41_spill] sm:$0xff] }
 0x520   :  { %v1564_v36 = vadd.f32 %v3561_v47, %v1563_v42  ;;  %v7654_v42 = vld [vmem:[#allocation31_spill] sm:$0xff]  ;;  %v3585_v50 = vpop.eup %3584 }
 0x521   :  { %v987_v47 = vadd.f32 %v4970_v61, %v7654_v42  ;;  %3590 = vtanh.f32 %v985_v40  ;;  %v7665_v42 = vld [vmem:[#allocation42_spill] sm:$0xff] }
 0x522   :  { %v1565_v60 = vadd.f32 %v3563_v55, %v1564_v36  ;;  %v7655_v36 = vld [vmem:[#allocation32_spill] sm:$0xff]  ;;  %v3587_v20 = vpop.eup %3586 }
 0x523   :  { %v990_v55 = vadd.f32 %v4970_v61, %v7655_v36  ;;  %3592 = vtanh.f32 %v987_v47  ;;  %v7666_v36 = vld [vmem:[#allocation43_spill] sm:$0xff] }
 0x524   :  { %v1566_v48 = vadd.f32 %v3565_v56, %v1565_v60  ;;  %v7656_v60 = vld [vmem:[#allocation33_spill] sm:$0xff] }
 0x525   :  { %v992_v56 = vadd.f32 %v4970_v61, %v7656_v60  ;;  %3594 = vtanh.f32 %v990_v55 }
 0x526   :  { %v1567_v51 = vadd.f32 %v3567_v58, %v1566_v48  ;;  %v5318_v32 = vpop.f32.mrf.mxu2  ;;  %v3589_v48 = vpop.eup %3588  ;;  %v7657_v58 = vld [vmem:[#allocation34_spill] sm:$0xff] }
 0x527   :  { %v995_v44 = vadd.f32 %v4970_v61, %v7657_v58  ;;  %3596 = vtanh.f32 %v992_v56  ;;  %v7667_v56 = vld [vmem:[#allocation44_spill] sm:$0xff] }
 0x528   :  { %v1568_v3 = vadd.f32 %v3569_v63, %v1567_v51  ;;  %v3591_v51 = vpop.eup %3590  ;;  %v7658_v63 = vld [vmem:[#allocation35_spill] sm:$0xff] }
 0x529   :  { %v997_v5 = vadd.f32 %v4970_v61, %v7658_v63  ;;  %3598 = vtanh.f32 %v995_v44  ;;  %v7661_v61 = vld [vmem:[#allocation38_spill] sm:$0xff]  ;;  %v7668_v44 = vld [vmem:[#allocation45_spill] sm:$0xff] }
 0x52a   :  { %v1569_v17 = vadd.f32 %v3571_v21, %v1568_v3  ;;  %v3593_v3 = vpop.eup %3592  ;;  %v5327_v21 = vld [vmem:[%s7563_s2] ss:$0 sm:$0xff] }
 0x52b   :  { %v1000_v35 = vadd.f32 %v5327_v21, %v7659_v14  ;;  %3600 = vtanh.f32 %v997_v5  ;;  %v1002_v22 = vadd.f32 %v5327_v21, %v7660_v27  ;;  %v1005_v26 = vadd.f32 %v5327_v21, %v7661_v61  ;;  %v7669_v5 = vld [vmem:[#allocation46_spill] sm:$0xff] }
 0x52c   :  { %v1570_v52 = vadd.f32 %v3573_v8, %v1569_v17  ;;  %v3595_v8 = vpop.eup %3594  ;;  %v1007_v37 = vadd.f32 %v5327_v21, %v7662_v12  ;;  %v1010_v7 = vadd.f32 %v5327_v21, %v7663_v54  ;;  %v1012_v40 = vadd.f32 %v5327_v21, %v7664_v31 }
 0x52d   :  { %3602 = vtanh.f32 %v1000_v35  ;;  %v1015_v47 = vadd.f32 %v5327_v21, %v7665_v42  ;;  %v1017_v55 = vadd.f32 %v5327_v21, %v7666_v36  ;;  %v7670_v35 = vld [vmem:[#allocation47_spill] sm:$0xff] }
 0x52e   :  { %v1571_v15 = vadd.f32 %v3575_v59, %v1570_v52  ;;  %v3597_v59 = vpop.eup %3596  ;;  %3604 = vtanh.f32 %v1002_v22  ;;  %v7671_v22 = vld [vmem:[#allocation48_spill] sm:$0xff] }
 0x52f   :  { %3606 = vtanh.f32 %v1005_v26 }
 0x530   :  { %v1572_v43 = vadd.f32 %v3577_v2, %v1571_v15  ;;  %v5335_v15 = vpop.f32.mrf.mxu2  ;;  %v3599_v2 = vpop.eup %3598  ;;  %3608 = vtanh.f32 %v1007_v37 }
 0x531   :  { %3610 = vtanh.f32 %v1010_v7 }
 0x532   :  { %v1573_v6 = vadd.f32 %v3579_v53, %v1572_v43  ;;  %v3601_v53 = vpop.eup %3600  ;;  %3612 = vtanh.f32 %v1012_v40 }
 0x533   :  { %3614 = vtanh.f32 %v1015_v47 }
 0x534   :  { %v1574_v29 = vadd.f32 %v3581_v0, %v1573_v6  ;;  %v3603_v0 = vpop.eup %3602  ;;  %3616 = vtanh.f32 %v1017_v55 }
 0x536   :  { %v1575_v49 = vadd.f32 %v3583_v11, %v1574_v29  ;;  %v3605_v11 = vpop.eup %3604 }
 0x538   :  { %v1576_v13 = vadd.f32 %v3585_v50, %v1575_v49  ;;  %v3607_v50 = vpop.eup %3606 }
 0x539   :  { %v3609_v60 = vpop.eup %3608 }
 0x53a   :  { %v1577_v30 = vadd.f32 %v3587_v20, %v1576_v13  ;;  %v5347_v20 = vpop.f32.mrf.mxu2  ;;  %v3611_v58 = vpop.eup %3610 }
 0x53b   :  { %v3613_v63 = vpop.eup %3612 }
 0x53c   :  { %v1578_v25 = vadd.f32 %v3589_v48, %v1577_v30  ;;  %v1020_v30 = vadd.f32 %v5327_v21, %v7667_v56  ;;  %v3615_v14 = vpop.eup %3614 }
 0x53d   :  { %v3617_v27 = vpop.eup %3616 }
 0x53e   :  { %v1579_v38 = vadd.f32 %v3591_v51, %v1578_v25  ;;  %v1022_v25 = vadd.f32 %v5327_v21, %v7668_v44  ;;  %3618 = vtanh.f32 %v1020_v30 }
 0x540   :  { %v1580_v17 = vadd.f32 %v3593_v3, %v1579_v38  ;;  %v1025_v38 = vadd.f32 %v5327_v21, %v7669_v5  ;;  %3620 = vtanh.f32 %v1022_v25 }
 0x542   :  { %v1581_v52 = vadd.f32 %v3595_v8, %v1580_v17  ;;  %v1027_v17 = vadd.f32 %v5327_v21, %v7670_v35  ;;  %3622 = vtanh.f32 %v1025_v38  ;;  %v5359_v61 = vpop.f32.mrf.mxu2 }
 0x544   :  { %v1582_v41 = vadd.f32 %v3597_v59, %v1581_v52  ;;  %v1030_v52 = vadd.f32 %v5327_v21, %v7671_v22  ;;  %v3619_v26 = vpop.eup %3618  ;;  %3624 = vtanh.f32 %v1027_v17 }
 0x546   :  { %v1583_v43 = vadd.f32 %v3599_v2, %v1582_v41  ;;  %v7672_v41 = vld [vmem:[#allocation49_spill] sm:$0xff]  ;;  %v3621_v37 = vpop.eup %3620  ;;  %3626 = vtanh.f32 %v1030_v52 }
 0x547   :  { %v1032_v2 = vadd.f32 %v5327_v21, %v7672_v41 }
 0x548   :  { %v1584_v6 = vadd.f32 %v3601_v53, %v1583_v43  ;;  %v7673_v43 = vld [vmem:[#allocation50_spill] sm:$0xff]  ;;  %v3623_v7 = vpop.eup %3622 }
 0x549   :  { %v1035_v53 = vadd.f32 %v5327_v21, %v7673_v43  ;;  %3628 = vtanh.f32 %v1032_v2 }
 0x54a   :  { %v1585_v29 = vadd.f32 %v3603_v0, %v1584_v6  ;;  %v7674_v6 = vld [vmem:[#allocation51_spill] sm:$0xff]  ;;  %v3625_v40 = vpop.eup %3624  ;;  %v5371_v55 = vpop.f32.mrf.mxu2 }
 0x54b   :  { %v1037_v0 = vadd.f32 %v5327_v21, %v7674_v6  ;;  %3630 = vtanh.f32 %v1035_v53 }
 0x54c   :  { %v1586_v49 = vadd.f32 %v3605_v11, %v1585_v29  ;;  %v7675_v29 = vld [vmem:[#allocation52_spill] sm:$0xff]  ;;  %v3627_v47 = vpop.eup %3626 }
 0x54d   :  { %v1040_v11 = vadd.f32 %v5327_v21, %v7675_v29  ;;  %3632 = vtanh.f32 %v1037_v0  ;;  %v1067_v0 = vadd.f32 %v5327_v21, %v5164_v33 }
 0x54e   :  { %v1587_v13 = vadd.f32 %v3607_v50, %v1586_v49  ;;  %v7676_v49 = vld [vmem:[#allocation53_spill] sm:$0xff] }
 0x54f   :  { %v1042_v50 = vadd.f32 %v5327_v21, %v7676_v49  ;;  %3634 = vtanh.f32 %v1040_v11  ;;  %v1075_v49 = vadd.f32 %v5327_v21, %v5206_v45  ;;  %v1080_v45 = vadd.f32 %v5327_v21, %v5234_v4 }
 0x550   :  { %v1588_v48 = vadd.f32 %v3609_v60, %v1587_v13  ;;  %v3629_v13 = vpop.eup %3628  ;;  %v7677_v60 = vld [vmem:[#allocation54_spill] sm:$0xff] }
 0x551   :  { %v1045_v56 = vadd.f32 %v5327_v21, %v7677_v60  ;;  %3636 = vtanh.f32 %v1042_v50  ;;  %v1654_v60 = vld [vmem:[%s7566_s3 + $0x68] sm:$0xff] }
 0x552   :  { %v1589_v51 = vadd.f32 %v3611_v58, %v1588_v48  ;;  %v3631_v48 = vpop.eup %3630  ;;  %v7678_v58 = vld [vmem:[#allocation55_spill] sm:$0xff]  ;;  %v5383_v52 = vpop.f32.mrf.mxu2 }
 0x553   :  { %v1047_v44 = vadd.f32 %v5327_v21, %v7678_v58  ;;  %3638 = vtanh.f32 %v1045_v56  ;;  %v1653_v58 = vld [vmem:[%s7566_s3 + $0x60] sm:$0xff] }
 0x554   :  { %v1590_v3 = vadd.f32 %v3613_v63, %v1589_v51  ;;  %v3633_v51 = vpop.eup %3632  ;;  %v7679_v63 = vld [vmem:[#allocation56_spill] sm:$0xff] }
 0x555   :  { %v1050_v5 = vadd.f32 %v5327_v21, %v7679_v63  ;;  %3640 = vtanh.f32 %v1047_v44  ;;  %v1082_v44 = vadd.f32 %v5327_v21, %v5246_v19  ;;  %v1085_v63 = vadd.f32 %v5327_v21, %v5258_v1 }
 0x556   :  { %v1591_v8 = vadd.f32 %v3615_v14, %v1590_v3  ;;  %v3635_v3 = vpop.eup %3634  ;;  %v7680_v14 = vld [vmem:[#allocation57_spill] sm:$0xff]  ;;  %v1087_v19 = vadd.f32 %v5327_v21, %v5270_v39  ;;  %v1090_v1 = vadd.f32 %v5327_v21, %v5282_v18  ;;  %v1092_v39 = vadd.f32 %v5327_v21, %v5294_v16  ;;  %v1647_v18 = vld [vmem:[%s7566_s3 + $0x30] sm:$0xff]  ;;  %v1646_v16 = vld [vmem:[%s7566_s3 + $0x28] sm:$0xff] }
 0x557   :  { %v1052_v35 = vadd.f32 %v5327_v21, %v7680_v14  ;;  %3642 = vtanh.f32 %v1050_v5 }
 0x558   :  { %v1592_v59 = vadd.f32 %v3617_v27, %v1591_v8  ;;  %v3637_v8 = vpop.eup %3636  ;;  %v1055_v27 = vadd.f32 %v5327_v21, %v5105_v28  ;;  %v1062_v28 = vadd.f32 %v5327_v21, %v5138_v24  ;;  %v1070_v24 = vadd.f32 %v5327_v21, %v5180_v23  ;;  %v1655_v23 = vld [vmem:[%s7566_s3 + $0x70] sm:$0xff] }
 0x559   :  { %3644 = vtanh.f32 %v1052_v35  ;;  %v1650_v35 = vld [vmem:[%s7566_s3 + $0x48] sm:$0xff] }
 0x55a   :  { %v1593_v12 = vadd.f32 %v3619_v26, %v1592_v59  ;;  %v3639_v59 = vpop.eup %3638  ;;  %v1057_v26 = vadd.f32 %v5327_v21, %v5112_v46  ;;  %3646 = vtanh.f32 %v1055_v27  ;;  %v1649_v27 = vld [vmem:[%s7566_s3 + $0x40] sm:$0xff] }
 0x55b   :  { %v3641_v2 = vpop.eup %3640 }
 0x55c   :  { %v1594_v54 = vadd.f32 %v3621_v37, %v1593_v12  ;;  %v1060_v12 = vadd.f32 %v5327_v21, %v5128_v9  ;;  %3648 = vtanh.f32 %v1057_v26  ;;  %v5395_v9 = vpop.f32.mrf.mxu2 }
 0x55d   :  { %v3643_v43 = vpop.eup %3642 }
 0x55e   :  { %v1595_v31 = vadd.f32 %v3623_v7, %v1594_v54  ;;  %3650 = vtanh.f32 %v1060_v12  ;;  %v1065_v7 = vadd.f32 %v5327_v21, %v5154_v10  ;;  %v1072_v10 = vadd.f32 %v5327_v21, %v5190_v57 }
 0x55f   :  { %v3645_v54 = vpop.eup %3644  ;;  %3652 = vtanh.f32 %v1062_v28  ;;  %v1077_v57 = vadd.f32 %v5327_v21, %v5216_v34  ;;  %v1095_v12 = vadd.f32 %v5327_v21, %v5306_v62  ;;  %v1097_v28 = vadd.f32 %v5327_v21, %v5318_v32 }
 0x560   :  { %v1596_v42 = vadd.f32 %v3625_v40, %v1595_v31  ;;  %v3647_v46 = vpop.eup %3646  ;;  %3654 = vtanh.f32 %v1065_v7  ;;  %v1100_v62 = vadd.f32 %v5327_v21, %v5335_v15  ;;  %v1102_v32 = vadd.f32 %v5327_v21, %v5347_v20 }
 0x561   :  { %3656 = vtanh.f32 %v1067_v0  ;;  %v1105_v15 = vadd.f32 %v5327_v21, %v5359_v61  ;;  %v1107_v20 = vadd.f32 %v5327_v21, %v5371_v55  ;;  %v1110_v61 = vadd.f32 %v5327_v21, %v5383_v52 }
 0x562   :  { %v1597_v36 = vadd.f32 %v3627_v47, %v1596_v42  ;;  %v3649_v40 = vpop.eup %3648  ;;  %v1656_v47 = vld [vmem:[%s7566_s3 + $0x78] sm:$0xff]  ;;  %3658 = vtanh.f32 %v1070_v24 }
 0x563   :  { %1657 = vmatpush.msra.mxu1 %v1656_v47  ;;  %3660 = vtanh.f32 %v1072_v10  ;;  %v1642_v10 = vld [vmem:[%s7566_s3 + $0x8] sm:$0xff] }
 0x564   :  { %v1598_v30 = vadd.f32 %v3629_v13, %v1597_v36  ;;  %v3651_v11 = vpop.eup %3650  ;;  %3662 = vtanh.f32 %v1075_v49 }
 0x565   :  { %v3653_v33 = vpop.eup %3652  ;;  %1658 = vmatpush.msra.mxu1 %v1655_v23  ;;  %3664 = vtanh.f32 %v1077_v57 }
 0x566   :  { %v1599_v25 = vadd.f32 %v3631_v48, %v1598_v30  ;;  %v3655_v36 = vpop.eup %3654  ;;  %v5416_v48 = vpop.f32.mrf.mxu2  ;;  %3666 = vtanh.f32 %v1080_v45 }
 0x567   :  { %v3657_v56 = vpop.eup %3656  ;;  %1659 = vmatpush.msra.mxu1 %v1654_v60  ;;  %3668 = vtanh.f32 %v1082_v44 }
 0x568   :  { %v1600_v38 = vadd.f32 %v3633_v51, %v1599_v25  ;;  %v3659_v34 = vpop.eup %3658  ;;  %v1652_v51 = vld [vmem:[%s7566_s3 + $0x58] sm:$0xff]  ;;  %3670 = vtanh.f32 %v1085_v63 }
 0x569   :  { %1660 = vmatpush.msra.mxu1 %v1653_v58  ;;  %v3661_v4 = vpop.eup %3660  ;;  %3672 = vtanh.f32 %v1087_v19 }
 0x56a   :  { %v1601_v17 = vadd.f32 %v3635_v3, %v1600_v38  ;;  %v1651_v38 = vld [vmem:[%s7566_s3 + $0x50] sm:$0xff]  ;;  %v3663_v3 = vpop.eup %3662  ;;  %3674 = vtanh.f32 %v1090_v1 }
 0x56b   :  { %1661 = vmatpush.msra.mxu1 %v1652_v51  ;;  %3676 = vtanh.f32 %v1092_v39 }
 0x56c   :  { %v1602_v22 = vadd.f32 %v3637_v8, %v1601_v17  ;;  %v3665_v17 = vpop.eup %3664  ;;  %3678 = vtanh.f32 %v1095_v12 }
 0x56d   :  { %1662 = vmatpush.msra.mxu1 %v1651_v38  ;;  %3680 = vtanh.f32 %v1097_v28  ;;  %v3171_v28 = vld [vmem:[%s7567_s5 + $0x30] sm:$0xff] }
 0x56e   :  { %v1603_v41 = vadd.f32 %v3639_v59, %v1602_v22  ;;  %v3667_v22 = vpop.eup %3666  ;;  %v1116_v26 = vpop.f32.mrf.mxu2  ;;  %3682 = vtanh.f32 %v1100_v62  ;;  %v3168_v62 = vld [vmem:[%s7567_s5 + $0x18] sm:$0xff] }
 0x56f   :  { %1663 = vmatpush.msra.mxu1 %v1650_v35  ;;  %3684 = vtanh.f32 %v1102_v32  ;;  %v1117_v45 = vadd.f32 %v5327_v21, %v1116_v26 }
 0x570   :  { %v1604_v37 = vadd.f32 %v3641_v2, %v1603_v41  ;;  %v1648_v41 = vld [vmem:[%s7566_s3 + $0x38] sm:$0xff]  ;;  %v3669_v2 = vpop.eup %3668  ;;  %3686 = vtanh.f32 %v1105_v15 }
 0x571   :  { %1664 = vmatpush.msra.mxu1 %v1649_v27  ;;  %3688 = vtanh.f32 %v1107_v20  ;;  %v3166_v20 = vld [vmem:[%s7567_s5 + $0x8] sm:$0xff] }
 0x572   :  { %v1605_v53 = vadd.f32 %v3643_v43, %v1604_v37  ;;  %v3671_v43 = vpop.eup %3670  ;;  %3690 = vtanh.f32 %v1110_v61  ;;  %v3709_v61 = vld [vmem:[%s7564_s0] sm:$0xff] }
 0x573   :  { %1665 = vmatpush.msra.mxu1 %v1648_v41  ;;  %v3673_v7 = vpop.eup %3672 }
 0x574   :  { %v1606_v6 = vadd.f32 %v3645_v54, %v1605_v53  ;;  %v1645_v54 = vld [vmem:[%s7566_s3 + $0x20] sm:$0xff]  ;;  %v3675_v0 = vpop.eup %3674 }
 0x575   :  { %1666 = vmatpush.msra.mxu1 %v1647_v18  ;;  %v3677_v24 = vpop.eup %3676 }
 0x576   :  { %v1607_v31 = vadd.f32 %v3647_v46, %v1606_v6  ;;  %v1644_v46 = vld [vmem:[%s7566_s3 + $0x18] sm:$0xff] }
 0x577   :  { %1667 = vmatpush.msra.mxu1 %v1646_v16 }
 0x578   :  { %v1608_v29 = vadd.f32 %v3649_v40, %v1607_v31  ;;  %v1643_v40 = vld [vmem:[%s7566_s3 + $0x10] sm:$0xff] }
 0x579   :  { %1668 = vmatpush.msra.mxu1 %v1645_v54  ;;  %v3169_v54 = vld [vmem:[%s7567_s5 + $0x20] sm:$0xff] }
 0x57a   :  { %v1609_v42 = vadd.f32 %v3651_v11, %v1608_v29  ;;  %v1119_v11 = vpop.f32.mrf.mxu2 }
 0x57b   :  { %1669 = vmatpush.msra.mxu1 %v1644_v46 }
 0x57c   :  { %v1610_v50 = vadd.f32 %v3653_v33, %v1609_v42  ;;  %v3679_v42 = vpop.eup %3678  ;;  %v1641_v33 = vld [vmem:[%s7566_s3] sm:$0xff] }
 0x57d   :  { %1670 = vmatpush.msra.mxu1 %v1643_v40  ;;  %v3681_v49 = vpop.eup %3680 }
 0x57e   :  { %v1611_v13 = vadd.f32 %v3655_v36, %v1610_v50  ;;  %v3683_v23 = vpop.eup %3682  ;;  %v1112_v36 = vadd.f32 %v5327_v21, %v5395_v9 }
 0x57f   :  { %1671 = vmatpush.msra.mxu1 %v1642_v10  ;;  %v3685_v57 = vpop.eup %3684 }
 0x580   :  { %v1612_v30 = vadd.f32 %v3657_v56, %v1611_v13  ;;  %v1115_v13 = vadd.f32 %v5327_v21, %v5416_v48  ;;  %v3687_v56 = vpop.eup %3686  ;;  %3692 = vtanh.f32 %v1112_v36 }
 0x581   :  { %1672 = vmatpush.msra.mxu1 %v1641_v33  ;;  %v3689_v58 = vpop.eup %3688 }
 0x582   :  { %v1613_v25 = vadd.f32 %v3659_v34, %v1612_v30  ;;  %v1121_v30 = vpop.f32.mrf.mxu2  ;;  %3694 = vtanh.f32 %v1115_v13  ;;  %v1120_v34 = vadd.f32 %v5327_v21, %v1119_v11  ;;  %v3691_v9 = vpop.eup %3690 }
 0x583   :  { %3696 = vtanh.f32 %v1117_v45 }
 0x584   :  { %v1614_v5 = vadd.f32 %v3661_v4, %v1613_v25  ;;  %v1122_v25 = vadd.f32 %v5327_v21, %v1121_v30  ;;  %3698 = vtanh.f32 %v1120_v34 }
 0x586   :  { %v1615_v14 = vadd.f32 %v3663_v3, %v1614_v5  ;;  %v3693_v4 = vpop.eup %3692  ;;  %3700 = vtanh.f32 %v1122_v25  ;;  %v3716_v25 = vld [vmem:[%s7564_s0 + $0x408] sm:$0xff] }
 0x588   :  { %v1616_v8 = vadd.f32 %v3665_v17, %v1615_v14  ;;  %v3695_v63 = vpop.eup %3694 }
 0x589   :  { %v3697_v38 = vpop.eup %3696 }
 0x58a   :  { %v1617_v59 = vadd.f32 %v3667_v22, %v1616_v8  ;;  %v3699_v19 = vpop.eup %3698 }
 0x58c   :  { %v1618_v37 = vadd.f32 %v3669_v2, %v1617_v59  ;;  %v3701_v35 = vpop.eup %3700 }
 0x58e   :  { %v1619_v53 = vadd.f32 %v3671_v43, %v1618_v37  ;;  %v3172_v43 = vld [vmem:[%s7567_s5 + $0x38] sm:$0xff] }
 0x58f   :  { %2181 = vmatpush.bf16.msrb.mxu1 %v3172_v43  ;;  %3181 = vmatpush.bf16.msra.mxu3 %v3172_v43  ;;  %v3726_v43 = vld [vmem:[%s7564_s0 + $0x48] sm:$0xff] }
 0x590   :  { %v1620_v6 = vadd.f32 %v3673_v7, %v1619_v53  ;;  %v3170_v53 = vld [vmem:[%s7567_s5 + $0x28] sm:$0xff] }
 0x592   :  { %v1621_v31 = vadd.f32 %v3675_v0, %v1620_v6  ;;  %v3167_v6 = vld [vmem:[%s7567_s5 + $0x10] sm:$0xff] }
 0x593   :  { %2182 = vmatpush.bf16.msrb.mxu1 %v3171_v28  ;;  %3182 = vmatpush.bf16.msra.mxu3 %v3171_v28 }
 0x594   :  { %v1622_v29 = vadd.f32 %v3677_v24, %v1621_v31 }
 0x596   :  { %v1623_v47 = vadd.f32 %v3679_v42, %v1622_v29 }
 0x597   :  { %2183 = vmatpush.bf16.msrb.mxu1 %v3170_v53  ;;  %3183 = vmatpush.bf16.msra.mxu3 %v3170_v53  ;;  %v3727_v53 = vld [vmem:[%s7564_s0 + $0x430] sm:$0xff] }
 0x598   :  { %v1624_v50 = vadd.f32 %v3681_v49, %v1623_v47  ;;  %v3165_v47 = vld [vmem:[%s7567_s5] sm:$0xff] }
 0x59a   :  { %v1625_v55 = vadd.f32 %v3683_v23, %v1624_v50  ;;  %v3710_v23 = vld [vmem:[%s7564_s0 + $0x8] sm:$0xff] }
 0x59b   :  { %2184 = vmatpush.bf16.msrb.mxu1 %v3169_v54  ;;  %3184 = vmatpush.bf16.msra.mxu3 %v3169_v54 }
 0x59c   :  { %v1626_v60 = vadd.f32 %v3685_v57, %v1625_v55  ;;  %v3711_v57 = vld [vmem:[%s7564_s0 + $0x3f0] sm:$0xff] }
 0x59e   :  { %v1627_v52 = vadd.f32 %v3687_v56, %v1626_v60  ;;  %v3712_v60 = vld [vmem:[%s7564_s0 + $0x3f8] sm:$0xff] }
 0x59f   :  { %2185 = vmatpush.bf16.msrb.mxu1 %v3168_v62  ;;  %3185 = vmatpush.bf16.msra.mxu3 %v3168_v62 }
 0x5a0   :  { %v1628_v44 = vadd.f32 %v3689_v58, %v1627_v52  ;;  %v3713_v52 = vld [vmem:[%s7564_s0 + $0x10] sm:$0xff]  ;;  %v3714_v58 = vld [vmem:[%s7564_s0 + $0x18] sm:$0xff] }
 0x5a2   :  { %v1629_v51 = vadd.f32 %v3691_v9, %v1628_v44  ;;  %v3715_v44 = vld [vmem:[%s7564_s0 + $0x400] sm:$0xff] }
 0x5a3   :  { %2186 = vmatpush.bf16.msrb.mxu1 %v3167_v6  ;;  %3186 = vmatpush.bf16.msra.mxu3 %v3167_v6 }
 0x5a4   :  { %v1630_v48 = vadd.f32 %v3693_v4, %v1629_v51 }
 0x5a6   :  { %v1631_v5 = vadd.f32 %v3695_v63, %v1630_v48  ;;  %v3717_v63 = vld [vmem:[%s7564_s0 + $0x20] sm:$0xff] }
 0x5a7   :  { %2187 = vmatpush.bf16.msrb.mxu1 %v3166_v20  ;;  %3187 = vmatpush.bf16.msra.mxu3 %v3166_v20  ;;  %v3733_v20 = vld [vmem:[%s7564_s0 + $0x60] sm:$0xff] }
 0x5a8   :  { %v1632_v3 = vadd.f32 %v3697_v38, %v1631_v5  ;;  %v3718_v38 = vld [vmem:[%s7564_s0 + $0x28] sm:$0xff] }
 0x5aa   :  { %v1633_v14 = vadd.f32 %v3699_v19, %v1632_v3  ;;  %v3719_v19 = vld [vmem:[%s7564_s0 + $0x410] sm:$0xff] }
 0x5ab   :  { %2188 = vmatpush.bf16.msrb.mxu1 %v3165_v47  ;;  %3188 = vmatpush.bf16.msra.mxu3 %v3165_v47 }
 0x5ac   :  { %v1634_v17 = vadd.f32 %v3701_v35, %v1633_v14  ;;  %v3720_v35 = vld [vmem:[%s7564_s0 + $0x418] sm:$0xff] }
 0x5ae   :  { %v1635_v1 = vrot.slane %v1634_v17, 4 }
 0x5b0   :  { %v1636_v8 = vadd.f32 %v1635_v1, %v1634_v17 }
 0x5b2   :  { %v1637_v27 = vrot.slane %v1636_v8, 2 }
 0x5b4   :  { %v1638_v22 = vadd.f32 %v1637_v27, %v1636_v8  ;;  %v3721_v27 = vld [vmem:[%s7564_s0 + $0x30] sm:$0xff] }
 0x5b6   :  { %v1639_v39 = vrot.slane %v1638_v22, 1 }
 0x5b8   :  { %v1640_v59 = vadd.f32 %v1639_v39, %v1638_v22  ;;  %v3722_v39 = vld [vmem:[%s7564_s0 + $0x38] sm:$0xff] }
 0x5ba   :  { %1673 = vmatmul.f32.vlgmr.msra.gmra.mxu1 %v1640_v59 }
 0x637   :  { %v1674_v21 = vpop.f32.mrf.mxu1 }
 0x638   :  { %v1677_v26 = vmul.f32 0.00048828125, %v1674_v21  ;;  %v3723_v21 = vld [vmem:[%s7564_s0 + $0x420] sm:$0xff] }
 0x63a   :  { %v1679_v41 = vsel %vm1678_vm1, %v1677_v26, -inf }
 0x63b   :  { %1680 = vmax.xlane.f32.xlu0 %v1679_v41  ;;  %v3724_v41 = vld [vmem:[%s7564_s0 + $0x428] sm:$0xff] }
 0x6ae   :  { %v1681_v18 = vpop.xlane.xlu0 %1680 }
 0x6af   :  { %v1682_v2 = vsub.f32 %v1677_v26, %v1681_v18 }
 0x6b1   :  { %v1683_v12 = vmul.f32 1.442695, %v1682_v2 }
 0x6b3   :  { %3702 = vpow2.f32 %v1683_v12 }
 0x6b9   :  { %v3703_v37 = vpop.eup %3702 }
 0x6ba   :  { %v1685_v16 = vsel %vm1678_vm1, %v3703_v37, 0.0 }
 0x6bb   :  { %1686 = vadd.xlane.f32.xlu0 %v1685_v16 }
 0x72e   :  { %v1687_v7 = vpop.xlane.xlu0 %1686 }
 0x72f   :  { %3704 = vrcp.f32 %v1687_v7  ;;  %v1699_v31 = vand.u32 2147483648, %v1687_v7  ;;  %v1697_v24 = vand.u32 2147483647, %v1687_v7  ;;  %vm1693_vm3 = vweird.f32 %v1687_v7 }
 0x731   :  { %v1700_v29 = vor.u32 1.1754944e-38, %v1699_v31  ;;  %vm1698_vm5 = vcmp.eq.f32.partialorder %v1697_v24, 8.507059e+37  ;;  %v3730_v31 = vld [vmem:[%s7564_s0 + $0x58] sm:$0xff]  ;;  %v3731_v24 = vld [vmem:[%s7564_s0 + $0x440] sm:$0xff] }
 0x735   :  { %v3705_v46 = vpop.eup %3704 }
 0x736   :  { %v1689_v0 = vmul.f32 %v3705_v46, %v1687_v7  ;;  %vm1694_vm2 = vweird.f32 %v3705_v46  ;;  %v3728_v7 = vld [vmem:[%s7564_s0 + $0x438] sm:$0xff] }
 0x737   :  { %vm1695_vm4 = vmor %vm1693_vm3, %vm1694_vm2 }
 0x738   :  { %v1690_v32 = vsub.f32 1.0, %v1689_v0  ;;  %v3729_v0 = vld [vmem:[%s7564_s0 + $0x50] sm:$0xff] }
 0x73a   :  { %v1691_v40 = vmul.f32 %v3705_v46, %v1690_v32 }
 0x73c   :  { %v1692_v15 = vadd.f32 %v3705_v46, %v1691_v40 }
 0x73e   :  { %v1696_v11 = vsel %vm1695_vm4, %v3705_v46, %v1692_v15 }
 0x73f   :  { %v1701_v10 = vsel %vm1698_vm5, %v1700_v29, %v1696_v11  ;;  %v3732_v29 = vld [vmem:[%s7564_s0 + $0x448] sm:$0xff] }
 0x740   :  { %v1702_v42 = vmul.f32 %v3703_v37, %v1701_v10  ;;  %v3725_v37 = vld [vmem:[%s7564_s0 + $0x40] sm:$0xff] }
 0x742   :  { %3124 = vmatmul.msk.f32.vlgmr.msrb.gmra.mxu2 %vm1704_vm6, %v1702_v42 }
 0x7c5   :  { %v1729_v33 = vpop.f32.mrf.mxu2 }
 0x7c6   :  { %v5512_v49 = vperm.slane %v1729_v33, 0  ;;  %v3734_v33 = vld [vmem:[%s7564_s0 + $0x68] sm:$0xff] }
 0x7c8   :  { %v1733_v50 = vmul.f32 %v3709_v61, %v5512_v49  ;;  %v1734_v36 = vmul.f32 %v3710_v23, %v5512_v49  ;;  %v1859_v13 = vmul.f32 %v3711_v57, %v5512_v49  ;;  %v1860_v56 = vmul.f32 %v3712_v60, %v5512_v49  ;;  %v3737_v60 = vld [vmem:[%s7564_s0 + $0x70] sm:$0xff] }
 0x7c9   :  { %v1735_v30 = vmul.f32 %v3713_v52, %v5512_v49  ;;  %v1736_v34 = vmul.f32 %v3714_v58, %v5512_v49  ;;  %v1861_v9 = vmul.f32 %v3715_v44, %v5512_v49  ;;  %v1862_v51 = vmul.f32 %v3716_v25, %v5512_v49 }
 0x7ca   :  { %v1989_v55 = vpack.c.bf16 %v1734_v36, %v1733_v50  ;;  %v2052_v45 = vpack.c.bf16 %v1860_v56, %v1859_v13  ;;  %v1737_v5 = vmul.f32 %v3717_v63, %v5512_v49  ;;  %v1738_v3 = vmul.f32 %v3718_v38, %v5512_v49  ;;  %v3735_v50 = vld [vmem:[%s7564_s0 + $0x450] sm:$0xff]  ;;  %v3736_v36 = vld [vmem:[%s7564_s0 + $0x458] sm:$0xff] }
 0x7cb   :  { %v1990_v4 = vpack.c.bf16 %v1736_v34, %v1735_v30  ;;  %v2053_v48 = vpack.c.bf16 %v1862_v51, %v1861_v9  ;;  %v1863_v14 = vmul.f32 %v3719_v19, %v5512_v49  ;;  %v1864_v17 = vmul.f32 %v3720_v35, %v5512_v49  ;;  %v3739_v30 = vld [vmem:[%s7564_s0 + $0x460] sm:$0xff]  ;;  %v3740_v34 = vld [vmem:[%s7564_s0 + $0x468] sm:$0xff] }
 0x7cc   :  { %2189 = vmatmul.bf16.vlgmr.msrb.gmra.mxu1 %v1989_v55  ;;  %2504 = vmatmul.bf16.vlgmr.msra.gmra.mxu3 %v2052_v45  ;;  %v1991_v1 = vpack.c.bf16 %v1738_v3, %v1737_v5  ;;  %v1739_v22 = vmul.f32 %v3721_v27, %v5512_v49  ;;  %v1740_v59 = vmul.f32 %v3722_v39, %v5512_v49  ;;  %v3738_v45 = vld [vmem:[%s7564_s0 + $0x78] sm:$0xff]  ;;  %v3741_v51 = vld [vmem:[%s7564_s0 + $0x80] sm:$0xff]  ;;  %v3743_v5 = vld [vmem:[%s7564_s0 + $0x470] sm:$0xff] }
 0x7cd   :  { %v2054_v8 = vpack.c.bf16 %v1864_v17, %v1863_v14  ;;  %v1865_v26 = vmul.f32 %v3723_v21, %v5512_v49  ;;  %v1866_v18 = vmul.f32 %v3724_v41, %v5512_v49  ;;  %v1741_v16 = vmul.f32 %v3725_v37, %v5512_v49  ;;  %v3744_v3 = vld [vmem:[%s7564_s0 + $0x478] sm:$0xff]  ;;  %v3745_v27 = vld [vmem:[%s7564_s0 + $0x90] sm:$0xff]  ;;  %v3747_v21 = vld [vmem:[%s7564_s0 + $0x480] sm:$0xff] }
 0x7ce   :  { %v1992_v2 = vpack.c.bf16 %v1740_v59, %v1739_v22  ;;  %v1742_v28 = vmul.f32 %v3726_v43, %v5512_v49  ;;  %v1867_v54 = vmul.f32 %v3727_v53, %v5512_v49  ;;  %v1868_v62 = vmul.f32 %v3728_v7, %v5512_v49  ;;  %v3746_v39 = vld [vmem:[%s7564_s0 + $0x98] sm:$0xff]  ;;  %v3748_v41 = vld [vmem:[%s7564_s0 + $0x488] sm:$0xff]  ;;  %v3749_v53 = vld [vmem:[%s7564_s0 + $0xa0] sm:$0xff] }
 0x7cf   :  { %v2055_v12 = vpack.c.bf16 %v1866_v18, %v1865_v26  ;;  %v1743_v32 = vmul.f32 %v3729_v0, %v5512_v49  ;;  %v1744_v40 = vmul.f32 %v3730_v31, %v5512_v49  ;;  %v1869_v15 = vmul.f32 %v3731_v24, %v5512_v49  ;;  %v3750_v7 = vld [vmem:[%s7564_s0 + $0xa8] sm:$0xff]  ;;  %v3752_v0 = vld [vmem:[%s7564_s0 + $0x498] sm:$0xff] }
 0x7d0   :  { %v1993_v6 = vpack.c.bf16 %v1742_v28, %v1741_v16  ;;  %v2056_v46 = vpack.c.bf16 %v1868_v62, %v1867_v54  ;;  %v1870_v11 = vmul.f32 %v3732_v29, %v5512_v49  ;;  %v1745_v47 = vmul.f32 %v3733_v20, %v5512_v49  ;;  %v3754_v20 = vld [vmem:[%s7564_s0 + $0xb8] sm:$0xff] }
 0x7d1   :  { %v1994_v10 = vpack.c.bf16 %v1744_v40, %v1743_v32  ;;  %v1746_v61 = vmul.f32 %v3734_v33, %v5512_v49  ;;  %v1871_v23 = vmul.f32 %v3735_v50, %v5512_v49  ;;  %v1872_v55 = vmul.f32 %v3736_v36, %v5512_v49  ;;  %v3755_v33 = vld [vmem:[%s7564_s0 + $0x4a0] sm:$0xff]  ;;  %v3756_v50 = vld [vmem:[%s7564_s0 + $0x4a8] sm:$0xff] }
 0x7d2   :  { %v2057_v42 = vpack.c.bf16 %v1870_v11, %v1869_v15  ;;  %v1747_v56 = vmul.f32 %v3737_v60, %v5512_v49  ;;  %v1748_v52 = vmul.f32 %v3738_v45, %v5512_v49  ;;  %v1873_v58 = vmul.f32 %v3739_v30, %v5512_v49  ;;  %v3757_v45 = vld [vmem:[%s7564_s0 + $0xc0] sm:$0xff]  ;;  %v3758_v30 = vld [vmem:[%s7564_s0 + $0xc8] sm:$0xff] }
 0x7d3   :  { %v1995_v57 = vpack.c.bf16 %v1746_v61, %v1745_v47  ;;  %v2058_v13 = vpack.c.bf16 %v1872_v55, %v1871_v23  ;;  %v1874_v44 = vmul.f32 %v3740_v34, %v5512_v49  ;;  %v1875_v38 = vmul.f32 %v3743_v5, %v5512_v49  ;;  %v3759_v34 = vld [vmem:[%s7564_s0 + $0x4b0] sm:$0xff] }
 0x7d4   :  { %v1996_v9 = vpack.c.bf16 %v1748_v52, %v1747_v56  ;;  %v1876_v19 = vmul.f32 %v3744_v3, %v5512_v49  ;;  %v1751_v22 = vmul.f32 %v3745_v27, %v5512_v49  ;;  %v1752_v59 = vmul.f32 %v3746_v39, %v5512_v49  ;;  %v3761_v3 = vld [vmem:[%s7564_s0 + $0xd0] sm:$0xff] }
 0x7d5   :  { %v2059_v25 = vpack.c.bf16 %v1874_v44, %v1873_v58  ;;  %v1877_v26 = vmul.f32 %v3747_v21, %v5512_v49  ;;  %v1878_v18 = vmul.f32 %v3748_v41, %v5512_v49  ;;  %v1753_v54 = vmul.f32 %v3749_v53, %v5512_v49 }
 0x7d6   :  { %v2060_v17 = vpack.c.bf16 %v1876_v19, %v1875_v38  ;;  %v1998_v37 = vpack.c.bf16 %v1752_v59, %v1751_v22  ;;  %v1754_v62 = vmul.f32 %v3750_v7, %v5512_v49  ;;  %v1880_v32 = vmul.f32 %v3752_v0, %v5512_v49 }
 0x7d7   :  { %v2061_v16 = vpack.c.bf16 %v1878_v18, %v1877_v26  ;;  %v1756_v47 = vmul.f32 %v3754_v20, %v5512_v49  ;;  %v1881_v61 = vmul.f32 %v3755_v33, %v5512_v49  ;;  %v1882_v23 = vmul.f32 %v3756_v50, %v5512_v49  ;;  %v3765_v18 = vld [vmem:[%s7564_s0 + $0xe0] sm:$0xff] }
 0x7d8   :  { %v1999_v24 = vpack.c.bf16 %v1754_v62, %v1753_v54  ;;  %v1757_v52 = vmul.f32 %v3757_v45, %v5512_v49  ;;  %v1758_v58 = vmul.f32 %v3758_v30, %v5512_v49  ;;  %v1883_v44 = vmul.f32 %v3759_v34, %v5512_v49 }
 0x7d9   :  { %v1759_v19 = vmul.f32 %v3761_v3, %v5512_v49 }
 0x7dc   :  { %2194 = vmatmul.bf16.gmra.mxu1 %v1990_v4  ;;  %2509 = vmatmul.bf16.gmra.mxu3 %v2053_v48  ;;  %v1749_v4 = vmul.f32 %v3741_v51, %v5512_v49  ;;  %v3742_v48 = vld [vmem:[%s7564_s0 + $0x88] sm:$0xff] }
 0x7dd   :  { %v1750_v63 = vmul.f32 %v3742_v48, %v5512_v49  ;;  %v2001_v48 = vpack.c.bf16 %v1758_v58, %v1757_v52 }
 0x7df   :  { %v1997_v35 = vpack.c.bf16 %v1750_v63, %v1749_v4 }
 0x7ec   :  { %2199 = vmatmul.bf16.gmra.mxu1 %v1991_v1  ;;  %2514 = vmatmul.bf16.gmra.mxu3 %v2054_v8 }
 0x7fc   :  { %2204 = vmatmul.bf16.gmra.mxu1 %v1992_v2  ;;  %2519 = vmatmul.bf16.gmra.mxu3 %v2055_v12 }
 0x80c   :  { %2209 = vmatmul.bf16.gmra.mxu1 %v1993_v6  ;;  %2524 = vmatmul.bf16.gmra.mxu3 %v2056_v46  ;;  %v3751_v6 = vld [vmem:[%s7564_s0 + $0x490] sm:$0xff] }
 0x80d   :  { %v1879_v46 = vmul.f32 %v3751_v6, %v5512_v49 }
 0x80f   :  { %v2062_v15 = vpack.c.bf16 %v1880_v32, %v1879_v46  ;;  %v3769_v32 = vld [vmem:[%s7564_s0 + $0xf0] sm:$0xff] }
 0x81c   :  { %2214 = vmatmul.bf16.gmra.mxu1 %v1994_v10  ;;  %2529 = vmatmul.bf16.gmra.mxu3 %v2057_v42  ;;  %v3753_v10 = vld [vmem:[%s7564_s0 + $0xb0] sm:$0xff] }
 0x81d   :  { %v1755_v42 = vmul.f32 %v3753_v10, %v5512_v49 }
 0x82c   :  { %2219 = vmatmul.bf16.gmra.mxu1 %v1995_v57  ;;  %2534 = vmatmul.bf16.gmra.mxu3 %v2058_v13  ;;  %v2000_v57 = vpack.c.bf16 %v1756_v47, %v1755_v42  ;;  %v2063_v13 = vpack.c.bf16 %v1882_v23, %v1881_v61  ;;  %v3773_v23 = vld [vmem:[%s7564_s0 + $0x100] sm:$0xff] }
 0x83c   :  { %2224 = vmatmul.bf16.gmra.mxu1 %v1996_v9  ;;  %2539 = vmatmul.bf16.gmra.mxu3 %v2059_v25  ;;  %v3760_v9 = vld [vmem:[%s7564_s0 + $0x4b8] sm:$0xff] }
 0x83d   :  { %v1884_v25 = vmul.f32 %v3760_v9, %v5512_v49 }
 0x83f   :  { %v2064_v63 = vpack.c.bf16 %v1884_v25, %v1883_v44  ;;  %v3777_v25 = vld [vmem:[%s7564_s0 + $0x110] sm:$0xff] }
 0x849   :  { %v2190_v14 = vpop.f32.mrf.mxu1 }
 0x84a   :  { %2831 = vst.msk [vmem:[%s7568_s6] sm:$0xff] %vm2830_vm7, %v2190_v14  ;;  %v3762_v14 = vld [vmem:[%s7564_s0 + $0xd8] sm:$0xff] }
 0x84c   :  { %2229 = vmatmul.bf16.gmra.mxu1 %v1997_v35  ;;  %2544 = vmatmul.bf16.gmra.mxu3 %v2060_v17  ;;  %v1760_v35 = vmul.f32 %v3762_v14, %v5512_v49  ;;  %v3763_v17 = vld [vmem:[%s7564_s0 + $0x4c0] sm:$0xff] }
 0x84e   :  { %v2002_v59 = vpack.c.bf16 %v1760_v35, %v1759_v19 }
 0x84f   :  { %v2505_v1 = vpop.f32.mrf.mxu3 }
 0x850   :  { %2957 = vst.msk [vmem:[%s7568_s6 + $0x3f0] sm:$0xff] %vm2830_vm7, %v2505_v1  ;;  %v1885_v1 = vmul.f32 %v3763_v17, %v5512_v49 }
 0x851   :  { %v2192_v8 = vpop.f32.mrf.mxu1 }
 0x852   :  { %2832 = vst.msk [vmem:[%s7568_s6 + $0x8] sm:$0xff] %vm2830_vm7, %v2192_v8  ;;  %v3764_v8 = vld [vmem:[%s7564_s0 + $0x4c8] sm:$0xff] }
 0x853   :  { %v1886_v27 = vmul.f32 %v3764_v8, %v5512_v49 }
 0x855   :  { %v2065_v21 = vpack.c.bf16 %v1886_v27, %v1885_v1  ;;  %v3781_v27 = vld [vmem:[%s7564_s0 + $0x120] sm:$0xff] }
 0x857   :  { %v2507_v2 = vpop.f32.mrf.mxu3 }
 0x858   :  { %2958 = vst.msk [vmem:[%s7568_s6 + $0x3f8] sm:$0xff] %vm2830_vm7, %v2507_v2  ;;  %v1761_v2 = vmul.f32 %v3765_v18, %v5512_v49 }
 0x859   :  { %v2195_v12 = vpop.f32.mrf.mxu1 }
 0x85a   :  { %2833 = vst.msk [vmem:[%s7568_s6 + $0x10] sm:$0xff] %vm2830_vm7, %v2195_v12  ;;  %v3766_v12 = vld [vmem:[%s7564_s0 + $0xe8] sm:$0xff] }
 0x85c   :  { %2234 = vmatmul.bf16.gmra.mxu1 %v1998_v37  ;;  %2549 = vmatmul.bf16.gmra.mxu3 %v2061_v16  ;;  %v1762_v37 = vmul.f32 %v3766_v12, %v5512_v49  ;;  %v3767_v16 = vld [vmem:[%s7564_s0 + $0x4d0] sm:$0xff] }
 0x85e   :  { %v2003_v62 = vpack.c.bf16 %v1762_v37, %v1761_v2 }
 0x85f   :  { %v2510_v43 = vpop.f32.mrf.mxu3 }
 0x860   :  { %2959 = vst.msk [vmem:[%s7568_s6 + $0x400] sm:$0xff] %vm2830_vm7, %v2510_v43  ;;  %v1887_v43 = vmul.f32 %v3767_v16, %v5512_v49 }
 0x861   :  { %v2197_v28 = vpop.f32.mrf.mxu1 }
 0x862   :  { %2834 = vst.msk [vmem:[%s7568_s6 + $0x18] sm:$0xff] %vm2830_vm7, %v2197_v28  ;;  %v3768_v28 = vld [vmem:[%s7564_s0 + $0x4d8] sm:$0xff] }
 0x863   :  { %v1888_v53 = vmul.f32 %v3768_v28, %v5512_v49 }
 0x865   :  { %v2066_v6 = vpack.c.bf16 %v1888_v53, %v1887_v43  ;;  %v3785_v53 = vld [vmem:[%s7564_s0 + $0x130] sm:$0xff] }
 0x867   :  { %v2512_v31 = vpop.f32.mrf.mxu3 }
 0x868   :  { %2960 = vst.msk [vmem:[%s7568_s6 + $0x408] sm:$0xff] %vm2830_vm7, %v2512_v31  ;;  %v1763_v31 = vmul.f32 %v3769_v32, %v5512_v49 }
 0x869   :  { %v2200_v40 = vpop.f32.mrf.mxu1 }
 0x86a   :  { %2835 = vst.msk [vmem:[%s7568_s6 + $0x20] sm:$0xff] %vm2830_vm7, %v2200_v40  ;;  %v3770_v40 = vld [vmem:[%s7564_s0 + $0xf8] sm:$0xff] }
 0x86c   :  { %2239 = vmatmul.bf16.gmra.mxu1 %v1999_v24  ;;  %2554 = vmatmul.bf16.gmra.mxu3 %v2062_v15  ;;  %v1764_v24 = vmul.f32 %v3770_v40, %v5512_v49  ;;  %v3771_v15 = vld [vmem:[%s7564_s0 + $0x4e0] sm:$0xff] }
 0x86e   :  { %v2004_v47 = vpack.c.bf16 %v1764_v24, %v1763_v31 }
 0x86f   :  { %v2515_v29 = vpop.f32.mrf.mxu3 }
 0x870   :  { %2961 = vst.msk [vmem:[%s7568_s6 + $0x410] sm:$0xff] %vm2830_vm7, %v2515_v29  ;;  %v1889_v29 = vmul.f32 %v3771_v15, %v5512_v49 }
 0x871   :  { %v2202_v11 = vpop.f32.mrf.mxu1 }
 0x872   :  { %2836 = vst.msk [vmem:[%s7568_s6 + $0x28] sm:$0xff] %vm2830_vm7, %v2202_v11  ;;  %v3772_v11 = vld [vmem:[%s7564_s0 + $0x4e8] sm:$0xff] }
 0x873   :  { %v1890_v10 = vmul.f32 %v3772_v11, %v5512_v49 }
 0x875   :  { %v2067_v33 = vpack.c.bf16 %v1890_v10, %v1889_v29  ;;  %v3789_v10 = vld [vmem:[%s7564_s0 + $0x140] sm:$0xff] }
 0x877   :  { %v2517_v36 = vpop.f32.mrf.mxu3 }
 0x878   :  { %2962 = vst.msk [vmem:[%s7568_s6 + $0x418] sm:$0xff] %vm2830_vm7, %v2517_v36  ;;  %v1765_v36 = vmul.f32 %v3773_v23, %v5512_v49 }
 0x879   :  { %v2205_v55 = vpop.f32.mrf.mxu1 }
 0x87a   :  { %2837 = vst.msk [vmem:[%s7568_s6 + $0x30] sm:$0xff] %vm2830_vm7, %v2205_v55  ;;  %v3774_v55 = vld [vmem:[%s7564_s0 + $0x108] sm:$0xff] }
 0x87c   :  { %2244 = vmatmul.bf16.gmra.mxu1 %v2000_v57  ;;  %2559 = vmatmul.bf16.gmra.mxu3 %v2063_v13  ;;  %v1766_v57 = vmul.f32 %v3774_v55, %v5512_v49  ;;  %v3775_v13 = vld [vmem:[%s7564_s0 + $0x4f0] sm:$0xff] }
 0x87e   :  { %v2005_v58 = vpack.c.bf16 %v1766_v57, %v1765_v36 }
 0x87f   :  { %v2520_v60 = vpop.f32.mrf.mxu3 }
 0x880   :  { %2963 = vst.msk [vmem:[%s7568_s6 + $0x420] sm:$0xff] %vm2830_vm7, %v2520_v60  ;;  %v1891_v60 = vmul.f32 %v3775_v13, %v5512_v49 }
 0x881   :  { %v2207_v56 = vpop.f32.mrf.mxu1 }
 0x882   :  { %2838 = vst.msk [vmem:[%s7568_s6 + $0x38] sm:$0xff] %vm2830_vm7, %v2207_v56  ;;  %v3776_v56 = vld [vmem:[%s7564_s0 + $0x4f8] sm:$0xff] }
 0x883   :  { %v1892_v45 = vmul.f32 %v3776_v56, %v5512_v49 }
 0x885   :  { %v2068_v34 = vpack.c.bf16 %v1892_v45, %v1891_v60  ;;  %v3793_v45 = vld [vmem:[%s7564_s0 + $0x150] sm:$0xff] }
 0x887   :  { %v2522_v51 = vpop.f32.mrf.mxu3 }
 0x888   :  { %2964 = vst.msk [vmem:[%s7568_s6 + $0x428] sm:$0xff] %vm2830_vm7, %v2522_v51  ;;  %v1767_v51 = vmul.f32 %v3777_v25, %v5512_v49 }
 0x889   :  { %v2210_v4 = vpop.f32.mrf.mxu1 }
 0x88a   :  { %2839 = vst.msk [vmem:[%s7568_s6 + $0x40] sm:$0xff] %vm2830_vm7, %v2210_v4  ;;  %v3778_v4 = vld [vmem:[%s7564_s0 + $0x118] sm:$0xff] }
 0x88c   :  { %2249 = vmatmul.bf16.gmra.mxu1 %v2001_v48  ;;  %2564 = vmatmul.bf16.gmra.mxu3 %v2064_v63  ;;  %v1768_v48 = vmul.f32 %v3778_v4, %v5512_v49  ;;  %v3779_v63 = vld [vmem:[%s7564_s0 + $0x500] sm:$0xff] }
 0x88e   :  { %v2006_v35 = vpack.c.bf16 %v1768_v48, %v1767_v51 }
 0x88f   :  { %v2525_v5 = vpop.f32.mrf.mxu3 }
 0x890   :  { %2965 = vst.msk [vmem:[%s7568_s6 + $0x430] sm:$0xff] %vm2830_vm7, %v2525_v5  ;;  %v1893_v5 = vmul.f32 %v3779_v63, %v5512_v49 }
 0x891   :  { %v2212_v38 = vpop.f32.mrf.mxu1 }
 0x892   :  { %2840 = vst.msk [vmem:[%s7568_s6 + $0x48] sm:$0xff] %vm2830_vm7, %v2212_v38  ;;  %v3780_v38 = vld [vmem:[%s7564_s0 + $0x508] sm:$0xff] }
 0x893   :  { %v1894_v3 = vmul.f32 %v3780_v38, %v5512_v49 }
 0x895   :  { %v2069_v17 = vpack.c.bf16 %v1894_v3, %v1893_v5  ;;  %v3797_v3 = vld [vmem:[%s7564_s0 + $0x160] sm:$0xff] }
 0x897   :  { %v2527_v22 = vpop.f32.mrf.mxu3 }
 0x898   :  { %2966 = vst.msk [vmem:[%s7568_s6 + $0x438] sm:$0xff] %vm2830_vm7, %v2527_v22  ;;  %v1769_v22 = vmul.f32 %v3781_v27, %v5512_v49 }
 0x899   :  { %v2215_v39 = vpop.f32.mrf.mxu1 }
 0x89a   :  { %2841 = vst.msk [vmem:[%s7568_s6 + $0x50] sm:$0xff] %vm2830_vm7, %v2215_v39  ;;  %v3782_v39 = vld [vmem:[%s7564_s0 + $0x128] sm:$0xff] }
 0x89c   :  { %2254 = vmatmul.bf16.gmra.mxu1 %v2002_v59  ;;  %2569 = vmatmul.bf16.gmra.mxu3 %v2065_v21  ;;  %v1770_v59 = vmul.f32 %v3782_v39, %v5512_v49  ;;  %v3783_v21 = vld [vmem:[%s7564_s0 + $0x510] sm:$0xff] }
 0x89e   :  { %v2007_v37 = vpack.c.bf16 %v1770_v59, %v1769_v22 }
 0x89f   :  { %v2530_v26 = vpop.f32.mrf.mxu3 }
 0x8a0   :  { %2967 = vst.msk [vmem:[%s7568_s6 + $0x440] sm:$0xff] %vm2830_vm7, %v2530_v26  ;;  %v1895_v26 = vmul.f32 %v3783_v21, %v5512_v49 }
 0x8a1   :  { %v2217_v41 = vpop.f32.mrf.mxu1 }
 0x8a2   :  { %2842 = vst.msk [vmem:[%s7568_s6 + $0x58] sm:$0xff] %vm2830_vm7, %v2217_v41  ;;  %v3784_v41 = vld [vmem:[%s7564_s0 + $0x518] sm:$0xff] }
 0x8a3   :  { %v1896_v18 = vmul.f32 %v3784_v41, %v5512_v49 }
 0x8a5   :  { %v2070_v16 = vpack.c.bf16 %v1896_v18, %v1895_v26  ;;  %v3801_v18 = vld [vmem:[%s7564_s0 + $0x170] sm:$0xff] }
 0x8a7   :  { %v2532_v54 = vpop.f32.mrf.mxu3 }
 0x8a8   :  { %2968 = vst.msk [vmem:[%s7568_s6 + $0x448] sm:$0xff] %vm2830_vm7, %v2532_v54  ;;  %v1771_v54 = vmul.f32 %v3785_v53, %v5512_v49 }
 0x8a9   :  { %v2220_v7 = vpop.f32.mrf.mxu1 }
 0x8aa   :  { %2843 = vst.msk [vmem:[%s7568_s6 + $0x60] sm:$0xff] %vm2830_vm7, %v2220_v7  ;;  %v3786_v7 = vld [vmem:[%s7564_s0 + $0x138] sm:$0xff] }
 0x8ac   :  { %2259 = vmatmul.bf16.gmra.mxu1 %v2003_v62  ;;  %2574 = vmatmul.bf16.gmra.mxu3 %v2066_v6  ;;  %v1772_v62 = vmul.f32 %v3786_v7, %v5512_v49  ;;  %v3787_v6 = vld [vmem:[%s7564_s0 + $0x520] sm:$0xff] }
 0x8ae   :  { %v2008_v24 = vpack.c.bf16 %v1772_v62, %v1771_v54 }
 0x8af   :  { %v2535_v46 = vpop.f32.mrf.mxu3 }
 0x8b0   :  { %2969 = vst.msk [vmem:[%s7568_s6 + $0x450] sm:$0xff] %vm2830_vm7, %v2535_v46  ;;  %v1897_v46 = vmul.f32 %v3787_v6, %v5512_v49 }
 0x8b1   :  { %v2222_v0 = vpop.f32.mrf.mxu1 }
 0x8b2   :  { %2844 = vst.msk [vmem:[%s7568_s6 + $0x68] sm:$0xff] %vm2830_vm7, %v2222_v0  ;;  %v3788_v0 = vld [vmem:[%s7564_s0 + $0x528] sm:$0xff] }
 0x8b3   :  { %v1898_v32 = vmul.f32 %v3788_v0, %v5512_v49 }
 0x8b5   :  { %v2071_v15 = vpack.c.bf16 %v1898_v32, %v1897_v46  ;;  %v3805_v32 = vld [vmem:[%s7564_s0 + $0x180] sm:$0xff] }
 0x8b7   :  { %v2537_v42 = vpop.f32.mrf.mxu3 }
 0x8b8   :  { %2970 = vst.msk [vmem:[%s7568_s6 + $0x458] sm:$0xff] %vm2830_vm7, %v2537_v42  ;;  %v1773_v42 = vmul.f32 %v3789_v10, %v5512_v49 }
 0x8b9   :  { %v2225_v20 = vpop.f32.mrf.mxu1 }
 0x8ba   :  { %2845 = vst.msk [vmem:[%s7568_s6 + $0x70] sm:$0xff] %vm2830_vm7, %v2225_v20  ;;  %v3790_v20 = vld [vmem:[%s7564_s0 + $0x148] sm:$0xff] }
 0x8bc   :  { %2264 = vmatmul.bf16.gmra.mxu1 %v2004_v47  ;;  %2579 = vmatmul.bf16.gmra.mxu3 %v2067_v33  ;;  %v1774_v47 = vmul.f32 %v3790_v20, %v5512_v49  ;;  %v3791_v33 = vld [vmem:[%s7564_s0 + $0x530] sm:$0xff] }
 0x8be   :  { %v2009_v57 = vpack.c.bf16 %v1774_v47, %v1773_v42 }
 0x8bf   :  { %v2540_v61 = vpop.f32.mrf.mxu3 }
 0x8c0   :  { %2971 = vst.msk [vmem:[%s7568_s6 + $0x460] sm:$0xff] %vm2830_vm7, %v2540_v61  ;;  %v1899_v61 = vmul.f32 %v3791_v33, %v5512_v49 }
 0x8c1   :  { %v2227_v50 = vpop.f32.mrf.mxu1 }
 0x8c2   :  { %2846 = vst.msk [vmem:[%s7568_s6 + $0x78] sm:$0xff] %vm2830_vm7, %v2227_v50  ;;  %v3792_v50 = vld [vmem:[%s7564_s0 + $0x538] sm:$0xff] }
 0x8c3   :  { %v1900_v23 = vmul.f32 %v3792_v50, %v5512_v49 }
 0x8c5   :  { %v2072_v13 = vpack.c.bf16 %v1900_v23, %v1899_v61  ;;  %v3809_v23 = vld [vmem:[%s7564_s0 + $0x190] sm:$0xff] }
 0x8c7   :  { %v2542_v52 = vpop.f32.mrf.mxu3 }
 0x8c8   :  { %2972 = vst.msk [vmem:[%s7568_s6 + $0x468] sm:$0xff] %vm2830_vm7, %v2542_v52  ;;  %v1775_v52 = vmul.f32 %v3793_v45, %v5512_v49 }
 0x8c9   :  { %v2230_v30 = vpop.f32.mrf.mxu1 }
 0x8ca   :  { %2847 = vst.msk [vmem:[%s7568_s6 + $0x80] sm:$0xff] %vm2830_vm7, %v2230_v30  ;;  %v3794_v30 = vld [vmem:[%s7564_s0 + $0x158] sm:$0xff] }
 0x8cc   :  { %2269 = vmatmul.bf16.gmra.mxu1 %v2005_v58  ;;  %2584 = vmatmul.bf16.gmra.mxu3 %v2068_v34  ;;  %v1776_v58 = vmul.f32 %v3794_v30, %v5512_v49  ;;  %v3795_v34 = vld [vmem:[%s7564_s0 + $0x540] sm:$0xff] }
 0x8ce   :  { %v2010_v48 = vpack.c.bf16 %v1776_v58, %v1775_v52 }
 0x8cf   :  { %v2545_v44 = vpop.f32.mrf.mxu3 }
 0x8d0   :  { %2973 = vst.msk [vmem:[%s7568_s6 + $0x470] sm:$0xff] %vm2830_vm7, %v2545_v44  ;;  %v1901_v44 = vmul.f32 %v3795_v34, %v5512_v49 }
 0x8d1   :  { %v2232_v9 = vpop.f32.mrf.mxu1 }
 0x8d2   :  { %2848 = vst.msk [vmem:[%s7568_s6 + $0x88] sm:$0xff] %vm2830_vm7, %v2232_v9  ;;  %v3796_v9 = vld [vmem:[%s7564_s0 + $0x548] sm:$0xff] }
 0x8d3   :  { %v1902_v25 = vmul.f32 %v3796_v9, %v5512_v49 }
 0x8d5   :  { %v2073_v63 = vpack.c.bf16 %v1902_v25, %v1901_v44  ;;  %v3813_v25 = vld [vmem:[%s7564_s0 + $0x1a0] sm:$0xff] }
 0x8d7   :  { %v2547_v19 = vpop.f32.mrf.mxu3 }
 0x8d8   :  { %2974 = vst.msk [vmem:[%s7568_s6 + $0x478] sm:$0xff] %vm2830_vm7, %v2547_v19  ;;  %v1777_v19 = vmul.f32 %v3797_v3, %v5512_v49 }
 0x8d9   :  { %v2235_v14 = vpop.f32.mrf.mxu1 }
 0x8da   :  { %2849 = vst.msk [vmem:[%s7568_s6 + $0x90] sm:$0xff] %vm2830_vm7, %v2235_v14  ;;  %v3798_v14 = vld [vmem:[%s7564_s0 + $0x168] sm:$0xff] }
 0x8dc   :  { %2274 = vmatmul.bf16.gmra.mxu1 %v2006_v35  ;;  %2589 = vmatmul.bf16.gmra.mxu3 %v2069_v17  ;;  %v1778_v35 = vmul.f32 %v3798_v14, %v5512_v49  ;;  %v3799_v17 = vld [vmem:[%s7564_s0 + $0x550] sm:$0xff] }
 0x8de   :  { %v2011_v59 = vpack.c.bf16 %v1778_v35, %v1777_v19 }
 0x8df   :  { %v2550_v1 = vpop.f32.mrf.mxu3 }
 0x8e0   :  { %2975 = vst.msk [vmem:[%s7568_s6 + $0x480] sm:$0xff] %vm2830_vm7, %v2550_v1  ;;  %v1903_v1 = vmul.f32 %v3799_v17, %v5512_v49 }
 0x8e1   :  { %v2237_v8 = vpop.f32.mrf.mxu1 }
 0x8e2   :  { %2850 = vst.msk [vmem:[%s7568_s6 + $0x98] sm:$0xff] %vm2830_vm7, %v2237_v8  ;;  %v3800_v8 = vld [vmem:[%s7564_s0 + $0x558] sm:$0xff] }
 0x8e3   :  { %v1904_v27 = vmul.f32 %v3800_v8, %v5512_v49 }
 0x8e5   :  { %v2074_v21 = vpack.c.bf16 %v1904_v27, %v1903_v1  ;;  %v3817_v27 = vld [vmem:[%s7564_s0 + $0x1b0] sm:$0xff] }
 0x8e7   :  { %v2552_v2 = vpop.f32.mrf.mxu3 }
 0x8e8   :  { %2976 = vst.msk [vmem:[%s7568_s6 + $0x488] sm:$0xff] %vm2830_vm7, %v2552_v2  ;;  %v1779_v2 = vmul.f32 %v3801_v18, %v5512_v49 }
 0x8e9   :  { %v2240_v12 = vpop.f32.mrf.mxu1 }
 0x8ea   :  { %2851 = vst.msk [vmem:[%s7568_s6 + $0xa0] sm:$0xff] %vm2830_vm7, %v2240_v12  ;;  %v3802_v12 = vld [vmem:[%s7564_s0 + $0x178] sm:$0xff] }
 0x8ec   :  { %2279 = vmatmul.bf16.gmra.mxu1 %v2007_v37  ;;  %2594 = vmatmul.bf16.gmra.mxu3 %v2070_v16  ;;  %v1780_v37 = vmul.f32 %v3802_v12, %v5512_v49  ;;  %v3803_v16 = vld [vmem:[%s7564_s0 + $0x560] sm:$0xff] }
 0x8ee   :  { %v2012_v62 = vpack.c.bf16 %v1780_v37, %v1779_v2 }
 0x8ef   :  { %v2555_v43 = vpop.f32.mrf.mxu3 }
 0x8f0   :  { %2977 = vst.msk [vmem:[%s7568_s6 + $0x490] sm:$0xff] %vm2830_vm7, %v2555_v43  ;;  %v1905_v43 = vmul.f32 %v3803_v16, %v5512_v49 }
 0x8f1   :  { %v2242_v28 = vpop.f32.mrf.mxu1 }
 0x8f2   :  { %2852 = vst.msk [vmem:[%s7568_s6 + $0xa8] sm:$0xff] %vm2830_vm7, %v2242_v28  ;;  %v3804_v28 = vld [vmem:[%s7564_s0 + $0x568] sm:$0xff] }
 0x8f3   :  { %v1906_v53 = vmul.f32 %v3804_v28, %v5512_v49 }
 0x8f5   :  { %v2075_v6 = vpack.c.bf16 %v1906_v53, %v1905_v43  ;;  %v3821_v53 = vld [vmem:[%s7564_s0 + $0x1c0] sm:$0xff] }
 0x8f7   :  { %v2557_v31 = vpop.f32.mrf.mxu3 }
 0x8f8   :  { %2978 = vst.msk [vmem:[%s7568_s6 + $0x498] sm:$0xff] %vm2830_vm7, %v2557_v31  ;;  %v1781_v31 = vmul.f32 %v3805_v32, %v5512_v49 }
 0x8f9   :  { %v2245_v40 = vpop.f32.mrf.mxu1 }
 0x8fa   :  { %2853 = vst.msk [vmem:[%s7568_s6 + $0xb0] sm:$0xff] %vm2830_vm7, %v2245_v40  ;;  %v3806_v40 = vld [vmem:[%s7564_s0 + $0x188] sm:$0xff] }
 0x8fc   :  { %2284 = vmatmul.bf16.gmra.mxu1 %v2008_v24  ;;  %2599 = vmatmul.bf16.gmra.mxu3 %v2071_v15  ;;  %v1782_v24 = vmul.f32 %v3806_v40, %v5512_v49  ;;  %v3807_v15 = vld [vmem:[%s7564_s0 + $0x570] sm:$0xff] }
 0x8fe   :  { %v2013_v47 = vpack.c.bf16 %v1782_v24, %v1781_v31 }
 0x8ff   :  { %v2560_v29 = vpop.f32.mrf.mxu3 }
 0x900   :  { %2979 = vst.msk [vmem:[%s7568_s6 + $0x4a0] sm:$0xff] %vm2830_vm7, %v2560_v29  ;;  %v1907_v29 = vmul.f32 %v3807_v15, %v5512_v49 }
 0x901   :  { %v2247_v11 = vpop.f32.mrf.mxu1 }
 0x902   :  { %2854 = vst.msk [vmem:[%s7568_s6 + $0xb8] sm:$0xff] %vm2830_vm7, %v2247_v11  ;;  %v3808_v11 = vld [vmem:[%s7564_s0 + $0x578] sm:$0xff] }
 0x903   :  { %v1908_v10 = vmul.f32 %v3808_v11, %v5512_v49 }
 0x905   :  { %v2076_v33 = vpack.c.bf16 %v1908_v10, %v1907_v29  ;;  %v3825_v10 = vld [vmem:[%s7564_s0 + $0x1d0] sm:$0xff] }
 0x907   :  { %v2562_v36 = vpop.f32.mrf.mxu3 }
 0x908   :  { %2980 = vst.msk [vmem:[%s7568_s6 + $0x4a8] sm:$0xff] %vm2830_vm7, %v2562_v36  ;;  %v1783_v36 = vmul.f32 %v3809_v23, %v5512_v49 }
 0x909   :  { %v2250_v55 = vpop.f32.mrf.mxu1 }
 0x90a   :  { %2855 = vst.msk [vmem:[%s7568_s6 + $0xc0] sm:$0xff] %vm2830_vm7, %v2250_v55  ;;  %v3810_v55 = vld [vmem:[%s7564_s0 + $0x198] sm:$0xff] }
 0x90c   :  { %2289 = vmatmul.bf16.gmra.mxu1 %v2009_v57  ;;  %2604 = vmatmul.bf16.gmra.mxu3 %v2072_v13  ;;  %v1784_v57 = vmul.f32 %v3810_v55, %v5512_v49  ;;  %v3811_v13 = vld [vmem:[%s7564_s0 + $0x580] sm:$0xff] }
 0x90e   :  { %v2014_v58 = vpack.c.bf16 %v1784_v57, %v1783_v36 }
 0x90f   :  { %v2565_v60 = vpop.f32.mrf.mxu3 }
 0x910   :  { %2981 = vst.msk [vmem:[%s7568_s6 + $0x4b0] sm:$0xff] %vm2830_vm7, %v2565_v60  ;;  %v1909_v60 = vmul.f32 %v3811_v13, %v5512_v49 }
 0x911   :  { %v2252_v56 = vpop.f32.mrf.mxu1 }
 0x912   :  { %2856 = vst.msk [vmem:[%s7568_s6 + $0xc8] sm:$0xff] %vm2830_vm7, %v2252_v56  ;;  %v3812_v56 = vld [vmem:[%s7564_s0 + $0x588] sm:$0xff] }
 0x913   :  { %v1910_v45 = vmul.f32 %v3812_v56, %v5512_v49 }
 0x915   :  { %v2077_v34 = vpack.c.bf16 %v1910_v45, %v1909_v60  ;;  %v3829_v45 = vld [vmem:[%s7564_s0 + $0x1e0] sm:$0xff] }
 0x917   :  { %v2567_v51 = vpop.f32.mrf.mxu3 }
 0x918   :  { %2982 = vst.msk [vmem:[%s7568_s6 + $0x4b8] sm:$0xff] %vm2830_vm7, %v2567_v51  ;;  %v1785_v51 = vmul.f32 %v3813_v25, %v5512_v49 }
 0x919   :  { %v2255_v4 = vpop.f32.mrf.mxu1 }
 0x91a   :  { %2857 = vst.msk [vmem:[%s7568_s6 + $0xd0] sm:$0xff] %vm2830_vm7, %v2255_v4  ;;  %v3814_v4 = vld [vmem:[%s7564_s0 + $0x1a8] sm:$0xff] }
 0x91c   :  { %2294 = vmatmul.bf16.gmra.mxu1 %v2010_v48  ;;  %2609 = vmatmul.bf16.gmra.mxu3 %v2073_v63  ;;  %v1786_v48 = vmul.f32 %v3814_v4, %v5512_v49  ;;  %v3815_v63 = vld [vmem:[%s7564_s0 + $0x590] sm:$0xff] }
 0x91e   :  { %v2015_v35 = vpack.c.bf16 %v1786_v48, %v1785_v51 }
 0x91f   :  { %v2570_v5 = vpop.f32.mrf.mxu3 }
 0x920   :  { %2983 = vst.msk [vmem:[%s7568_s6 + $0x4c0] sm:$0xff] %vm2830_vm7, %v2570_v5  ;;  %v1911_v5 = vmul.f32 %v3815_v63, %v5512_v49 }
 0x921   :  { %v2257_v38 = vpop.f32.mrf.mxu1 }
 0x922   :  { %2858 = vst.msk [vmem:[%s7568_s6 + $0xd8] sm:$0xff] %vm2830_vm7, %v2257_v38  ;;  %v3816_v38 = vld [vmem:[%s7564_s0 + $0x598] sm:$0xff] }
 0x923   :  { %v1912_v3 = vmul.f32 %v3816_v38, %v5512_v49 }
 0x925   :  { %v2078_v17 = vpack.c.bf16 %v1912_v3, %v1911_v5  ;;  %v3833_v3 = vld [vmem:[%s7564_s0 + $0x1f0] sm:$0xff] }
 0x927   :  { %v2572_v22 = vpop.f32.mrf.mxu3 }
 0x928   :  { %2984 = vst.msk [vmem:[%s7568_s6 + $0x4c8] sm:$0xff] %vm2830_vm7, %v2572_v22  ;;  %v1787_v22 = vmul.f32 %v3817_v27, %v5512_v49 }
 0x929   :  { %v2260_v39 = vpop.f32.mrf.mxu1 }
 0x92a   :  { %2859 = vst.msk [vmem:[%s7568_s6 + $0xe0] sm:$0xff] %vm2830_vm7, %v2260_v39  ;;  %v3818_v39 = vld [vmem:[%s7564_s0 + $0x1b8] sm:$0xff] }
 0x92c   :  { %2299 = vmatmul.bf16.gmra.mxu1 %v2011_v59  ;;  %2614 = vmatmul.bf16.gmra.mxu3 %v2074_v21  ;;  %v1788_v59 = vmul.f32 %v3818_v39, %v5512_v49  ;;  %v3819_v21 = vld [vmem:[%s7564_s0 + $0x5a0] sm:$0xff] }
 0x92e   :  { %v2016_v37 = vpack.c.bf16 %v1788_v59, %v1787_v22 }
 0x92f   :  { %v2575_v26 = vpop.f32.mrf.mxu3 }
 0x930   :  { %2985 = vst.msk [vmem:[%s7568_s6 + $0x4d0] sm:$0xff] %vm2830_vm7, %v2575_v26  ;;  %v1913_v26 = vmul.f32 %v3819_v21, %v5512_v49 }
 0x931   :  { %v2262_v41 = vpop.f32.mrf.mxu1 }
 0x932   :  { %2860 = vst.msk [vmem:[%s7568_s6 + $0xe8] sm:$0xff] %vm2830_vm7, %v2262_v41  ;;  %v3820_v41 = vld [vmem:[%s7564_s0 + $0x5a8] sm:$0xff] }
 0x933   :  { %v1914_v18 = vmul.f32 %v3820_v41, %v5512_v49 }
 0x935   :  { %v2079_v16 = vpack.c.bf16 %v1914_v18, %v1913_v26  ;;  %v3837_v18 = vld [vmem:[%s7564_s0 + $0x200] sm:$0xff] }
 0x937   :  { %v2577_v54 = vpop.f32.mrf.mxu3 }
 0x938   :  { %2986 = vst.msk [vmem:[%s7568_s6 + $0x4d8] sm:$0xff] %vm2830_vm7, %v2577_v54  ;;  %v1789_v54 = vmul.f32 %v3821_v53, %v5512_v49 }
 0x939   :  { %v2265_v7 = vpop.f32.mrf.mxu1 }
 0x93a   :  { %2861 = vst.msk [vmem:[%s7568_s6 + $0xf0] sm:$0xff] %vm2830_vm7, %v2265_v7  ;;  %v3822_v7 = vld [vmem:[%s7564_s0 + $0x1c8] sm:$0xff] }
 0x93c   :  { %2304 = vmatmul.bf16.gmra.mxu1 %v2012_v62  ;;  %2619 = vmatmul.bf16.gmra.mxu3 %v2075_v6  ;;  %v1790_v62 = vmul.f32 %v3822_v7, %v5512_v49  ;;  %v3823_v6 = vld [vmem:[%s7564_s0 + $0x5b0] sm:$0xff] }
 0x93e   :  { %v2017_v24 = vpack.c.bf16 %v1790_v62, %v1789_v54 }
 0x93f   :  { %v2580_v46 = vpop.f32.mrf.mxu3 }
 0x940   :  { %2987 = vst.msk [vmem:[%s7568_s6 + $0x4e0] sm:$0xff] %vm2830_vm7, %v2580_v46  ;;  %v1915_v46 = vmul.f32 %v3823_v6, %v5512_v49 }
 0x941   :  { %v2267_v0 = vpop.f32.mrf.mxu1 }
 0x942   :  { %2862 = vst.msk [vmem:[%s7568_s6 + $0xf8] sm:$0xff] %vm2830_vm7, %v2267_v0  ;;  %v3824_v0 = vld [vmem:[%s7564_s0 + $0x5b8] sm:$0xff] }
 0x943   :  { %v1916_v32 = vmul.f32 %v3824_v0, %v5512_v49 }
 0x945   :  { %v2080_v15 = vpack.c.bf16 %v1916_v32, %v1915_v46  ;;  %v3841_v32 = vld [vmem:[%s7564_s0 + $0x210] sm:$0xff] }
 0x947   :  { %v2582_v42 = vpop.f32.mrf.mxu3 }
 0x948   :  { %2988 = vst.msk [vmem:[%s7568_s6 + $0x4e8] sm:$0xff] %vm2830_vm7, %v2582_v42  ;;  %v1791_v42 = vmul.f32 %v3825_v10, %v5512_v49 }
 0x949   :  { %v2270_v20 = vpop.f32.mrf.mxu1 }
 0x94a   :  { %2863 = vst.msk [vmem:[%s7568_s6 + $0x100] sm:$0xff] %vm2830_vm7, %v2270_v20  ;;  %v3826_v20 = vld [vmem:[%s7564_s0 + $0x1d8] sm:$0xff] }
 0x94c   :  { %2309 = vmatmul.bf16.gmra.mxu1 %v2013_v47  ;;  %2624 = vmatmul.bf16.gmra.mxu3 %v2076_v33  ;;  %v1792_v47 = vmul.f32 %v3826_v20, %v5512_v49  ;;  %v3827_v33 = vld [vmem:[%s7564_s0 + $0x5c0] sm:$0xff] }
 0x94e   :  { %v2018_v57 = vpack.c.bf16 %v1792_v47, %v1791_v42 }
 0x94f   :  { %v2585_v61 = vpop.f32.mrf.mxu3 }
 0x950   :  { %2989 = vst.msk [vmem:[%s7568_s6 + $0x4f0] sm:$0xff] %vm2830_vm7, %v2585_v61  ;;  %v1917_v61 = vmul.f32 %v3827_v33, %v5512_v49 }
 0x951   :  { %v2272_v50 = vpop.f32.mrf.mxu1 }
 0x952   :  { %2864 = vst.msk [vmem:[%s7568_s6 + $0x108] sm:$0xff] %vm2830_vm7, %v2272_v50  ;;  %v3828_v50 = vld [vmem:[%s7564_s0 + $0x5c8] sm:$0xff] }
 0x953   :  { %v1918_v23 = vmul.f32 %v3828_v50, %v5512_v49 }
 0x955   :  { %v2081_v13 = vpack.c.bf16 %v1918_v23, %v1917_v61  ;;  %v3845_v23 = vld [vmem:[%s7564_s0 + $0x220] sm:$0xff] }
 0x957   :  { %v2587_v52 = vpop.f32.mrf.mxu3 }
 0x958   :  { %2990 = vst.msk [vmem:[%s7568_s6 + $0x4f8] sm:$0xff] %vm2830_vm7, %v2587_v52  ;;  %v1793_v52 = vmul.f32 %v3829_v45, %v5512_v49 }
 0x959   :  { %v2275_v30 = vpop.f32.mrf.mxu1 }
 0x95a   :  { %2865 = vst.msk [vmem:[%s7568_s6 + $0x110] sm:$0xff] %vm2830_vm7, %v2275_v30  ;;  %v3830_v30 = vld [vmem:[%s7564_s0 + $0x1e8] sm:$0xff] }
 0x95c   :  { %2314 = vmatmul.bf16.gmra.mxu1 %v2014_v58  ;;  %2629 = vmatmul.bf16.gmra.mxu3 %v2077_v34  ;;  %v1794_v58 = vmul.f32 %v3830_v30, %v5512_v49  ;;  %v3831_v34 = vld [vmem:[%s7564_s0 + $0x5d0] sm:$0xff] }
 0x95e   :  { %v2019_v48 = vpack.c.bf16 %v1794_v58, %v1793_v52 }
 0x95f   :  { %v2590_v44 = vpop.f32.mrf.mxu3 }
 0x960   :  { %2991 = vst.msk [vmem:[%s7568_s6 + $0x500] sm:$0xff] %vm2830_vm7, %v2590_v44  ;;  %v1919_v44 = vmul.f32 %v3831_v34, %v5512_v49 }
 0x961   :  { %v2277_v9 = vpop.f32.mrf.mxu1 }
 0x962   :  { %2866 = vst.msk [vmem:[%s7568_s6 + $0x118] sm:$0xff] %vm2830_vm7, %v2277_v9  ;;  %v3832_v9 = vld [vmem:[%s7564_s0 + $0x5d8] sm:$0xff] }
 0x963   :  { %v1920_v25 = vmul.f32 %v3832_v9, %v5512_v49 }
 0x965   :  { %v2082_v63 = vpack.c.bf16 %v1920_v25, %v1919_v44  ;;  %v3849_v25 = vld [vmem:[%s7564_s0 + $0x230] sm:$0xff] }
 0x967   :  { %v2592_v19 = vpop.f32.mrf.mxu3 }
 0x968   :  { %2992 = vst.msk [vmem:[%s7568_s6 + $0x508] sm:$0xff] %vm2830_vm7, %v2592_v19  ;;  %v1795_v19 = vmul.f32 %v3833_v3, %v5512_v49 }
 0x969   :  { %v2280_v14 = vpop.f32.mrf.mxu1 }
 0x96a   :  { %2867 = vst.msk [vmem:[%s7568_s6 + $0x120] sm:$0xff] %vm2830_vm7, %v2280_v14  ;;  %v3834_v14 = vld [vmem:[%s7564_s0 + $0x1f8] sm:$0xff] }
 0x96c   :  { %2319 = vmatmul.bf16.gmra.mxu1 %v2015_v35  ;;  %2634 = vmatmul.bf16.gmra.mxu3 %v2078_v17  ;;  %v1796_v35 = vmul.f32 %v3834_v14, %v5512_v49  ;;  %v3835_v17 = vld [vmem:[%s7564_s0 + $0x5e0] sm:$0xff] }
 0x96e   :  { %v2020_v59 = vpack.c.bf16 %v1796_v35, %v1795_v19 }
 0x96f   :  { %v2595_v1 = vpop.f32.mrf.mxu3 }
 0x970   :  { %2993 = vst.msk [vmem:[%s7568_s6 + $0x510] sm:$0xff] %vm2830_vm7, %v2595_v1  ;;  %v1921_v1 = vmul.f32 %v3835_v17, %v5512_v49 }
 0x971   :  { %v2282_v8 = vpop.f32.mrf.mxu1 }
 0x972   :  { %2868 = vst.msk [vmem:[%s7568_s6 + $0x128] sm:$0xff] %vm2830_vm7, %v2282_v8  ;;  %v3836_v8 = vld [vmem:[%s7564_s0 + $0x5e8] sm:$0xff] }
 0x973   :  { %v1922_v27 = vmul.f32 %v3836_v8, %v5512_v49 }
 0x975   :  { %v2083_v21 = vpack.c.bf16 %v1922_v27, %v1921_v1  ;;  %v3853_v27 = vld [vmem:[%s7564_s0 + $0x240] sm:$0xff] }
 0x977   :  { %v2597_v2 = vpop.f32.mrf.mxu3 }
 0x978   :  { %2994 = vst.msk [vmem:[%s7568_s6 + $0x518] sm:$0xff] %vm2830_vm7, %v2597_v2  ;;  %v1797_v2 = vmul.f32 %v3837_v18, %v5512_v49 }
 0x979   :  { %v2285_v12 = vpop.f32.mrf.mxu1 }
 0x97a   :  { %2869 = vst.msk [vmem:[%s7568_s6 + $0x130] sm:$0xff] %vm2830_vm7, %v2285_v12  ;;  %v3838_v12 = vld [vmem:[%s7564_s0 + $0x208] sm:$0xff] }
 0x97c   :  { %2324 = vmatmul.bf16.gmra.mxu1 %v2016_v37  ;;  %2639 = vmatmul.bf16.gmra.mxu3 %v2079_v16  ;;  %v1798_v37 = vmul.f32 %v3838_v12, %v5512_v49  ;;  %v3839_v16 = vld [vmem:[%s7564_s0 + $0x5f0] sm:$0xff] }
 0x97e   :  { %v2021_v62 = vpack.c.bf16 %v1798_v37, %v1797_v2 }
 0x97f   :  { %v2600_v43 = vpop.f32.mrf.mxu3 }
 0x980   :  { %2995 = vst.msk [vmem:[%s7568_s6 + $0x520] sm:$0xff] %vm2830_vm7, %v2600_v43  ;;  %v1923_v43 = vmul.f32 %v3839_v16, %v5512_v49 }
 0x981   :  { %v2287_v28 = vpop.f32.mrf.mxu1 }
 0x982   :  { %2870 = vst.msk [vmem:[%s7568_s6 + $0x138] sm:$0xff] %vm2830_vm7, %v2287_v28  ;;  %v3840_v28 = vld [vmem:[%s7564_s0 + $0x5f8] sm:$0xff] }
 0x983   :  { %v1924_v53 = vmul.f32 %v3840_v28, %v5512_v49 }
 0x985   :  { %v2084_v6 = vpack.c.bf16 %v1924_v53, %v1923_v43  ;;  %v3857_v53 = vld [vmem:[%s7564_s0 + $0x250] sm:$0xff] }
 0x987   :  { %v2602_v31 = vpop.f32.mrf.mxu3 }
 0x988   :  { %2996 = vst.msk [vmem:[%s7568_s6 + $0x528] sm:$0xff] %vm2830_vm7, %v2602_v31  ;;  %v1799_v31 = vmul.f32 %v3841_v32, %v5512_v49 }
 0x989   :  { %v2290_v40 = vpop.f32.mrf.mxu1 }
 0x98a   :  { %2871 = vst.msk [vmem:[%s7568_s6 + $0x140] sm:$0xff] %vm2830_vm7, %v2290_v40  ;;  %v3842_v40 = vld [vmem:[%s7564_s0 + $0x218] sm:$0xff] }
 0x98c   :  { %2329 = vmatmul.bf16.gmra.mxu1 %v2017_v24  ;;  %2644 = vmatmul.bf16.gmra.mxu3 %v2080_v15  ;;  %v1800_v24 = vmul.f32 %v3842_v40, %v5512_v49  ;;  %v3843_v15 = vld [vmem:[%s7564_s0 + $0x600] sm:$0xff] }
 0x98e   :  { %v2022_v47 = vpack.c.bf16 %v1800_v24, %v1799_v31 }
 0x98f   :  { %v2605_v29 = vpop.f32.mrf.mxu3 }
 0x990   :  { %2997 = vst.msk [vmem:[%s7568_s6 + $0x530] sm:$0xff] %vm2830_vm7, %v2605_v29  ;;  %v1925_v29 = vmul.f32 %v3843_v15, %v5512_v49 }
 0x991   :  { %v2292_v11 = vpop.f32.mrf.mxu1 }
 0x992   :  { %2872 = vst.msk [vmem:[%s7568_s6 + $0x148] sm:$0xff] %vm2830_vm7, %v2292_v11  ;;  %v3844_v11 = vld [vmem:[%s7564_s0 + $0x608] sm:$0xff] }
 0x993   :  { %v1926_v10 = vmul.f32 %v3844_v11, %v5512_v49 }
 0x995   :  { %v2085_v33 = vpack.c.bf16 %v1926_v10, %v1925_v29  ;;  %v3861_v10 = vld [vmem:[%s7564_s0 + $0x260] sm:$0xff] }
 0x997   :  { %v2607_v36 = vpop.f32.mrf.mxu3 }
 0x998   :  { %2998 = vst.msk [vmem:[%s7568_s6 + $0x538] sm:$0xff] %vm2830_vm7, %v2607_v36  ;;  %v1801_v36 = vmul.f32 %v3845_v23, %v5512_v49 }
 0x999   :  { %v2295_v55 = vpop.f32.mrf.mxu1 }
 0x99a   :  { %2873 = vst.msk [vmem:[%s7568_s6 + $0x150] sm:$0xff] %vm2830_vm7, %v2295_v55  ;;  %v3846_v55 = vld [vmem:[%s7564_s0 + $0x228] sm:$0xff] }
 0x99c   :  { %2334 = vmatmul.bf16.gmra.mxu1 %v2018_v57  ;;  %2649 = vmatmul.bf16.gmra.mxu3 %v2081_v13  ;;  %v1802_v57 = vmul.f32 %v3846_v55, %v5512_v49  ;;  %v3847_v13 = vld [vmem:[%s7564_s0 + $0x610] sm:$0xff] }
 0x99e   :  { %v2023_v58 = vpack.c.bf16 %v1802_v57, %v1801_v36 }
 0x99f   :  { %v2610_v60 = vpop.f32.mrf.mxu3 }
 0x9a0   :  { %2999 = vst.msk [vmem:[%s7568_s6 + $0x540] sm:$0xff] %vm2830_vm7, %v2610_v60  ;;  %v1927_v60 = vmul.f32 %v3847_v13, %v5512_v49 }
 0x9a1   :  { %v2297_v56 = vpop.f32.mrf.mxu1 }
 0x9a2   :  { %2874 = vst.msk [vmem:[%s7568_s6 + $0x158] sm:$0xff] %vm2830_vm7, %v2297_v56  ;;  %v3848_v56 = vld [vmem:[%s7564_s0 + $0x618] sm:$0xff] }
 0x9a3   :  { %v1928_v45 = vmul.f32 %v3848_v56, %v5512_v49 }
 0x9a5   :  { %v2086_v34 = vpack.c.bf16 %v1928_v45, %v1927_v60  ;;  %v3865_v45 = vld [vmem:[%s7564_s0 + $0x270] sm:$0xff] }
 0x9a7   :  { %v2612_v51 = vpop.f32.mrf.mxu3 }
 0x9a8   :  { %3000 = vst.msk [vmem:[%s7568_s6 + $0x548] sm:$0xff] %vm2830_vm7, %v2612_v51  ;;  %v1803_v51 = vmul.f32 %v3849_v25, %v5512_v49 }
 0x9a9   :  { %v2300_v4 = vpop.f32.mrf.mxu1 }
 0x9aa   :  { %2875 = vst.msk [vmem:[%s7568_s6 + $0x160] sm:$0xff] %vm2830_vm7, %v2300_v4  ;;  %v3850_v4 = vld [vmem:[%s7564_s0 + $0x238] sm:$0xff] }
 0x9ac   :  { %2339 = vmatmul.bf16.gmra.mxu1 %v2019_v48  ;;  %2654 = vmatmul.bf16.gmra.mxu3 %v2082_v63  ;;  %v1804_v48 = vmul.f32 %v3850_v4, %v5512_v49  ;;  %v3851_v63 = vld [vmem:[%s7564_s0 + $0x620] sm:$0xff] }
 0x9ae   :  { %v2024_v35 = vpack.c.bf16 %v1804_v48, %v1803_v51 }
 0x9af   :  { %v2615_v5 = vpop.f32.mrf.mxu3 }
 0x9b0   :  { %3001 = vst.msk [vmem:[%s7568_s6 + $0x550] sm:$0xff] %vm2830_vm7, %v2615_v5  ;;  %v1929_v5 = vmul.f32 %v3851_v63, %v5512_v49 }
 0x9b1   :  { %v2302_v38 = vpop.f32.mrf.mxu1 }
 0x9b2   :  { %2876 = vst.msk [vmem:[%s7568_s6 + $0x168] sm:$0xff] %vm2830_vm7, %v2302_v38  ;;  %v3852_v38 = vld [vmem:[%s7564_s0 + $0x628] sm:$0xff] }
 0x9b3   :  { %v1930_v3 = vmul.f32 %v3852_v38, %v5512_v49 }
 0x9b5   :  { %v2087_v17 = vpack.c.bf16 %v1930_v3, %v1929_v5  ;;  %v3869_v3 = vld [vmem:[%s7564_s0 + $0x280] sm:$0xff] }
 0x9b7   :  { %v2617_v22 = vpop.f32.mrf.mxu3 }
 0x9b8   :  { %3002 = vst.msk [vmem:[%s7568_s6 + $0x558] sm:$0xff] %vm2830_vm7, %v2617_v22  ;;  %v1805_v22 = vmul.f32 %v3853_v27, %v5512_v49 }
 0x9b9   :  { %v2305_v39 = vpop.f32.mrf.mxu1 }
 0x9ba   :  { %2877 = vst.msk [vmem:[%s7568_s6 + $0x170] sm:$0xff] %vm2830_vm7, %v2305_v39  ;;  %v3854_v39 = vld [vmem:[%s7564_s0 + $0x248] sm:$0xff] }
 0x9bc   :  { %2344 = vmatmul.bf16.gmra.mxu1 %v2020_v59  ;;  %2659 = vmatmul.bf16.gmra.mxu3 %v2083_v21  ;;  %v1806_v59 = vmul.f32 %v3854_v39, %v5512_v49  ;;  %v3855_v21 = vld [vmem:[%s7564_s0 + $0x630] sm:$0xff] }
 0x9be   :  { %v2025_v37 = vpack.c.bf16 %v1806_v59, %v1805_v22 }
 0x9bf   :  { %v2620_v26 = vpop.f32.mrf.mxu3 }
 0x9c0   :  { %3003 = vst.msk [vmem:[%s7568_s6 + $0x560] sm:$0xff] %vm2830_vm7, %v2620_v26  ;;  %v1931_v26 = vmul.f32 %v3855_v21, %v5512_v49 }
 0x9c1   :  { %v2307_v41 = vpop.f32.mrf.mxu1 }
 0x9c2   :  { %2878 = vst.msk [vmem:[%s7568_s6 + $0x178] sm:$0xff] %vm2830_vm7, %v2307_v41  ;;  %v3856_v41 = vld [vmem:[%s7564_s0 + $0x638] sm:$0xff] }
 0x9c3   :  { %v1932_v18 = vmul.f32 %v3856_v41, %v5512_v49 }
 0x9c5   :  { %v2088_v16 = vpack.c.bf16 %v1932_v18, %v1931_v26  ;;  %v3873_v18 = vld [vmem:[%s7564_s0 + $0x290] sm:$0xff] }
 0x9c7   :  { %v2622_v54 = vpop.f32.mrf.mxu3 }
 0x9c8   :  { %3004 = vst.msk [vmem:[%s7568_s6 + $0x568] sm:$0xff] %vm2830_vm7, %v2622_v54  ;;  %v1807_v54 = vmul.f32 %v3857_v53, %v5512_v49 }
 0x9c9   :  { %v2310_v7 = vpop.f32.mrf.mxu1 }
 0x9ca   :  { %2879 = vst.msk [vmem:[%s7568_s6 + $0x180] sm:$0xff] %vm2830_vm7, %v2310_v7  ;;  %v3858_v7 = vld [vmem:[%s7564_s0 + $0x258] sm:$0xff] }
 0x9cc   :  { %2349 = vmatmul.bf16.gmra.mxu1 %v2021_v62  ;;  %2664 = vmatmul.bf16.gmra.mxu3 %v2084_v6  ;;  %v1808_v62 = vmul.f32 %v3858_v7, %v5512_v49  ;;  %v3859_v6 = vld [vmem:[%s7564_s0 + $0x640] sm:$0xff] }
 0x9ce   :  { %v2026_v24 = vpack.c.bf16 %v1808_v62, %v1807_v54 }
 0x9cf   :  { %v2625_v46 = vpop.f32.mrf.mxu3 }
 0x9d0   :  { %3005 = vst.msk [vmem:[%s7568_s6 + $0x570] sm:$0xff] %vm2830_vm7, %v2625_v46  ;;  %v1933_v46 = vmul.f32 %v3859_v6, %v5512_v49 }
 0x9d1   :  { %v2312_v0 = vpop.f32.mrf.mxu1 }
 0x9d2   :  { %2880 = vst.msk [vmem:[%s7568_s6 + $0x188] sm:$0xff] %vm2830_vm7, %v2312_v0  ;;  %v3860_v0 = vld [vmem:[%s7564_s0 + $0x648] sm:$0xff] }
 0x9d3   :  { %v1934_v32 = vmul.f32 %v3860_v0, %v5512_v49 }
 0x9d5   :  { %v2089_v15 = vpack.c.bf16 %v1934_v32, %v1933_v46  ;;  %v3877_v32 = vld [vmem:[%s7564_s0 + $0x2a0] sm:$0xff] }
 0x9d7   :  { %v2627_v42 = vpop.f32.mrf.mxu3 }
 0x9d8   :  { %3006 = vst.msk [vmem:[%s7568_s6 + $0x578] sm:$0xff] %vm2830_vm7, %v2627_v42  ;;  %v1809_v42 = vmul.f32 %v3861_v10, %v5512_v49 }
 0x9d9   :  { %v2315_v20 = vpop.f32.mrf.mxu1 }
 0x9da   :  { %2881 = vst.msk [vmem:[%s7568_s6 + $0x190] sm:$0xff] %vm2830_vm7, %v2315_v20  ;;  %v3862_v20 = vld [vmem:[%s7564_s0 + $0x268] sm:$0xff] }
 0x9dc   :  { %2354 = vmatmul.bf16.gmra.mxu1 %v2022_v47  ;;  %2669 = vmatmul.bf16.gmra.mxu3 %v2085_v33  ;;  %v1810_v47 = vmul.f32 %v3862_v20, %v5512_v49  ;;  %v3863_v33 = vld [vmem:[%s7564_s0 + $0x650] sm:$0xff] }
 0x9de   :  { %v2027_v57 = vpack.c.bf16 %v1810_v47, %v1809_v42 }
 0x9df   :  { %v2630_v61 = vpop.f32.mrf.mxu3 }
 0x9e0   :  { %3007 = vst.msk [vmem:[%s7568_s6 + $0x580] sm:$0xff] %vm2830_vm7, %v2630_v61  ;;  %v1935_v61 = vmul.f32 %v3863_v33, %v5512_v49 }
 0x9e1   :  { %v2317_v50 = vpop.f32.mrf.mxu1 }
 0x9e2   :  { %2882 = vst.msk [vmem:[%s7568_s6 + $0x198] sm:$0xff] %vm2830_vm7, %v2317_v50  ;;  %v3864_v50 = vld [vmem:[%s7564_s0 + $0x658] sm:$0xff] }
 0x9e3   :  { %v1936_v23 = vmul.f32 %v3864_v50, %v5512_v49 }
 0x9e5   :  { %v2090_v13 = vpack.c.bf16 %v1936_v23, %v1935_v61  ;;  %v3881_v23 = vld [vmem:[%s7564_s0 + $0x2b0] sm:$0xff] }
 0x9e7   :  { %v2632_v52 = vpop.f32.mrf.mxu3 }
 0x9e8   :  { %3008 = vst.msk [vmem:[%s7568_s6 + $0x588] sm:$0xff] %vm2830_vm7, %v2632_v52  ;;  %v1811_v52 = vmul.f32 %v3865_v45, %v5512_v49 }
 0x9e9   :  { %v2320_v30 = vpop.f32.mrf.mxu1 }
 0x9ea   :  { %2883 = vst.msk [vmem:[%s7568_s6 + $0x1a0] sm:$0xff] %vm2830_vm7, %v2320_v30  ;;  %v3866_v30 = vld [vmem:[%s7564_s0 + $0x278] sm:$0xff] }
 0x9ec   :  { %2359 = vmatmul.bf16.gmra.mxu1 %v2023_v58  ;;  %2674 = vmatmul.bf16.gmra.mxu3 %v2086_v34  ;;  %v1812_v58 = vmul.f32 %v3866_v30, %v5512_v49  ;;  %v3867_v34 = vld [vmem:[%s7564_s0 + $0x660] sm:$0xff] }
 0x9ee   :  { %v2028_v48 = vpack.c.bf16 %v1812_v58, %v1811_v52 }
 0x9ef   :  { %v2635_v44 = vpop.f32.mrf.mxu3 }
 0x9f0   :  { %3009 = vst.msk [vmem:[%s7568_s6 + $0x590] sm:$0xff] %vm2830_vm7, %v2635_v44  ;;  %v1937_v44 = vmul.f32 %v3867_v34, %v5512_v49 }
 0x9f1   :  { %v2322_v9 = vpop.f32.mrf.mxu1 }
 0x9f2   :  { %2884 = vst.msk [vmem:[%s7568_s6 + $0x1a8] sm:$0xff] %vm2830_vm7, %v2322_v9  ;;  %v3868_v9 = vld [vmem:[%s7564_s0 + $0x668] sm:$0xff] }
 0x9f3   :  { %v1938_v25 = vmul.f32 %v3868_v9, %v5512_v49 }
 0x9f5   :  { %v2091_v63 = vpack.c.bf16 %v1938_v25, %v1937_v44  ;;  %v3885_v25 = vld [vmem:[%s7564_s0 + $0x2c0] sm:$0xff] }
 0x9f7   :  { %v2637_v19 = vpop.f32.mrf.mxu3 }
 0x9f8   :  { %3010 = vst.msk [vmem:[%s7568_s6 + $0x598] sm:$0xff] %vm2830_vm7, %v2637_v19  ;;  %v1813_v19 = vmul.f32 %v3869_v3, %v5512_v49 }
 0x9f9   :  { %v2325_v14 = vpop.f32.mrf.mxu1 }
 0x9fa   :  { %2885 = vst.msk [vmem:[%s7568_s6 + $0x1b0] sm:$0xff] %vm2830_vm7, %v2325_v14  ;;  %v3870_v14 = vld [vmem:[%s7564_s0 + $0x288] sm:$0xff] }
 0x9fc   :  { %2364 = vmatmul.bf16.gmra.mxu1 %v2024_v35  ;;  %2679 = vmatmul.bf16.gmra.mxu3 %v2087_v17  ;;  %v1814_v35 = vmul.f32 %v3870_v14, %v5512_v49  ;;  %v3871_v17 = vld [vmem:[%s7564_s0 + $0x670] sm:$0xff] }
 0x9fe   :  { %v2029_v59 = vpack.c.bf16 %v1814_v35, %v1813_v19 }
 0x9ff   :  { %v2640_v1 = vpop.f32.mrf.mxu3 }
 0xa00   :  { %3011 = vst.msk [vmem:[%s7568_s6 + $0x5a0] sm:$0xff] %vm2830_vm7, %v2640_v1  ;;  %v1939_v1 = vmul.f32 %v3871_v17, %v5512_v49 }
 0xa01   :  { %v2327_v8 = vpop.f32.mrf.mxu1 }
 0xa02   :  { %2886 = vst.msk [vmem:[%s7568_s6 + $0x1b8] sm:$0xff] %vm2830_vm7, %v2327_v8  ;;  %v3872_v8 = vld [vmem:[%s7564_s0 + $0x678] sm:$0xff] }
 0xa03   :  { %v1940_v27 = vmul.f32 %v3872_v8, %v5512_v49 }
 0xa05   :  { %v2092_v21 = vpack.c.bf16 %v1940_v27, %v1939_v1  ;;  %v3889_v27 = vld [vmem:[%s7564_s0 + $0x2d0] sm:$0xff] }
 0xa07   :  { %v2642_v2 = vpop.f32.mrf.mxu3 }
 0xa08   :  { %3012 = vst.msk [vmem:[%s7568_s6 + $0x5a8] sm:$0xff] %vm2830_vm7, %v2642_v2  ;;  %v1815_v2 = vmul.f32 %v3873_v18, %v5512_v49 }
 0xa09   :  { %v2330_v12 = vpop.f32.mrf.mxu1 }
 0xa0a   :  { %2887 = vst.msk [vmem:[%s7568_s6 + $0x1c0] sm:$0xff] %vm2830_vm7, %v2330_v12  ;;  %v3874_v12 = vld [vmem:[%s7564_s0 + $0x298] sm:$0xff] }
 0xa0c   :  { %2369 = vmatmul.bf16.gmra.mxu1 %v2025_v37  ;;  %2684 = vmatmul.bf16.gmra.mxu3 %v2088_v16  ;;  %v1816_v37 = vmul.f32 %v3874_v12, %v5512_v49  ;;  %v3875_v16 = vld [vmem:[%s7564_s0 + $0x680] sm:$0xff] }
 0xa0e   :  { %v2030_v62 = vpack.c.bf16 %v1816_v37, %v1815_v2 }
 0xa0f   :  { %v2645_v43 = vpop.f32.mrf.mxu3 }
 0xa10   :  { %3013 = vst.msk [vmem:[%s7568_s6 + $0x5b0] sm:$0xff] %vm2830_vm7, %v2645_v43  ;;  %v1941_v43 = vmul.f32 %v3875_v16, %v5512_v49 }
 0xa11   :  { %v2332_v28 = vpop.f32.mrf.mxu1 }
 0xa12   :  { %2888 = vst.msk [vmem:[%s7568_s6 + $0x1c8] sm:$0xff] %vm2830_vm7, %v2332_v28  ;;  %v3876_v28 = vld [vmem:[%s7564_s0 + $0x688] sm:$0xff] }
 0xa13   :  { %v1942_v53 = vmul.f32 %v3876_v28, %v5512_v49 }
 0xa15   :  { %v2093_v6 = vpack.c.bf16 %v1942_v53, %v1941_v43  ;;  %v3893_v53 = vld [vmem:[%s7564_s0 + $0x2e0] sm:$0xff] }
 0xa17   :  { %v2647_v31 = vpop.f32.mrf.mxu3 }
 0xa18   :  { %3014 = vst.msk [vmem:[%s7568_s6 + $0x5b8] sm:$0xff] %vm2830_vm7, %v2647_v31  ;;  %v1817_v31 = vmul.f32 %v3877_v32, %v5512_v49 }
 0xa19   :  { %v2335_v40 = vpop.f32.mrf.mxu1 }
 0xa1a   :  { %2889 = vst.msk [vmem:[%s7568_s6 + $0x1d0] sm:$0xff] %vm2830_vm7, %v2335_v40  ;;  %v3878_v40 = vld [vmem:[%s7564_s0 + $0x2a8] sm:$0xff] }
 0xa1c   :  { %2374 = vmatmul.bf16.gmra.mxu1 %v2026_v24  ;;  %2689 = vmatmul.bf16.gmra.mxu3 %v2089_v15  ;;  %v1818_v24 = vmul.f32 %v3878_v40, %v5512_v49  ;;  %v3879_v15 = vld [vmem:[%s7564_s0 + $0x690] sm:$0xff] }
 0xa1e   :  { %v2031_v47 = vpack.c.bf16 %v1818_v24, %v1817_v31 }
 0xa1f   :  { %v2650_v29 = vpop.f32.mrf.mxu3 }
 0xa20   :  { %3015 = vst.msk [vmem:[%s7568_s6 + $0x5c0] sm:$0xff] %vm2830_vm7, %v2650_v29  ;;  %v1943_v29 = vmul.f32 %v3879_v15, %v5512_v49 }
 0xa21   :  { %v2337_v11 = vpop.f32.mrf.mxu1 }
 0xa22   :  { %2890 = vst.msk [vmem:[%s7568_s6 + $0x1d8] sm:$0xff] %vm2830_vm7, %v2337_v11  ;;  %v3880_v11 = vld [vmem:[%s7564_s0 + $0x698] sm:$0xff] }
 0xa23   :  { %v1944_v10 = vmul.f32 %v3880_v11, %v5512_v49 }
 0xa25   :  { %v2094_v33 = vpack.c.bf16 %v1944_v10, %v1943_v29  ;;  %v3897_v10 = vld [vmem:[%s7564_s0 + $0x2f0] sm:$0xff] }
 0xa27   :  { %v2652_v36 = vpop.f32.mrf.mxu3 }
 0xa28   :  { %3016 = vst.msk [vmem:[%s7568_s6 + $0x5c8] sm:$0xff] %vm2830_vm7, %v2652_v36  ;;  %v1819_v36 = vmul.f32 %v3881_v23, %v5512_v49 }
 0xa29   :  { %v2340_v55 = vpop.f32.mrf.mxu1 }
 0xa2a   :  { %2891 = vst.msk [vmem:[%s7568_s6 + $0x1e0] sm:$0xff] %vm2830_vm7, %v2340_v55  ;;  %v3882_v55 = vld [vmem:[%s7564_s0 + $0x2b8] sm:$0xff] }
 0xa2c   :  { %2379 = vmatmul.bf16.gmra.mxu1 %v2027_v57  ;;  %2694 = vmatmul.bf16.gmra.mxu3 %v2090_v13  ;;  %v1820_v57 = vmul.f32 %v3882_v55, %v5512_v49  ;;  %v3883_v13 = vld [vmem:[%s7564_s0 + $0x6a0] sm:$0xff] }
 0xa2e   :  { %v2032_v58 = vpack.c.bf16 %v1820_v57, %v1819_v36 }
 0xa2f   :  { %v2655_v60 = vpop.f32.mrf.mxu3 }
 0xa30   :  { %3017 = vst.msk [vmem:[%s7568_s6 + $0x5d0] sm:$0xff] %vm2830_vm7, %v2655_v60  ;;  %v1945_v60 = vmul.f32 %v3883_v13, %v5512_v49 }
 0xa31   :  { %v2342_v56 = vpop.f32.mrf.mxu1 }
 0xa32   :  { %2892 = vst.msk [vmem:[%s7568_s6 + $0x1e8] sm:$0xff] %vm2830_vm7, %v2342_v56  ;;  %v3884_v56 = vld [vmem:[%s7564_s0 + $0x6a8] sm:$0xff] }
 0xa33   :  { %v1946_v45 = vmul.f32 %v3884_v56, %v5512_v49 }
 0xa35   :  { %v2095_v34 = vpack.c.bf16 %v1946_v45, %v1945_v60  ;;  %v3901_v45 = vld [vmem:[%s7564_s0 + $0x300] sm:$0xff] }
 0xa37   :  { %v2657_v51 = vpop.f32.mrf.mxu3 }
 0xa38   :  { %3018 = vst.msk [vmem:[%s7568_s6 + $0x5d8] sm:$0xff] %vm2830_vm7, %v2657_v51  ;;  %v1821_v51 = vmul.f32 %v3885_v25, %v5512_v49 }
 0xa39   :  { %v2345_v4 = vpop.f32.mrf.mxu1 }
 0xa3a   :  { %2893 = vst.msk [vmem:[%s7568_s6 + $0x1f0] sm:$0xff] %vm2830_vm7, %v2345_v4  ;;  %v3886_v4 = vld [vmem:[%s7564_s0 + $0x2c8] sm:$0xff] }
 0xa3c   :  { %2384 = vmatmul.bf16.gmra.mxu1 %v2028_v48  ;;  %2699 = vmatmul.bf16.gmra.mxu3 %v2091_v63  ;;  %v1822_v48 = vmul.f32 %v3886_v4, %v5512_v49  ;;  %v3887_v63 = vld [vmem:[%s7564_s0 + $0x6b0] sm:$0xff] }
 0xa3e   :  { %v2033_v35 = vpack.c.bf16 %v1822_v48, %v1821_v51 }
 0xa3f   :  { %v2660_v5 = vpop.f32.mrf.mxu3 }
 0xa40   :  { %3019 = vst.msk [vmem:[%s7568_s6 + $0x5e0] sm:$0xff] %vm2830_vm7, %v2660_v5  ;;  %v1947_v5 = vmul.f32 %v3887_v63, %v5512_v49 }
 0xa41   :  { %v2347_v38 = vpop.f32.mrf.mxu1 }
 0xa42   :  { %2894 = vst.msk [vmem:[%s7568_s6 + $0x1f8] sm:$0xff] %vm2830_vm7, %v2347_v38  ;;  %v3888_v38 = vld [vmem:[%s7564_s0 + $0x6b8] sm:$0xff] }
 0xa43   :  { %v1948_v3 = vmul.f32 %v3888_v38, %v5512_v49 }
 0xa45   :  { %v2096_v17 = vpack.c.bf16 %v1948_v3, %v1947_v5  ;;  %v3905_v3 = vld [vmem:[%s7564_s0 + $0x310] sm:$0xff] }
 0xa47   :  { %v2662_v22 = vpop.f32.mrf.mxu3 }
 0xa48   :  { %3020 = vst.msk [vmem:[%s7568_s6 + $0x5e8] sm:$0xff] %vm2830_vm7, %v2662_v22  ;;  %v1823_v22 = vmul.f32 %v3889_v27, %v5512_v49 }
 0xa49   :  { %v2350_v39 = vpop.f32.mrf.mxu1 }
 0xa4a   :  { %2895 = vst.msk [vmem:[%s7568_s6 + $0x200] sm:$0xff] %vm2830_vm7, %v2350_v39  ;;  %v3890_v39 = vld [vmem:[%s7564_s0 + $0x2d8] sm:$0xff] }
 0xa4c   :  { %2389 = vmatmul.bf16.gmra.mxu1 %v2029_v59  ;;  %2704 = vmatmul.bf16.gmra.mxu3 %v2092_v21  ;;  %v1824_v59 = vmul.f32 %v3890_v39, %v5512_v49  ;;  %v3891_v21 = vld [vmem:[%s7564_s0 + $0x6c0] sm:$0xff] }
 0xa4e   :  { %v2034_v37 = vpack.c.bf16 %v1824_v59, %v1823_v22 }
 0xa4f   :  { %v2665_v26 = vpop.f32.mrf.mxu3 }
 0xa50   :  { %3021 = vst.msk [vmem:[%s7568_s6 + $0x5f0] sm:$0xff] %vm2830_vm7, %v2665_v26  ;;  %v1949_v26 = vmul.f32 %v3891_v21, %v5512_v49 }
 0xa51   :  { %v2352_v41 = vpop.f32.mrf.mxu1 }
 0xa52   :  { %2896 = vst.msk [vmem:[%s7568_s6 + $0x208] sm:$0xff] %vm2830_vm7, %v2352_v41  ;;  %v3892_v41 = vld [vmem:[%s7564_s0 + $0x6c8] sm:$0xff] }
 0xa53   :  { %v1950_v18 = vmul.f32 %v3892_v41, %v5512_v49 }
 0xa55   :  { %v2097_v16 = vpack.c.bf16 %v1950_v18, %v1949_v26  ;;  %v3909_v18 = vld [vmem:[%s7564_s0 + $0x320] sm:$0xff] }
 0xa57   :  { %v2667_v54 = vpop.f32.mrf.mxu3 }
 0xa58   :  { %3022 = vst.msk [vmem:[%s7568_s6 + $0x5f8] sm:$0xff] %vm2830_vm7, %v2667_v54  ;;  %v1825_v54 = vmul.f32 %v3893_v53, %v5512_v49 }
 0xa59   :  { %v2355_v7 = vpop.f32.mrf.mxu1 }
 0xa5a   :  { %2897 = vst.msk [vmem:[%s7568_s6 + $0x210] sm:$0xff] %vm2830_vm7, %v2355_v7  ;;  %v3894_v7 = vld [vmem:[%s7564_s0 + $0x2e8] sm:$0xff] }
 0xa5c   :  { %2394 = vmatmul.bf16.gmra.mxu1 %v2030_v62  ;;  %2709 = vmatmul.bf16.gmra.mxu3 %v2093_v6  ;;  %v1826_v62 = vmul.f32 %v3894_v7, %v5512_v49  ;;  %v3895_v6 = vld [vmem:[%s7564_s0 + $0x6d0] sm:$0xff] }
 0xa5e   :  { %v2035_v24 = vpack.c.bf16 %v1826_v62, %v1825_v54 }
 0xa5f   :  { %v2670_v46 = vpop.f32.mrf.mxu3 }
 0xa60   :  { %3023 = vst.msk [vmem:[%s7568_s6 + $0x600] sm:$0xff] %vm2830_vm7, %v2670_v46  ;;  %v1951_v46 = vmul.f32 %v3895_v6, %v5512_v49 }
 0xa61   :  { %v2357_v0 = vpop.f32.mrf.mxu1 }
 0xa62   :  { %2898 = vst.msk [vmem:[%s7568_s6 + $0x218] sm:$0xff] %vm2830_vm7, %v2357_v0  ;;  %v3896_v0 = vld [vmem:[%s7564_s0 + $0x6d8] sm:$0xff] }
 0xa63   :  { %v1952_v32 = vmul.f32 %v3896_v0, %v5512_v49 }
 0xa65   :  { %v2098_v15 = vpack.c.bf16 %v1952_v32, %v1951_v46  ;;  %v3913_v32 = vld [vmem:[%s7564_s0 + $0x330] sm:$0xff] }
 0xa67   :  { %v2672_v42 = vpop.f32.mrf.mxu3 }
 0xa68   :  { %3024 = vst.msk [vmem:[%s7568_s6 + $0x608] sm:$0xff] %vm2830_vm7, %v2672_v42  ;;  %v1827_v42 = vmul.f32 %v3897_v10, %v5512_v49 }
 0xa69   :  { %v2360_v20 = vpop.f32.mrf.mxu1 }
 0xa6a   :  { %2899 = vst.msk [vmem:[%s7568_s6 + $0x220] sm:$0xff] %vm2830_vm7, %v2360_v20  ;;  %v3898_v20 = vld [vmem:[%s7564_s0 + $0x2f8] sm:$0xff] }
 0xa6c   :  { %2399 = vmatmul.bf16.gmra.mxu1 %v2031_v47  ;;  %2714 = vmatmul.bf16.gmra.mxu3 %v2094_v33  ;;  %v1828_v47 = vmul.f32 %v3898_v20, %v5512_v49  ;;  %v3899_v33 = vld [vmem:[%s7564_s0 + $0x6e0] sm:$0xff] }
 0xa6e   :  { %v2036_v57 = vpack.c.bf16 %v1828_v47, %v1827_v42 }
 0xa6f   :  { %v2675_v61 = vpop.f32.mrf.mxu3 }
 0xa70   :  { %3025 = vst.msk [vmem:[%s7568_s6 + $0x610] sm:$0xff] %vm2830_vm7, %v2675_v61  ;;  %v1953_v61 = vmul.f32 %v3899_v33, %v5512_v49 }
 0xa71   :  { %v2362_v50 = vpop.f32.mrf.mxu1 }
 0xa72   :  { %2900 = vst.msk [vmem:[%s7568_s6 + $0x228] sm:$0xff] %vm2830_vm7, %v2362_v50  ;;  %v3900_v50 = vld [vmem:[%s7564_s0 + $0x6e8] sm:$0xff] }
 0xa73   :  { %v1954_v23 = vmul.f32 %v3900_v50, %v5512_v49 }
 0xa75   :  { %v2099_v13 = vpack.c.bf16 %v1954_v23, %v1953_v61  ;;  %v3917_v23 = vld [vmem:[%s7564_s0 + $0x340] sm:$0xff] }
 0xa77   :  { %v2677_v52 = vpop.f32.mrf.mxu3 }
 0xa78   :  { %3026 = vst.msk [vmem:[%s7568_s6 + $0x618] sm:$0xff] %vm2830_vm7, %v2677_v52  ;;  %v1829_v52 = vmul.f32 %v3901_v45, %v5512_v49 }
 0xa79   :  { %v2365_v30 = vpop.f32.mrf.mxu1 }
 0xa7a   :  { %2901 = vst.msk [vmem:[%s7568_s6 + $0x230] sm:$0xff] %vm2830_vm7, %v2365_v30  ;;  %v3902_v30 = vld [vmem:[%s7564_s0 + $0x308] sm:$0xff] }
 0xa7c   :  { %2404 = vmatmul.bf16.gmra.mxu1 %v2032_v58  ;;  %2719 = vmatmul.bf16.gmra.mxu3 %v2095_v34  ;;  %v1830_v58 = vmul.f32 %v3902_v30, %v5512_v49  ;;  %v3903_v34 = vld [vmem:[%s7564_s0 + $0x6f0] sm:$0xff] }
 0xa7e   :  { %v2037_v48 = vpack.c.bf16 %v1830_v58, %v1829_v52 }
 0xa7f   :  { %v2680_v44 = vpop.f32.mrf.mxu3 }
 0xa80   :  { %3027 = vst.msk [vmem:[%s7568_s6 + $0x620] sm:$0xff] %vm2830_vm7, %v2680_v44  ;;  %v1955_v44 = vmul.f32 %v3903_v34, %v5512_v49 }
 0xa81   :  { %v2367_v9 = vpop.f32.mrf.mxu1 }
 0xa82   :  { %2902 = vst.msk [vmem:[%s7568_s6 + $0x238] sm:$0xff] %vm2830_vm7, %v2367_v9  ;;  %v3904_v9 = vld [vmem:[%s7564_s0 + $0x6f8] sm:$0xff] }
 0xa83   :  { %v1956_v25 = vmul.f32 %v3904_v9, %v5512_v49 }
 0xa85   :  { %v2100_v63 = vpack.c.bf16 %v1956_v25, %v1955_v44  ;;  %v3921_v25 = vld [vmem:[%s7564_s0 + $0x350] sm:$0xff] }
 0xa87   :  { %v2682_v19 = vpop.f32.mrf.mxu3 }
 0xa88   :  { %3028 = vst.msk [vmem:[%s7568_s6 + $0x628] sm:$0xff] %vm2830_vm7, %v2682_v19  ;;  %v1831_v19 = vmul.f32 %v3905_v3, %v5512_v49 }
 0xa89   :  { %v2370_v14 = vpop.f32.mrf.mxu1 }
 0xa8a   :  { %2903 = vst.msk [vmem:[%s7568_s6 + $0x240] sm:$0xff] %vm2830_vm7, %v2370_v14  ;;  %v3906_v14 = vld [vmem:[%s7564_s0 + $0x318] sm:$0xff] }
 0xa8c   :  { %2409 = vmatmul.bf16.gmra.mxu1 %v2033_v35  ;;  %2724 = vmatmul.bf16.gmra.mxu3 %v2096_v17  ;;  %v1832_v35 = vmul.f32 %v3906_v14, %v5512_v49  ;;  %v3907_v17 = vld [vmem:[%s7564_s0 + $0x700] sm:$0xff] }
 0xa8e   :  { %v2038_v59 = vpack.c.bf16 %v1832_v35, %v1831_v19 }
 0xa8f   :  { %v2685_v1 = vpop.f32.mrf.mxu3 }
 0xa90   :  { %3029 = vst.msk [vmem:[%s7568_s6 + $0x630] sm:$0xff] %vm2830_vm7, %v2685_v1  ;;  %v1957_v1 = vmul.f32 %v3907_v17, %v5512_v49 }
 0xa91   :  { %v2372_v8 = vpop.f32.mrf.mxu1 }
 0xa92   :  { %2904 = vst.msk [vmem:[%s7568_s6 + $0x248] sm:$0xff] %vm2830_vm7, %v2372_v8  ;;  %v3908_v8 = vld [vmem:[%s7564_s0 + $0x708] sm:$0xff] }
 0xa93   :  { %v1958_v27 = vmul.f32 %v3908_v8, %v5512_v49 }
 0xa95   :  { %v2101_v21 = vpack.c.bf16 %v1958_v27, %v1957_v1  ;;  %v3925_v27 = vld [vmem:[%s7564_s0 + $0x360] sm:$0xff] }
 0xa97   :  { %v2687_v2 = vpop.f32.mrf.mxu3 }
 0xa98   :  { %3030 = vst.msk [vmem:[%s7568_s6 + $0x638] sm:$0xff] %vm2830_vm7, %v2687_v2  ;;  %v1833_v2 = vmul.f32 %v3909_v18, %v5512_v49 }
 0xa99   :  { %v2375_v12 = vpop.f32.mrf.mxu1 }
 0xa9a   :  { %2905 = vst.msk [vmem:[%s7568_s6 + $0x250] sm:$0xff] %vm2830_vm7, %v2375_v12  ;;  %v3910_v12 = vld [vmem:[%s7564_s0 + $0x328] sm:$0xff] }
 0xa9c   :  { %2414 = vmatmul.bf16.gmra.mxu1 %v2034_v37  ;;  %2729 = vmatmul.bf16.gmra.mxu3 %v2097_v16  ;;  %v1834_v37 = vmul.f32 %v3910_v12, %v5512_v49  ;;  %v3911_v16 = vld [vmem:[%s7564_s0 + $0x710] sm:$0xff] }
 0xa9e   :  { %v2039_v62 = vpack.c.bf16 %v1834_v37, %v1833_v2 }
 0xa9f   :  { %v2690_v43 = vpop.f32.mrf.mxu3 }
 0xaa0   :  { %3031 = vst.msk [vmem:[%s7568_s6 + $0x640] sm:$0xff] %vm2830_vm7, %v2690_v43  ;;  %v1959_v43 = vmul.f32 %v3911_v16, %v5512_v49 }
 0xaa1   :  { %v2377_v28 = vpop.f32.mrf.mxu1 }
 0xaa2   :  { %2906 = vst.msk [vmem:[%s7568_s6 + $0x258] sm:$0xff] %vm2830_vm7, %v2377_v28  ;;  %v3912_v28 = vld [vmem:[%s7564_s0 + $0x718] sm:$0xff] }
 0xaa3   :  { %v1960_v53 = vmul.f32 %v3912_v28, %v5512_v49 }
 0xaa5   :  { %v2102_v6 = vpack.c.bf16 %v1960_v53, %v1959_v43  ;;  %v3929_v53 = vld [vmem:[%s7564_s0 + $0x370] sm:$0xff] }
 0xaa7   :  { %v2692_v31 = vpop.f32.mrf.mxu3 }
 0xaa8   :  { %3032 = vst.msk [vmem:[%s7568_s6 + $0x648] sm:$0xff] %vm2830_vm7, %v2692_v31  ;;  %v1835_v31 = vmul.f32 %v3913_v32, %v5512_v49 }
 0xaa9   :  { %v2380_v40 = vpop.f32.mrf.mxu1 }
 0xaaa   :  { %2907 = vst.msk [vmem:[%s7568_s6 + $0x260] sm:$0xff] %vm2830_vm7, %v2380_v40  ;;  %v3914_v40 = vld [vmem:[%s7564_s0 + $0x338] sm:$0xff] }
 0xaac   :  { %2419 = vmatmul.bf16.gmra.mxu1 %v2035_v24  ;;  %2734 = vmatmul.bf16.gmra.mxu3 %v2098_v15  ;;  %v1836_v24 = vmul.f32 %v3914_v40, %v5512_v49  ;;  %v3915_v15 = vld [vmem:[%s7564_s0 + $0x720] sm:$0xff] }
 0xaae   :  { %v2040_v47 = vpack.c.bf16 %v1836_v24, %v1835_v31 }
 0xaaf   :  { %v2695_v29 = vpop.f32.mrf.mxu3 }
 0xab0   :  { %3033 = vst.msk [vmem:[%s7568_s6 + $0x650] sm:$0xff] %vm2830_vm7, %v2695_v29  ;;  %v1961_v29 = vmul.f32 %v3915_v15, %v5512_v49 }
 0xab1   :  { %v2382_v11 = vpop.f32.mrf.mxu1 }
 0xab2   :  { %2908 = vst.msk [vmem:[%s7568_s6 + $0x268] sm:$0xff] %vm2830_vm7, %v2382_v11  ;;  %v3916_v11 = vld [vmem:[%s7564_s0 + $0x728] sm:$0xff] }
 0xab3   :  { %v1962_v10 = vmul.f32 %v3916_v11, %v5512_v49 }
 0xab5   :  { %v2103_v33 = vpack.c.bf16 %v1962_v10, %v1961_v29  ;;  %v3933_v10 = vld [vmem:[%s7564_s0 + $0x380] sm:$0xff] }
 0xab7   :  { %v2697_v36 = vpop.f32.mrf.mxu3 }
 0xab8   :  { %3034 = vst.msk [vmem:[%s7568_s6 + $0x658] sm:$0xff] %vm2830_vm7, %v2697_v36  ;;  %v1837_v36 = vmul.f32 %v3917_v23, %v5512_v49 }
 0xab9   :  { %v2385_v55 = vpop.f32.mrf.mxu1 }
 0xaba   :  { %2909 = vst.msk [vmem:[%s7568_s6 + $0x270] sm:$0xff] %vm2830_vm7, %v2385_v55  ;;  %v3918_v55 = vld [vmem:[%s7564_s0 + $0x348] sm:$0xff] }
 0xabc   :  { %2424 = vmatmul.bf16.gmra.mxu1 %v2036_v57  ;;  %2739 = vmatmul.bf16.gmra.mxu3 %v2099_v13  ;;  %v1838_v57 = vmul.f32 %v3918_v55, %v5512_v49  ;;  %v3919_v13 = vld [vmem:[%s7564_s0 + $0x730] sm:$0xff] }
 0xabe   :  { %v2041_v58 = vpack.c.bf16 %v1838_v57, %v1837_v36 }
 0xabf   :  { %v2700_v60 = vpop.f32.mrf.mxu3 }
 0xac0   :  { %3035 = vst.msk [vmem:[%s7568_s6 + $0x660] sm:$0xff] %vm2830_vm7, %v2700_v60  ;;  %v1963_v60 = vmul.f32 %v3919_v13, %v5512_v49 }
 0xac1   :  { %v2387_v56 = vpop.f32.mrf.mxu1 }
 0xac2   :  { %2910 = vst.msk [vmem:[%s7568_s6 + $0x278] sm:$0xff] %vm2830_vm7, %v2387_v56  ;;  %v3920_v56 = vld [vmem:[%s7564_s0 + $0x738] sm:$0xff] }
 0xac3   :  { %v1964_v45 = vmul.f32 %v3920_v56, %v5512_v49 }
 0xac5   :  { %v2104_v34 = vpack.c.bf16 %v1964_v45, %v1963_v60  ;;  %v3937_v45 = vld [vmem:[%s7564_s0 + $0x390] sm:$0xff] }
 0xac7   :  { %v2702_v51 = vpop.f32.mrf.mxu3 }
 0xac8   :  { %3036 = vst.msk [vmem:[%s7568_s6 + $0x668] sm:$0xff] %vm2830_vm7, %v2702_v51  ;;  %v1839_v51 = vmul.f32 %v3921_v25, %v5512_v49 }
 0xac9   :  { %v2390_v4 = vpop.f32.mrf.mxu1 }
 0xaca   :  { %2911 = vst.msk [vmem:[%s7568_s6 + $0x280] sm:$0xff] %vm2830_vm7, %v2390_v4  ;;  %v3922_v4 = vld [vmem:[%s7564_s0 + $0x358] sm:$0xff] }
 0xacc   :  { %2429 = vmatmul.bf16.gmra.mxu1 %v2037_v48  ;;  %2744 = vmatmul.bf16.gmra.mxu3 %v2100_v63  ;;  %v1840_v48 = vmul.f32 %v3922_v4, %v5512_v49  ;;  %v3923_v63 = vld [vmem:[%s7564_s0 + $0x740] sm:$0xff] }
 0xace   :  { %v2042_v35 = vpack.c.bf16 %v1840_v48, %v1839_v51 }
 0xacf   :  { %v2705_v5 = vpop.f32.mrf.mxu3 }
 0xad0   :  { %3037 = vst.msk [vmem:[%s7568_s6 + $0x670] sm:$0xff] %vm2830_vm7, %v2705_v5  ;;  %v1965_v5 = vmul.f32 %v3923_v63, %v5512_v49 }
 0xad1   :  { %v2392_v38 = vpop.f32.mrf.mxu1 }
 0xad2   :  { %2912 = vst.msk [vmem:[%s7568_s6 + $0x288] sm:$0xff] %vm2830_vm7, %v2392_v38  ;;  %v3924_v38 = vld [vmem:[%s7564_s0 + $0x748] sm:$0xff] }
 0xad3   :  { %v1966_v3 = vmul.f32 %v3924_v38, %v5512_v49 }
 0xad5   :  { %v2105_v17 = vpack.c.bf16 %v1966_v3, %v1965_v5  ;;  %v3941_v3 = vld [vmem:[%s7564_s0 + $0x3a0] sm:$0xff] }
 0xad7   :  { %v2707_v22 = vpop.f32.mrf.mxu3 }
 0xad8   :  { %3038 = vst.msk [vmem:[%s7568_s6 + $0x678] sm:$0xff] %vm2830_vm7, %v2707_v22  ;;  %v1841_v22 = vmul.f32 %v3925_v27, %v5512_v49 }
 0xad9   :  { %v2395_v39 = vpop.f32.mrf.mxu1 }
 0xada   :  { %2913 = vst.msk [vmem:[%s7568_s6 + $0x290] sm:$0xff] %vm2830_vm7, %v2395_v39  ;;  %v3926_v39 = vld [vmem:[%s7564_s0 + $0x368] sm:$0xff] }
 0xadc   :  { %2434 = vmatmul.bf16.gmra.mxu1 %v2038_v59  ;;  %2749 = vmatmul.bf16.gmra.mxu3 %v2101_v21  ;;  %v1842_v59 = vmul.f32 %v3926_v39, %v5512_v49  ;;  %v3927_v21 = vld [vmem:[%s7564_s0 + $0x750] sm:$0xff] }
 0xade   :  { %v2043_v37 = vpack.c.bf16 %v1842_v59, %v1841_v22 }
 0xadf   :  { %v2710_v26 = vpop.f32.mrf.mxu3 }
 0xae0   :  { %3039 = vst.msk [vmem:[%s7568_s6 + $0x680] sm:$0xff] %vm2830_vm7, %v2710_v26  ;;  %v1967_v26 = vmul.f32 %v3927_v21, %v5512_v49 }
 0xae1   :  { %v2397_v41 = vpop.f32.mrf.mxu1 }
 0xae2   :  { %2914 = vst.msk [vmem:[%s7568_s6 + $0x298] sm:$0xff] %vm2830_vm7, %v2397_v41  ;;  %v3928_v41 = vld [vmem:[%s7564_s0 + $0x758] sm:$0xff] }
 0xae3   :  { %v1968_v18 = vmul.f32 %v3928_v41, %v5512_v49 }
 0xae5   :  { %v2106_v16 = vpack.c.bf16 %v1968_v18, %v1967_v26  ;;  %v3945_v18 = vld [vmem:[%s7564_s0 + $0x3b0] sm:$0xff] }
 0xae7   :  { %v2712_v54 = vpop.f32.mrf.mxu3 }
 0xae8   :  { %3040 = vst.msk [vmem:[%s7568_s6 + $0x688] sm:$0xff] %vm2830_vm7, %v2712_v54  ;;  %v1843_v54 = vmul.f32 %v3929_v53, %v5512_v49 }
 0xae9   :  { %v2400_v7 = vpop.f32.mrf.mxu1 }
 0xaea   :  { %2915 = vst.msk [vmem:[%s7568_s6 + $0x2a0] sm:$0xff] %vm2830_vm7, %v2400_v7  ;;  %v3930_v7 = vld [vmem:[%s7564_s0 + $0x378] sm:$0xff] }
 0xaec   :  { %2439 = vmatmul.bf16.gmra.mxu1 %v2039_v62  ;;  %2754 = vmatmul.bf16.gmra.mxu3 %v2102_v6  ;;  %v1844_v62 = vmul.f32 %v3930_v7, %v5512_v49  ;;  %v3931_v6 = vld [vmem:[%s7564_s0 + $0x760] sm:$0xff] }
 0xaee   :  { %v2044_v24 = vpack.c.bf16 %v1844_v62, %v1843_v54 }
 0xaef   :  { %v2715_v46 = vpop.f32.mrf.mxu3 }
 0xaf0   :  { %3041 = vst.msk [vmem:[%s7568_s6 + $0x690] sm:$0xff] %vm2830_vm7, %v2715_v46  ;;  %v1969_v46 = vmul.f32 %v3931_v6, %v5512_v49 }
 0xaf1   :  { %v2402_v0 = vpop.f32.mrf.mxu1 }
 0xaf2   :  { %2916 = vst.msk [vmem:[%s7568_s6 + $0x2a8] sm:$0xff] %vm2830_vm7, %v2402_v0  ;;  %v3932_v0 = vld [vmem:[%s7564_s0 + $0x768] sm:$0xff] }
 0xaf3   :  { %v1970_v32 = vmul.f32 %v3932_v0, %v5512_v49 }
 0xaf5   :  { %v2107_v15 = vpack.c.bf16 %v1970_v32, %v1969_v46  ;;  %v3949_v32 = vld [vmem:[%s7564_s0 + $0x3c0] sm:$0xff] }
 0xaf7   :  { %v2717_v42 = vpop.f32.mrf.mxu3 }
 0xaf8   :  { %3042 = vst.msk [vmem:[%s7568_s6 + $0x698] sm:$0xff] %vm2830_vm7, %v2717_v42  ;;  %v1845_v42 = vmul.f32 %v3933_v10, %v5512_v49 }
 0xaf9   :  { %v2405_v20 = vpop.f32.mrf.mxu1 }
 0xafa   :  { %2917 = vst.msk [vmem:[%s7568_s6 + $0x2b0] sm:$0xff] %vm2830_vm7, %v2405_v20  ;;  %v3934_v20 = vld [vmem:[%s7564_s0 + $0x388] sm:$0xff] }
 0xafc   :  { %2444 = vmatmul.bf16.gmra.mxu1 %v2040_v47  ;;  %2759 = vmatmul.bf16.gmra.mxu3 %v2103_v33  ;;  %v1846_v47 = vmul.f32 %v3934_v20, %v5512_v49  ;;  %v3935_v33 = vld [vmem:[%s7564_s0 + $0x770] sm:$0xff] }
 0xafe   :  { %v2045_v57 = vpack.c.bf16 %v1846_v47, %v1845_v42 }
 0xaff   :  { %v2720_v61 = vpop.f32.mrf.mxu3 }
 0xb00   :  { %3043 = vst.msk [vmem:[%s7568_s6 + $0x6a0] sm:$0xff] %vm2830_vm7, %v2720_v61  ;;  %v1971_v61 = vmul.f32 %v3935_v33, %v5512_v49 }
 0xb01   :  { %v2407_v50 = vpop.f32.mrf.mxu1 }
 0xb02   :  { %2918 = vst.msk [vmem:[%s7568_s6 + $0x2b8] sm:$0xff] %vm2830_vm7, %v2407_v50  ;;  %v3936_v50 = vld [vmem:[%s7564_s0 + $0x778] sm:$0xff] }
 0xb03   :  { %v1972_v23 = vmul.f32 %v3936_v50, %v5512_v49 }
 0xb05   :  { %v2108_v13 = vpack.c.bf16 %v1972_v23, %v1971_v61  ;;  %v3953_v23 = vld [vmem:[%s7564_s0 + $0x3d0] sm:$0xff] }
 0xb07   :  { %v2722_v52 = vpop.f32.mrf.mxu3 }
 0xb08   :  { %3044 = vst.msk [vmem:[%s7568_s6 + $0x6a8] sm:$0xff] %vm2830_vm7, %v2722_v52  ;;  %v1847_v52 = vmul.f32 %v3937_v45, %v5512_v49 }
 0xb09   :  { %v2410_v30 = vpop.f32.mrf.mxu1 }
 0xb0a   :  { %2919 = vst.msk [vmem:[%s7568_s6 + $0x2c0] sm:$0xff] %vm2830_vm7, %v2410_v30  ;;  %v3938_v30 = vld [vmem:[%s7564_s0 + $0x398] sm:$0xff] }
 0xb0c   :  { %2449 = vmatmul.bf16.gmra.mxu1 %v2041_v58  ;;  %2764 = vmatmul.bf16.gmra.mxu3 %v2104_v34  ;;  %v1848_v58 = vmul.f32 %v3938_v30, %v5512_v49  ;;  %v3939_v34 = vld [vmem:[%s7564_s0 + $0x780] sm:$0xff] }
 0xb0e   :  { %v2046_v48 = vpack.c.bf16 %v1848_v58, %v1847_v52 }
 0xb0f   :  { %v2725_v44 = vpop.f32.mrf.mxu3 }
 0xb10   :  { %3045 = vst.msk [vmem:[%s7568_s6 + $0x6b0] sm:$0xff] %vm2830_vm7, %v2725_v44  ;;  %v1973_v44 = vmul.f32 %v3939_v34, %v5512_v49 }
 0xb11   :  { %v2412_v9 = vpop.f32.mrf.mxu1 }
 0xb12   :  { %2920 = vst.msk [vmem:[%s7568_s6 + $0x2c8] sm:$0xff] %vm2830_vm7, %v2412_v9  ;;  %v3940_v9 = vld [vmem:[%s7564_s0 + $0x788] sm:$0xff] }
 0xb13   :  { %v1974_v25 = vmul.f32 %v3940_v9, %v5512_v49 }
 0xb15   :  { %v2109_v63 = vpack.c.bf16 %v1974_v25, %v1973_v44  ;;  %v3957_v25 = vld [vmem:[%s7564_s0 + $0x3e0] sm:$0xff] }
 0xb17   :  { %v2727_v19 = vpop.f32.mrf.mxu3 }
 0xb18   :  { %3046 = vst.msk [vmem:[%s7568_s6 + $0x6b8] sm:$0xff] %vm2830_vm7, %v2727_v19  ;;  %v1849_v19 = vmul.f32 %v3941_v3, %v5512_v49 }
 0xb19   :  { %v2415_v14 = vpop.f32.mrf.mxu1 }
 0xb1a   :  { %2921 = vst.msk [vmem:[%s7568_s6 + $0x2d0] sm:$0xff] %vm2830_vm7, %v2415_v14  ;;  %v3942_v14 = vld [vmem:[%s7564_s0 + $0x3a8] sm:$0xff] }
 0xb1c   :  { %2454 = vmatmul.bf16.gmra.mxu1 %v2042_v35  ;;  %2769 = vmatmul.bf16.gmra.mxu3 %v2105_v17  ;;  %v1850_v35 = vmul.f32 %v3942_v14, %v5512_v49  ;;  %v3943_v17 = vld [vmem:[%s7564_s0 + $0x790] sm:$0xff] }
 0xb1e   :  { %v2047_v59 = vpack.c.bf16 %v1850_v35, %v1849_v19 }
 0xb1f   :  { %v2730_v1 = vpop.f32.mrf.mxu3 }
 0xb20   :  { %3047 = vst.msk [vmem:[%s7568_s6 + $0x6c0] sm:$0xff] %vm2830_vm7, %v2730_v1  ;;  %v1975_v1 = vmul.f32 %v3943_v17, %v5512_v49 }
 0xb21   :  { %v2417_v8 = vpop.f32.mrf.mxu1 }
 0xb22   :  { %2922 = vst.msk [vmem:[%s7568_s6 + $0x2d8] sm:$0xff] %vm2830_vm7, %v2417_v8  ;;  %v3944_v8 = vld [vmem:[%s7564_s0 + $0x798] sm:$0xff] }
 0xb23   :  { %v1976_v27 = vmul.f32 %v3944_v8, %v5512_v49 }
 0xb25   :  { %v2110_v21 = vpack.c.bf16 %v1976_v27, %v1975_v1  ;;  %v3961_v27 = vld [vmem:[%s7564_s0 + $0x7e0] sm:$0xff] }
 0xb27   :  { %v2732_v2 = vpop.f32.mrf.mxu3 }
 0xb28   :  { %3048 = vst.msk [vmem:[%s7568_s6 + $0x6c8] sm:$0xff] %vm2830_vm7, %v2732_v2  ;;  %v1851_v2 = vmul.f32 %v3945_v18, %v5512_v49 }
 0xb29   :  { %v2420_v12 = vpop.f32.mrf.mxu1 }
 0xb2a   :  { %2923 = vst.msk [vmem:[%s7568_s6 + $0x2e0] sm:$0xff] %vm2830_vm7, %v2420_v12  ;;  %v3946_v12 = vld [vmem:[%s7564_s0 + $0x3b8] sm:$0xff] }
 0xb2c   :  { %2459 = vmatmul.bf16.gmra.mxu1 %v2043_v37  ;;  %2774 = vmatmul.bf16.gmra.mxu3 %v2106_v16  ;;  %v1852_v37 = vmul.f32 %v3946_v12, %v5512_v49  ;;  %v3947_v16 = vld [vmem:[%s7564_s0 + $0x7a0] sm:$0xff]  ;;  %v3963_v12 = vld [vmem:[%s7564_s0 + $0x7f0] sm:$0xff] }
 0xb2e   :  { %v2048_v62 = vpack.c.bf16 %v1852_v37, %v1851_v2  ;;  %v1987_v37 = vmul.f32 %v3963_v12, %v5512_v49 }
 0xb2f   :  { %v2735_v43 = vpop.f32.mrf.mxu3 }
 0xb30   :  { %3049 = vst.msk [vmem:[%s7568_s6 + $0x6d0] sm:$0xff] %vm2830_vm7, %v2735_v43  ;;  %v1977_v43 = vmul.f32 %v3947_v16, %v5512_v49  ;;  %v3964_v16 = vld [vmem:[%s7564_s0 + $0x7f8] sm:$0xff] }
 0xb31   :  { %v2422_v28 = vpop.f32.mrf.mxu1 }
 0xb32   :  { %2924 = vst.msk [vmem:[%s7568_s6 + $0x2e8] sm:$0xff] %vm2830_vm7, %v2422_v28  ;;  %v3948_v28 = vld [vmem:[%s7564_s0 + $0x7a8] sm:$0xff] }
 0xb33   :  { %v1978_v53 = vmul.f32 %v3948_v28, %v5512_v49 }
 0xb35   :  { %v2111_v6 = vpack.c.bf16 %v1978_v53, %v1977_v43  ;;  %v1988_v43 = vmul.f32 %v3964_v16, %v5512_v49 }
 0xb37   :  { %v2737_v31 = vpop.f32.mrf.mxu3 }
 0xb38   :  { %3050 = vst.msk [vmem:[%s7568_s6 + $0x6d8] sm:$0xff] %vm2830_vm7, %v2737_v31  ;;  %v1853_v31 = vmul.f32 %v3949_v32, %v5512_v49 }
 0xb39   :  { %v2425_v40 = vpop.f32.mrf.mxu1 }
 0xb3a   :  { %2925 = vst.msk [vmem:[%s7568_s6 + $0x2f0] sm:$0xff] %vm2830_vm7, %v2425_v40  ;;  %v3950_v40 = vld [vmem:[%s7564_s0 + $0x3c8] sm:$0xff] }
 0xb3c   :  { %2464 = vmatmul.bf16.gmra.mxu1 %v2044_v24  ;;  %2779 = vmatmul.bf16.gmra.mxu3 %v2107_v15  ;;  %v1854_v24 = vmul.f32 %v3950_v40, %v5512_v49  ;;  %v3951_v15 = vld [vmem:[%s7564_s0 + $0x7b0] sm:$0xff] }
 0xb3e   :  { %v2049_v47 = vpack.c.bf16 %v1854_v24, %v1853_v31 }
 0xb3f   :  { %v2740_v29 = vpop.f32.mrf.mxu3 }
 0xb40   :  { %3051 = vst.msk [vmem:[%s7568_s6 + $0x6e0] sm:$0xff] %vm2830_vm7, %v2740_v29  ;;  %v1979_v29 = vmul.f32 %v3951_v15, %v5512_v49 }
 0xb41   :  { %v2427_v11 = vpop.f32.mrf.mxu1 }
 0xb42   :  { %2926 = vst.msk [vmem:[%s7568_s6 + $0x2f8] sm:$0xff] %vm2830_vm7, %v2427_v11  ;;  %v3952_v11 = vld [vmem:[%s7564_s0 + $0x7b8] sm:$0xff] }
 0xb43   :  { %v1980_v10 = vmul.f32 %v3952_v11, %v5512_v49 }
 0xb45   :  { %v2112_v33 = vpack.c.bf16 %v1980_v10, %v1979_v29 }
 0xb47   :  { %v2742_v36 = vpop.f32.mrf.mxu3 }
 0xb48   :  { %3052 = vst.msk [vmem:[%s7568_s6 + $0x6e8] sm:$0xff] %vm2830_vm7, %v2742_v36  ;;  %v1855_v36 = vmul.f32 %v3953_v23, %v5512_v49 }
 0xb49   :  { %v2430_v55 = vpop.f32.mrf.mxu1 }
 0xb4a   :  { %2927 = vst.msk [vmem:[%s7568_s6 + $0x300] sm:$0xff] %vm2830_vm7, %v2430_v55  ;;  %v3954_v55 = vld [vmem:[%s7564_s0 + $0x3d8] sm:$0xff] }
 0xb4c   :  { %2469 = vmatmul.bf16.gmra.mxu1 %v2045_v57  ;;  %2784 = vmatmul.bf16.gmra.mxu3 %v2108_v13  ;;  %v1856_v57 = vmul.f32 %v3954_v55, %v5512_v49  ;;  %v3955_v13 = vld [vmem:[%s7564_s0 + $0x7c0] sm:$0xff] }
 0xb4e   :  { %v2050_v58 = vpack.c.bf16 %v1856_v57, %v1855_v36 }
 0xb4f   :  { %v2745_v60 = vpop.f32.mrf.mxu3 }
 0xb50   :  { %3053 = vst.msk [vmem:[%s7568_s6 + $0x6f0] sm:$0xff] %vm2830_vm7, %v2745_v60  ;;  %v1981_v60 = vmul.f32 %v3955_v13, %v5512_v49 }
 0xb51   :  { %v2432_v56 = vpop.f32.mrf.mxu1 }
 0xb52   :  { %2928 = vst.msk [vmem:[%s7568_s6 + $0x308] sm:$0xff] %vm2830_vm7, %v2432_v56  ;;  %v3956_v56 = vld [vmem:[%s7564_s0 + $0x7c8] sm:$0xff] }
 0xb53   :  { %v1982_v45 = vmul.f32 %v3956_v56, %v5512_v49 }
 0xb55   :  { %v2113_v34 = vpack.c.bf16 %v1982_v45, %v1981_v60 }
 0xb57   :  { %v2747_v51 = vpop.f32.mrf.mxu3 }
 0xb58   :  { %3054 = vst.msk [vmem:[%s7568_s6 + $0x6f8] sm:$0xff] %vm2830_vm7, %v2747_v51  ;;  %v1857_v51 = vmul.f32 %v3957_v25, %v5512_v49 }
 0xb59   :  { %v2435_v4 = vpop.f32.mrf.mxu1 }
 0xb5a   :  { %2929 = vst.msk [vmem:[%s7568_s6 + $0x310] sm:$0xff] %vm2830_vm7, %v2435_v4  ;;  %v3958_v4 = vld [vmem:[%s7564_s0 + $0x3e8] sm:$0xff] }
 0xb5c   :  { %2474 = vmatmul.bf16.gmra.mxu1 %v2046_v48  ;;  %2789 = vmatmul.bf16.gmra.mxu3 %v2109_v63  ;;  %v1858_v48 = vmul.f32 %v3958_v4, %v5512_v49  ;;  %v3959_v63 = vld [vmem:[%s7564_s0 + $0x7d0] sm:$0xff] }
 0xb5e   :  { %v2051_v35 = vpack.c.bf16 %v1858_v48, %v1857_v51 }
 0xb5f   :  { %v2750_v5 = vpop.f32.mrf.mxu3 }
 0xb60   :  { %3055 = vst.msk [vmem:[%s7568_s6 + $0x700] sm:$0xff] %vm2830_vm7, %v2750_v5  ;;  %v1983_v5 = vmul.f32 %v3959_v63, %v5512_v49 }
 0xb61   :  { %v2437_v38 = vpop.f32.mrf.mxu1 }
 0xb62   :  { %2930 = vst.msk [vmem:[%s7568_s6 + $0x318] sm:$0xff] %vm2830_vm7, %v2437_v38  ;;  %v3960_v38 = vld [vmem:[%s7564_s0 + $0x7d8] sm:$0xff] }
 0xb63   :  { %v1984_v3 = vmul.f32 %v3960_v38, %v5512_v49 }
 0xb65   :  { %v2114_v17 = vpack.c.bf16 %v1984_v3, %v1983_v5 }
 0xb67   :  { %v2752_v22 = vpop.f32.mrf.mxu3 }
 0xb68   :  { %3056 = vst.msk [vmem:[%s7568_s6 + $0x708] sm:$0xff] %vm2830_vm7, %v2752_v22  ;;  %v1985_v22 = vmul.f32 %v3961_v27, %v5512_v49 }
 0xb69   :  { %v2440_v39 = vpop.f32.mrf.mxu1 }
 0xb6a   :  { %2931 = vst.msk [vmem:[%s7568_s6 + $0x320] sm:$0xff] %vm2830_vm7, %v2440_v39  ;;  %v3962_v39 = vld [vmem:[%s7564_s0 + $0x7e8] sm:$0xff] }
 0xb6c   :  { %2479 = vmatmul.bf16.gmra.mxu1 %v2047_v59  ;;  %2794 = vmatmul.bf16.gmra.mxu3 %v2110_v21  ;;  %v1986_v59 = vmul.f32 %v3962_v39, %v5512_v49 }
 0xb6f   :  { %v2755_v26 = vpop.f32.mrf.mxu3 }
 0xb70   :  { %3057 = vst.msk [vmem:[%s7568_s6 + $0x710] sm:$0xff] %vm2830_vm7, %v2755_v26 }
 0xb71   :  { %v2442_v41 = vpop.f32.mrf.mxu1 }
 0xb72   :  { %2932 = vst.msk [vmem:[%s7568_s6 + $0x328] sm:$0xff] %vm2830_vm7, %v2442_v41  ;;  %v2115_v41 = vpack.c.bf16 %v1986_v59, %v1985_v22 }
 0xb77   :  { %v2757_v54 = vpop.f32.mrf.mxu3 }
 0xb78   :  { %3058 = vst.msk [vmem:[%s7568_s6 + $0x718] sm:$0xff] %vm2830_vm7, %v2757_v54  ;;  %v2116_v54 = vpack.c.bf16 %v1988_v43, %v1987_v37 }
 0xb79   :  { %v2445_v7 = vpop.f32.mrf.mxu1 }
 0xb7a   :  { %2933 = vst.msk [vmem:[%s7568_s6 + $0x330] sm:$0xff] %vm2830_vm7, %v2445_v7 }
 0xb7c   :  { %2484 = vmatmul.bf16.gmra.mxu1 %v2048_v62  ;;  %2799 = vmatmul.bf16.gmra.mxu3 %v2111_v6 }
 0xb7f   :  { %v2760_v46 = vpop.f32.mrf.mxu3 }
 0xb80   :  { %3059 = vst.msk [vmem:[%s7568_s6 + $0x720] sm:$0xff] %vm2830_vm7, %v2760_v46 }
 0xb81   :  { %v2447_v0 = vpop.f32.mrf.mxu1 }
 0xb82   :  { %2934 = vst.msk [vmem:[%s7568_s6 + $0x338] sm:$0xff] %vm2830_vm7, %v2447_v0 }
 0xb87   :  { %v2762_v42 = vpop.f32.mrf.mxu3 }
 0xb88   :  { %3060 = vst.msk [vmem:[%s7568_s6 + $0x728] sm:$0xff] %vm2830_vm7, %v2762_v42 }
 0xb89   :  { %v2450_v20 = vpop.f32.mrf.mxu1 }
 0xb8a   :  { %2935 = vst.msk [vmem:[%s7568_s6 + $0x340] sm:$0xff] %vm2830_vm7, %v2450_v20 }
 0xb8c   :  { %2489 = vmatmul.bf16.gmra.mxu1 %v2049_v47  ;;  %2804 = vmatmul.bf16.gmra.mxu3 %v2112_v33 }
 0xb8f   :  { %v2765_v61 = vpop.f32.mrf.mxu3 }
 0xb90   :  { %3061 = vst.msk [vmem:[%s7568_s6 + $0x730] sm:$0xff] %vm2830_vm7, %v2765_v61 }
 0xb91   :  { %v2452_v50 = vpop.f32.mrf.mxu1 }
 0xb92   :  { %2936 = vst.msk [vmem:[%s7568_s6 + $0x348] sm:$0xff] %vm2830_vm7, %v2452_v50 }
 0xb97   :  { %v2767_v52 = vpop.f32.mrf.mxu3 }
 0xb98   :  { %3062 = vst.msk [vmem:[%s7568_s6 + $0x738] sm:$0xff] %vm2830_vm7, %v2767_v52 }
 0xb99   :  { %v2455_v30 = vpop.f32.mrf.mxu1 }
 0xb9a   :  { %2937 = vst.msk [vmem:[%s7568_s6 + $0x350] sm:$0xff] %vm2830_vm7, %v2455_v30 }
 0xb9c   :  { %2494 = vmatmul.bf16.gmra.mxu1 %v2050_v58  ;;  %2809 = vmatmul.bf16.gmra.mxu3 %v2113_v34 }
 0xb9f   :  { %v2770_v44 = vpop.f32.mrf.mxu3 }
 0xba0   :  { %3063 = vst.msk [vmem:[%s7568_s6 + $0x740] sm:$0xff] %vm2830_vm7, %v2770_v44 }
 0xba1   :  { %v2457_v9 = vpop.f32.mrf.mxu1 }
 0xba2   :  { %2938 = vst.msk [vmem:[%s7568_s6 + $0x358] sm:$0xff] %vm2830_vm7, %v2457_v9 }
 0xba7   :  { %v2772_v19 = vpop.f32.mrf.mxu3 }
 0xba8   :  { %3064 = vst.msk [vmem:[%s7568_s6 + $0x748] sm:$0xff] %vm2830_vm7, %v2772_v19 }
 0xba9   :  { %v2460_v14 = vpop.f32.mrf.mxu1 }
 0xbaa   :  { %2939 = vst.msk [vmem:[%s7568_s6 + $0x360] sm:$0xff] %vm2830_vm7, %v2460_v14 }
 0xbac   :  { %2499 = vmatmul.bf16.gmra.mxu1 %v2051_v35  ;;  %2814 = vmatmul.bf16.gmra.mxu3 %v2114_v17 }
 0xbaf   :  { %v2775_v1 = vpop.f32.mrf.mxu3 }
 0xbb0   :  { %3065 = vst.msk [vmem:[%s7568_s6 + $0x750] sm:$0xff] %vm2830_vm7, %v2775_v1 }
 0xbb1   :  { %v2462_v8 = vpop.f32.mrf.mxu1 }
 0xbb2   :  { %2940 = vst.msk [vmem:[%s7568_s6 + $0x368] sm:$0xff] %vm2830_vm7, %v2462_v8 }
 0xbb7   :  { %v2777_v21 = vpop.f32.mrf.mxu3 }
 0xbb8   :  { %3066 = vst.msk [vmem:[%s7568_s6 + $0x758] sm:$0xff] %vm2830_vm7, %v2777_v21 }
 0xbb9   :  { %v2465_v26 = vpop.f32.mrf.mxu1 }
 0xbba   :  { %2941 = vst.msk [vmem:[%s7568_s6 + $0x370] sm:$0xff] %vm2830_vm7, %v2465_v26 }
 0xbbc   :  { %2819 = vmatmul.bf16.gmra.mxu3 %v2115_v41 }
 0xbbf   :  { %v2780_v18 = vpop.f32.mrf.mxu3 }
 0xbc0   :  { %3067 = vst.msk [vmem:[%s7568_s6 + $0x760] sm:$0xff] %vm2830_vm7, %v2780_v18 }
 0xbc1   :  { %v2467_v2 = vpop.f32.mrf.mxu1 }
 0xbc2   :  { %2942 = vst.msk [vmem:[%s7568_s6 + $0x378] sm:$0xff] %vm2830_vm7, %v2467_v2 }
 0xbc7   :  { %v2782_v28 = vpop.f32.mrf.mxu3 }
 0xbc8   :  { %3068 = vst.msk [vmem:[%s7568_s6 + $0x768] sm:$0xff] %vm2830_vm7, %v2782_v28 }
 0xbc9   :  { %v2470_v53 = vpop.f32.mrf.mxu1 }
 0xbca   :  { %2943 = vst.msk [vmem:[%s7568_s6 + $0x380] sm:$0xff] %vm2830_vm7, %v2470_v53 }
 0xbcc   :  { %2824 = vmatmul.bf16.gmra.mxu3 %v2116_v54 }
 0xbcf   :  { %v2785_v7 = vpop.f32.mrf.mxu3 }
 0xbd0   :  { %3069 = vst.msk [vmem:[%s7568_s6 + $0x770] sm:$0xff] %vm2830_vm7, %v2785_v7 }
 0xbd1   :  { %v2472_v62 = vpop.f32.mrf.mxu1 }
 0xbd2   :  { %2944 = vst.msk [vmem:[%s7568_s6 + $0x388] sm:$0xff] %vm2830_vm7, %v2472_v62 }
 0xbd7   :  { %v2787_v49 = vpop.f32.mrf.mxu3 }
 0xbd8   :  { %3070 = vst.msk [vmem:[%s7568_s6 + $0x778] sm:$0xff] %vm2830_vm7, %v2787_v49 }
 0xbd9   :  { %v2475_v6 = vpop.f32.mrf.mxu1 }
 0xbda   :  { %2945 = vst.msk [vmem:[%s7568_s6 + $0x390] sm:$0xff] %vm2830_vm7, %v2475_v6 }
 0xbdf   :  { %v2790_v46 = vpop.f32.mrf.mxu3 }
 0xbe0   :  { %3071 = vst.msk [vmem:[%s7568_s6 + $0x780] sm:$0xff] %vm2830_vm7, %v2790_v46 }
 0xbe1   :  { %v2477_v0 = vpop.f32.mrf.mxu1 }
 0xbe2   :  { %2946 = vst.msk [vmem:[%s7568_s6 + $0x398] sm:$0xff] %vm2830_vm7, %v2477_v0 }
 0xbe7   :  { %v2792_v32 = vpop.f32.mrf.mxu3 }
 0xbe8   :  { %3072 = vst.msk [vmem:[%s7568_s6 + $0x788] sm:$0xff] %vm2830_vm7, %v2792_v32 }
 0xbe9   :  { %v2480_v31 = vpop.f32.mrf.mxu1 }
 0xbea   :  { %2947 = vst.msk [vmem:[%s7568_s6 + $0x3a0] sm:$0xff] %vm2830_vm7, %v2480_v31 }
 0xbef   :  { %v2795_v40 = vpop.f32.mrf.mxu3 }
 0xbf0   :  { %3073 = vst.msk [vmem:[%s7568_s6 + $0x790] sm:$0xff] %vm2830_vm7, %v2795_v40 }
 0xbf1   :  { %v2482_v24 = vpop.f32.mrf.mxu1 }
 0xbf2   :  { %2948 = vst.msk [vmem:[%s7568_s6 + $0x3a8] sm:$0xff] %vm2830_vm7, %v2482_v24 }
 0xbf7   :  { %v2797_v15 = vpop.f32.mrf.mxu3 }
 0xbf8   :  { %3074 = vst.msk [vmem:[%s7568_s6 + $0x798] sm:$0xff] %vm2830_vm7, %v2797_v15 }
 0xbf9   :  { %v2485_v29 = vpop.f32.mrf.mxu1 }
 0xbfa   :  { %2949 = vst.msk [vmem:[%s7568_s6 + $0x3b0] sm:$0xff] %vm2830_vm7, %v2485_v29 }
 0xbff   :  { %v2800_v11 = vpop.f32.mrf.mxu3 }
 0xc00   :  { %3075 = vst.msk [vmem:[%s7568_s6 + $0x7a0] sm:$0xff] %vm2830_vm7, %v2800_v11 }
 0xc01   :  { %v2487_v10 = vpop.f32.mrf.mxu1 }
 0xc02   :  { %2950 = vst.msk [vmem:[%s7568_s6 + $0x3b8] sm:$0xff] %vm2830_vm7, %v2487_v10 }
 0xc07   :  { %v2802_v42 = vpop.f32.mrf.mxu3 }
 0xc08   :  { %3076 = vst.msk [vmem:[%s7568_s6 + $0x7a8] sm:$0xff] %vm2830_vm7, %v2802_v42 }
 0xc09   :  { %v2490_v20 = vpop.f32.mrf.mxu1 }
 0xc0a   :  { %2951 = vst.msk [vmem:[%s7568_s6 + $0x3c0] sm:$0xff] %vm2830_vm7, %v2490_v20 }
 0xc0f   :  { %v2805_v47 = vpop.f32.mrf.mxu3 }
 0xc10   :  { %3077 = vst.msk [vmem:[%s7568_s6 + $0x7b0] sm:$0xff] %vm2830_vm7, %v2805_v47 }
 0xc11   :  { %v2492_v33 = vpop.f32.mrf.mxu1 }
 0xc12   :  { %2952 = vst.msk [vmem:[%s7568_s6 + $0x3c8] sm:$0xff] %vm2830_vm7, %v2492_v33 }
 0xc17   :  { %v2807_v61 = vpop.f32.mrf.mxu3 }
 0xc18   :  { %3078 = vst.msk [vmem:[%s7568_s6 + $0x7b8] sm:$0xff] %vm2830_vm7, %v2807_v61 }
 0xc19   :  { %v2495_v50 = vpop.f32.mrf.mxu1 }
 0xc1a   :  { %2953 = vst.msk [vmem:[%s7568_s6 + $0x3d0] sm:$0xff] %vm2830_vm7, %v2495_v50 }
 0xc1f   :  { %v2810_v23 = vpop.f32.mrf.mxu3 }
 0xc20   :  { %3079 = vst.msk [vmem:[%s7568_s6 + $0x7c0] sm:$0xff] %vm2830_vm7, %v2810_v23 }
 0xc21   :  { %v2497_v36 = vpop.f32.mrf.mxu1 }
 0xc22   :  { %2954 = vst.msk [vmem:[%s7568_s6 + $0x3d8] sm:$0xff] %vm2830_vm7, %v2497_v36 }
 0xc27   :  { %v2812_v55 = vpop.f32.mrf.mxu3 }
 0xc28   :  { %3080 = vst.msk [vmem:[%s7568_s6 + $0x7c8] sm:$0xff] %vm2830_vm7, %v2812_v55 }
 0xc29   :  { %v2500_v57 = vpop.f32.mrf.mxu1 }
 0xc2a   :  { %2955 = vst.msk [vmem:[%s7568_s6 + $0x3e0] sm:$0xff] %vm2830_vm7, %v2500_v57 }
 0xc2f   :  { %v2815_v13 = vpop.f32.mrf.mxu3 }
 0xc30   :  { %3081 = vst.msk [vmem:[%s7568_s6 + $0x7d0] sm:$0xff] %vm2830_vm7, %v2815_v13 }
 0xc31   :  { %v2502_v60 = vpop.f32.mrf.mxu1 }
 0xc32   :  { %2956 = vst.msk [vmem:[%s7568_s6 + $0x3e8] sm:$0xff] %vm2830_vm7, %v2502_v60 }
 0xc37   :  { %v2817_v56 = vpop.f32.mrf.mxu3 }
 0xc38   :  { %3082 = vst.msk [vmem:[%s7568_s6 + $0x7d8] sm:$0xff] %vm2830_vm7, %v2817_v56 }
 0xc3f   :  { %v2820_v45 = vpop.f32.mrf.mxu3 }
 0xc40   :  { %3083 = vst.msk [vmem:[%s7568_s6 + $0x7e0] sm:$0xff] %vm2830_vm7, %v2820_v45 }
 0xc47   :  { %v2822_v52 = vpop.f32.mrf.mxu3 }
 0xc48   :  { %3084 = vst.msk [vmem:[%s7568_s6 + $0x7e8] sm:$0xff] %vm2830_vm7, %v2822_v52 }
 0xc4f   :  { %v2825_v30 = vpop.f32.mrf.mxu3 }
 0xc50   :  { %3085 = vst.msk [vmem:[%s7568_s6 + $0x7f0] sm:$0xff] %vm2830_vm7, %v2825_v30 }
 0xc57   :  { %v2827_v58 = vpop.f32.mrf.mxu3 }
 0xc58   :  { %3086 = vst.msk [vmem:[%s7568_s6 + $0x7f8] sm:$0xff] %vm2830_vm7, %v2827_v58 }

</bundles_post_ra>
